<compile_context>
chip_gen: v6e
topology: v6e:2x2x1
jax: 0.10.0
libtpu: 0.0.40
codegen_flags: <defaults>
</compile_context>

<pallas_src>
import functools
import math

import jax
import jax.numpy as jnp
from jax import lax
from jax.experimental import pallas as pl
from jax.experimental.pallas import tpu as pltpu

EPS = 1e-6

# HBM storage dtype for weights and MXU input dtype.  Set both to jnp.bfloat16
# on v6e / v7x for bandwidth; float32 default keeps parity with the PyTorch ref.
STORAGE_DTYPE = jnp.float32
MXU_DTYPE = jnp.float32


def _vmem_limit_bytes():
    """Generation-aware scoped-VMEM budget: <=3/4 of physical, capped at 96 MiB."""
    try:
        cap = int(pltpu.get_tpu_info().vmem_capacity_bytes)
    except Exception:  # conservative fallback if the query is unavailable
        cap = 64 * 1024 * 1024
    return max(32 * 1024 * 1024, min(96 * 1024 * 1024, (cap * 3) // 4))


# ------------------------- fused whole-stack kernel -------------------------


def _fused_stack_kernel(
    src_ref, tgt_ref, srcm_ref, tgtp_ref,
    e_wqkv_ref, e_wo_ref, e_w1_ref, e_w2_ref, e_ln_ref, e_b_ref,
    d_wqkv_s_ref, d_wqkv_x_ref, d_wo_s_ref, d_wo_x_ref,
    d_w1_ref, d_w2_ref, d_ln_ref, d_b_ref,
    norms_ref,
    osrc_ref, otgt_ref,
    *, n_heads, n_layers, d_model, d_ff, causal_tgt,
):
    """Full encoder/decoder stack + final norms for one batch element."""
    f32 = jnp.float32
    D = d_model
    d_k = D // n_heads
    scale = 1.0 / math.sqrt(d_k)

    src = src_ref[0].astype(f32)                      # [S_src, D] residual stream
    tgt = tgt_ref[0].astype(f32)                      # [S_tgt, D] residual stream
    s_tgt = tgt.shape[0]

    src_keep = srcm_ref[0].astype(f32) != 0.0         # [1, S_src]
    tgt_keep = tgtp_ref[0].astype(f32) != 0.0         # [1, S_tgt]
    if causal_tgt:
        # Causal (subsequent-position) mask generated in-kernel: pure VPU work,
        # no [B, S, S] HBM mask traffic.
        rows = lax.broadcasted_iota(jnp.int32, (s_tgt, s_tgt), 0)
        cols = lax.broadcasted_iota(jnp.int32, (s_tgt, s_tgt), 1)
        tgt_keep = jnp.logical_and(tgt_keep, cols <= rows)   # [S_tgt, S_tgt]

    def _ln(x, gamma, beta):
        # torch-style LayerNorm: unbiased std, eps added to the std (exact divide).
        d = x.shape[-1]
        mean = jnp.mean(x, axis=-1, keepdims=True)
        diff = x - mean
        var = jnp.sum(diff * diff, axis=-1, keepdims=True) * (1.0 / (d - 1))
        return gamma * diff / (jnp.sqrt(var) + EPS) + beta

    def _mha(q_in, kv_in, keep, wqkv, bqkv, wo, bo, *, is_self):
        """x-residual NOT included; returns Wo-projected multi-head attention."""
        if is_self:
            # Fused QKV projection: one [S,D] x [D,3D] matmul.
            qkv = jnp.dot(q_in.astype(MXU_DTYPE), wqkv.astype(MXU_DTYPE),
                          preferred_element_type=f32) + bqkv
            q = qkv[:, :D]
            k = qkv[:, D:2 * D]
            v = qkv[:, 2 * D:]
        else:
            # Cross-attention: Q from the (already normed) decoder stream,
            # K/V from the VMEM-resident normed encoder memory.
            q = jnp.dot(q_in.astype(MXU_DTYPE), wqkv[:, :D].astype(MXU_DTYPE),
                        preferred_element_type=f32) + bqkv[:, :D]
            kvp = jnp.dot(kv_in.astype(MXU_DTYPE), wqkv[:, D:].astype(MXU_DTYPE),
                          preferred_element_type=f32) + bqkv[:, D:]
            k = kvp[:, :D]
            v = kvp[:, D:]

        # Per-head accumulation into the Wo row-slice: same MXU FLOPs as a
        # concat + [S,D]x[D,D] matmul, but one lane-contiguous accumulator and
        # no cross-lane concat shuffles / live head outputs.
        acc = jnp.zeros((q.shape[0], D), f32)
        for hh in range(n_heads):
            lo = hh * d_k
            qh = q[:, lo:lo + d_k]
            kh = k[:, lo:lo + d_k]
            vh = v[:, lo:lo + d_k]
            s = lax.dot_general(qh.astype(MXU_DTYPE), kh.astype(MXU_DTYPE),
                                (((1,), (1,)), ((), ())),
                                preferred_element_type=f32) * scale
            s = jnp.where(keep, s, f32(-1e9))          # broadcast over heads/rows
            s = s - jnp.max(s, axis=-1, keepdims=True)
            p = jnp.exp(s)
            p = p * pl.reciprocal(jnp.sum(p, axis=-1, keepdims=True), approx=True)
            oh = jnp.dot(p.astype(MXU_DTYPE), vh.astype(MXU_DTYPE),
                         preferred_element_type=f32)
            acc = acc + jnp.dot(oh.astype(MXU_DTYPE),
                                wo[lo:lo + d_k, :].astype(MXU_DTYPE),
                                preferred_element_type=f32)
        return acc + bo

    def _ffn(x_n, w1, b1, w2, b2):
        h1 = jnp.dot(x_n.astype(MXU_DTYPE), w1.astype(MXU_DTYPE),
                     preferred_element_type=f32) + b1
        h1 = jnp.maximum(h1, 0.0)
        return jnp.dot(h1.astype(MXU_DTYPE), w2.astype(MXU_DTYPE),
                       preferred_element_type=f32) + b2

    # Statically-unrolled layer loop (layer weights indexed along the stacked axis).
    for i in range(n_layers):
        # ---------------- encoder layer i ----------------
        e_ln = e_ln_ref[i].astype(f32)               # [4, D] : n0_g, n0_b, n1_g, n1_b
        e_b = e_b_ref[i].astype(f32)                 # [4, BW]: bqkv, bo, b1, b2
        xn = _ln(src, e_ln[0:1], e_ln[1:2])
        src = src + _mha(xn, xn, src_keep,
                         e_wqkv_ref[i].astype(f32), e_b[0:1, :3 * D],
                         e_wo_ref[i].astype(f32), e_b[1:2, :D], is_self=True)
        xn = _ln(src, e_ln[2:3], e_ln[3:4])
        src = src + _ffn(xn, e_w1_ref[i].astype(f32), e_b[2:3, :d_ff],
                         e_w2_ref[i].astype(f32), e_b[3:4, :D])

        # memory = self.norm[i](src) — fused, stays in VMEM.
        nrm = norms_ref[i].astype(f32)               # [2, D]
        mem = _ln(src, nrm[0:1], nrm[1:2])

        # ---------------- decoder layer i ----------------
        d_ln = d_ln_ref[i].astype(f32)               # [6, D]
        d_b = d_b_ref[i].astype(f32)                 # [6, BW]: bqkv_s, bqkv_x, bo_s, bo_x, b1, b2
        xn = _ln(tgt, d_ln[0:1], d_ln[1:2])
        tgt = tgt + _mha(xn, xn, tgt_keep,
                         d_wqkv_s_ref[i].astype(f32), d_b[0:1, :3 * D],
                         d_wo_s_ref[i].astype(f32), d_b[2:3, :D], is_self=True)
        xn = _ln(tgt, d_ln[2:3], d_ln[3:4])
        tgt = tgt + _mha(xn, mem, src_keep,
                         d_wqkv_x_ref[i].astype(f32), d_b[1:2, :3 * D],
                         d_wo_x_ref[i].astype(f32), d_b[3:4, :D], is_self=False)
        xn = _ln(tgt, d_ln[4:5], d_ln[5:6])
        tgt = tgt + _ffn(xn, d_w1_ref[i].astype(f32), d_b[4:5, :d_ff],
                         d_w2_ref[i].astype(f32), d_b[5:6, :D])

    # Final norms (self.norm[-2], self.norm[-1]) folded into the same kernel.
    nrm = norms_ref[n_layers - 1].astype(f32)
    osrc_ref[0] = _ln(src, nrm[0:1], nrm[1:2]).astype(osrc_ref.dtype)
    nrm = norms_ref[n_layers].astype(f32)
    otgt_ref[0] = _ln(tgt, nrm[0:1], nrm[1:2]).astype(otgt_ref.dtype)


# ------------------------- pallas_call wrapper -------------------------


def _bspec(shape, *, batched=False):
    rank = len(shape)
    if batched:
        blk = (1,) + tuple(shape[1:])
        return pl.BlockSpec(blk, lambda b: (b,) + (0,) * (rank - 1))
    # Whole-array block, constant index: DMA'd once, resident across the grid.
    return pl.BlockSpec(tuple(shape), lambda b: (0,) * rank)


def layerwise_encoder_decoder(params, src_input, src_mask, tgt_input, tgt_pad_mask,
                              *, causal_tgt=True):
    """Forward pass of LayerWiseEncoderDecoder as a single fused pallas_call.

    `tgt_pad_mask` is the [B, 1, S_tgt] key-padding part of the target mask; the
    causal (subsequent-position) part is generated in-kernel when causal_tgt=True
    (standard tgt_mask = pad & subsequent).  An arbitrary precomputed
    [B, S_tgt, S_tgt] mask would instead have to be passed as a data input.
    """
    B, s_src, D = src_input.shape
    s_tgt = tgt_input.shape[1]
    N, H, d_ff = params["N"], params["h"], params["d_ff"]
    enc, dec = params["enc"], params["dec"]

    kernel = functools.partial(
        _fused_stack_kernel,
        n_heads=H, n_layers=N, d_model=D, d_ff=d_ff, causal_tgt=causal_tgt)

    operands = (
        src_input, tgt_input, src_mask, tgt_pad_mask,
        enc["wqkv"], enc["wo"], enc["w1"], enc["w2"], enc["ln"], enc["bias"],
        dec["wqkv_self"], dec["wqkv_src"], dec["wo_self"], dec["wo_src"],
        dec["w1"], dec["w2"], dec["ln"], dec["bias"],
        params["norms"],
    )
    in_specs = [_bspec(op.shape, batched=True) for op in operands[:4]]
    in_specs += [_bspec(op.shape) for op in operands[4:]]

    out_shape = (jax.ShapeDtypeStruct((B, s_src, D), src_input.dtype),
                 jax.ShapeDtypeStruct((B, s_tgt, D), tgt_input.dtype))
    out_specs = (_bspec((B, s_src, D), batched=True),
                 _bspec((B, s_tgt, D), batched=True))

    return pl.pallas_call(
        kernel,
        out_shape=out_shape,
        grid=(B,),
        in_specs=in_specs,
        out_specs=out_specs,
        compiler_params=pltpu.CompilerParams(
            dimension_semantics=("parallel",),          # v7x: one batch elem per TC
            vmem_limit_bytes=_vmem_limit_bytes()),
    )(*operands)


# ------------------------- parameter init -------------------------


def init_params(key, d_model, d_ff, h, N):
    assert d_model % h == 0
    scale = 0.1
    BW = max(3 * d_model, d_ff, d_model)   # packed-bias row width

    def pack(vecs):
        return jnp.stack([jnp.pad(v, (0, BW - v.shape[0])) for v in vecs])

    def attn_weights(k):
        kq, kk, kv, ko = jax.random.split(k, 4)
        wq = scale * jax.random.normal(kq, (d_model, d_model), jnp.float32)
        wk = scale * jax.random.normal(kk, (d_model, d_model), jnp.float32)
        wv = scale * jax.random.normal(kv, (d_model, d_model), jnp.float32)
        wo = scale * jax.random.normal(ko, (d_model, d_model), jnp.float32)
        return jnp.concatenate([wq, wk, wv], axis=1), wo   # fused [D,3D], [D,D]

    zero_d = jnp.zeros((d_model,), jnp.float32)
    zero_3d = jnp.zeros((3 * d_model,), jnp.float32)
    zero_ff = jnp.zeros((d_ff,), jnp.float32)
    one_d = jnp.ones((d_model,), jnp.float32)

    k_enc, k_dec = jax.random.split(key)

    # One encoder layer / one decoder layer, cloned N times (matches `clones`).
    ke_attn, ke_ff = jax.random.split(k_enc)
    e_wqkv, e_wo = attn_weights(ke_attn)
    ke1, ke2 = jax.random.split(ke_ff)
    e_w1 = scale * jax.random.normal(ke1, (d_model, d_ff), jnp.float32)
    e_w2 = scale * jax.random.normal(ke2, (d_ff, d_model), jnp.float32)
    e_ln = jnp.stack([one_d, zero_d, one_d, zero_d])              # n0_g, n0_b, n1_g, n1_b
    e_b = pack([zero_3d, zero_d, zero_ff, zero_d])                # bqkv, bo, b1, b2

    kd_s, kd_x, kd_ff = jax.random.split(k_dec, 3)
    d_wqkv_s, d_wo_s = attn_weights(kd_s)
    d_wqkv_x, d_wo_x = attn_weights(kd_x)
    kd1, kd2 = jax.random.split(kd_ff)
    d_w1 = scale * jax.random.normal(kd1, (d_model, d_ff), jnp.float32)
    d_w2 = scale * jax.random.normal(kd2, (d_ff, d_model), jnp.float32)
    d_ln = jnp.stack([one_d, zero_d, one_d, zero_d, one_d, zero_d])
    d_b = pack([zero_3d, zero_3d, zero_d, zero_d, zero_ff, zero_d])

    def tile(x):   # clones(): N identical copies, stacked along a leading layer axis
        return jnp.stack([x] * N).astype(STORAGE_DTYPE)

    return {
        "h": h, "N": N, "d_model": d_model, "d_ff": d_ff,
        "enc": {"wqkv": tile(e_wqkv), "wo": tile(e_wo), "w1": tile(e_w1),
                "w2": tile(e_w2), "ln": tile(e_ln), "bias": tile(e_b)},
        "dec": {"wqkv_self": tile(d_wqkv_s), "wqkv_src": tile(d_wqkv_x),
                "wo_self": tile(d_wo_s), "wo_src": tile(d_wo_x),
                "w1": tile(d_w1), "w2": tile(d_w2), "ln": tile(d_ln), "bias": tile(d_b)},
        # self.norm: N+1 layernorms ([i,0]=gamma, [i,1]=beta)
        "norms": jnp.stack([jnp.stack([one_d, zero_d])] * (N + 1)).astype(STORAGE_DTYPE),
    }


# ------------------------- main -------------------------

if __name__ == "__main__":
    B, S, D, H, D_FF, N = 2, 8, 32, 4, 64, 2

    key = jax.random.PRNGKey(0)
    k_src, k_tgt, k_params = jax.random.split(key, 3)

    src_input = jax.random.normal(k_src, (B, S, D), jnp.float32)
    tgt_input = jax.random.normal(k_tgt, (B, S, D), jnp.float32)

    # src_mask: (B, 1, S) all valid.  Target mask is the standard pad & causal
    # mask: only the padding part is passed as data — the causal triangle is
    # generated inside the kernel (no [B, S, S] HBM mask traffic).
    src_mask = jnp.ones((B, 1, S), jnp.float32)
    tgt_pad_mask = jnp.ones((B, 1, S), jnp.float32)

    params = init_params(k_params, D, D_FF, H, N)

    # The whole N-layer stack is one pallas_call; jit just wraps the dispatch.
    fwd = jax.jit(lambda s, sm, t, tm:
                  layerwise_encoder_decoder(params, s, sm, t, tm, causal_tgt=True))

    out_src, out_tgt = fwd(src_input, src_mask, tgt_input, tgt_pad_mask)
    jax.block_until_ready(out_src)
    jax.block_until_ready(out_tgt)

    assert out_src.shape == (B, S, D) and out_tgt.shape == (B, S, D)
    assert bool(jnp.all(jnp.isfinite(out_src))) and bool(jnp.all(jnp.isfinite(out_tgt)))
    print("KERNEL_OK")
</pallas_src>

<mosaic_0001>
module attributes {stable_mosaic.version = 11 : i64} {
  func.func @_fused_stack_kernel(%arg0: i32, %arg1: memref<1x8x32xf32, #tpu.memory_space<vmem>>, %arg2: memref<1x8x32xf32, #tpu.memory_space<vmem>>, %arg3: memref<1x1x8xf32, #tpu.memory_space<vmem>>, %arg4: memref<1x1x8xf32, #tpu.memory_space<vmem>>, %arg5: memref<2x32x96xf32, #tpu.memory_space<vmem>>, %arg6: memref<2x32x32xf32, #tpu.memory_space<vmem>>, %arg7: memref<2x32x64xf32, #tpu.memory_space<vmem>>, %arg8: memref<2x64x32xf32, #tpu.memory_space<vmem>>, %arg9: memref<2x4x32xf32, #tpu.memory_space<vmem>>, %arg10: memref<2x4x96xf32, #tpu.memory_space<vmem>>, %arg11: memref<2x32x96xf32, #tpu.memory_space<vmem>>, %arg12: memref<2x32x96xf32, #tpu.memory_space<vmem>>, %arg13: memref<2x32x32xf32, #tpu.memory_space<vmem>>, %arg14: memref<2x32x32xf32, #tpu.memory_space<vmem>>, %arg15: memref<2x32x64xf32, #tpu.memory_space<vmem>>, %arg16: memref<2x64x32xf32, #tpu.memory_space<vmem>>, %arg17: memref<2x6x32xf32, #tpu.memory_space<vmem>>, %arg18: memref<2x6x96xf32, #tpu.memory_space<vmem>>, %arg19: memref<3x2x32xf32, #tpu.memory_space<vmem>>, %arg20: memref<1x8x32xf32, #tpu.memory_space<vmem>>, %arg21: memref<1x8x32xf32, #tpu.memory_space<vmem>>) attributes {dimension_semantics = [#tpu.dimension_semantics<parallel>], iteration_bounds = array<i64: 2>, scalar_prefetch = 0 : i64, scratch_operands = 0 : i64, tpu.core_type = #tpu.core_type<tc>, window_params = [{transform_indices = @transform_0, window_bounds = array<i64: 1, 8, 32>}, {transform_indices = @transform_1, window_bounds = array<i64: 1, 8, 32>}, {transform_indices = @transform_2, window_bounds = array<i64: 1, 1, 8>}, {transform_indices = @transform_3, window_bounds = array<i64: 1, 1, 8>}, {pipeline_mode = #tpu.pipeline_mode<synchronous>, transform_indices = @transform_4, window_bounds = array<i64: 2, 32, 96>}, {pipeline_mode = #tpu.pipeline_mode<synchronous>, transform_indices = @transform_5, window_bounds = array<i64: 2, 32, 32>}, {pipeline_mode = #tpu.pipeline_mode<synchronous>, transform_indices = @transform_6, window_bounds = array<i64: 2, 32, 64>}, {pipeline_mode = #tpu.pipeline_mode<synchronous>, transform_indices = @transform_7, window_bounds = array<i64: 2, 64, 32>}, {pipeline_mode = #tpu.pipeline_mode<synchronous>, transform_indices = @transform_8, window_bounds = array<i64: 2, 4, 32>}, {pipeline_mode = #tpu.pipeline_mode<synchronous>, transform_indices = @transform_9, window_bounds = array<i64: 2, 4, 96>}, {pipeline_mode = #tpu.pipeline_mode<synchronous>, transform_indices = @transform_10, window_bounds = array<i64: 2, 32, 96>}, {pipeline_mode = #tpu.pipeline_mode<synchronous>, transform_indices = @transform_11, window_bounds = array<i64: 2, 32, 96>}, {pipeline_mode = #tpu.pipeline_mode<synchronous>, transform_indices = @transform_12, window_bounds = array<i64: 2, 32, 32>}, {pipeline_mode = #tpu.pipeline_mode<synchronous>, transform_indices = @transform_13, window_bounds = array<i64: 2, 32, 32>}, {pipeline_mode = #tpu.pipeline_mode<synchronous>, transform_indices = @transform_14, window_bounds = array<i64: 2, 32, 64>}, {pipeline_mode = #tpu.pipeline_mode<synchronous>, transform_indices = @transform_15, window_bounds = array<i64: 2, 64, 32>}, {pipeline_mode = #tpu.pipeline_mode<synchronous>, transform_indices = @transform_16, window_bounds = array<i64: 2, 6, 32>}, {pipeline_mode = #tpu.pipeline_mode<synchronous>, transform_indices = @transform_17, window_bounds = array<i64: 2, 6, 96>}, {pipeline_mode = #tpu.pipeline_mode<synchronous>, transform_indices = @transform_18, window_bounds = array<i64: 3, 2, 32>}, {transform_indices = @transform_19, window_bounds = array<i64: 1, 8, 32>}, {transform_indices = @transform_20, window_bounds = array<i64: 1, 8, 32>}]} {
    %c0 = arith.constant 0 : index
    %c0_0 = arith.constant 0 : index
    %c0_1 = arith.constant 0 : index
    %0 = vector.load %arg1[%c0, %c0_0, %c0_1] : memref<1x8x32xf32, #tpu.memory_space<vmem>>, vector<1x8x32xf32>
    %1 = vector.shape_cast %0 : vector<1x8x32xf32> to vector<8x32xf32>
    %c0_2 = arith.constant 0 : index
    %c0_3 = arith.constant 0 : index
    %c0_4 = arith.constant 0 : index
    %2 = vector.load %arg2[%c0_2, %c0_3, %c0_4] : memref<1x8x32xf32, #tpu.memory_space<vmem>>, vector<1x8x32xf32>
    %3 = vector.shape_cast %2 : vector<1x8x32xf32> to vector<8x32xf32>
    %c0_5 = arith.constant 0 : index
    %c0_6 = arith.constant 0 : index
    %c0_7 = arith.constant 0 : index
    %4 = vector.load %arg3[%c0_5, %c0_6, %c0_7] : memref<1x1x8xf32, #tpu.memory_space<vmem>>, vector<1x1x8xf32>
    %5 = vector.shape_cast %4 : vector<1x1x8xf32> to vector<1x8xf32>
    %cst = arith.constant 0.000000e+00 : f32
    %6 = vector.broadcast %cst : f32 to vector<1x8xf32>
    %7 = arith.cmpf one, %5, %6 : vector<1x8xf32>
    %c0_8 = arith.constant 0 : index
    %c0_9 = arith.constant 0 : index
    %c0_10 = arith.constant 0 : index
    %8 = vector.load %arg4[%c0_8, %c0_9, %c0_10] : memref<1x1x8xf32, #tpu.memory_space<vmem>>, vector<1x1x8xf32>
    %9 = vector.shape_cast %8 : vector<1x1x8xf32> to vector<1x8xf32>
    %cst_11 = arith.constant 0.000000e+00 : f32
    %10 = vector.broadcast %cst_11 : f32 to vector<1x8xf32>
    %11 = arith.cmpf one, %9, %10 : vector<1x8xf32>
    %12 = tpu.iota {dimensions = array<i32: 0>} : vector<8x8xi32>
    %13 = tpu.iota {dimensions = array<i32: 1>} : vector<8x8xi32>
    %14 = arith.cmpi sle, %13, %12 : vector<8x8xi32>
    %15 = vector.broadcast %11 : vector<1x8xi1> to vector<8x8xi1>
    %16 = arith.andi %15, %14 : vector<8x8xi1>
    %c0_12 = arith.constant 0 : index
    %c0_13 = arith.constant 0 : index
    %c0_14 = arith.constant 0 : index
    %17 = vector.load %arg9[%c0_12, %c0_13, %c0_14] : memref<2x4x32xf32, #tpu.memory_space<vmem>>, vector<1x4x32xf32>
    %18 = vector.shape_cast %17 : vector<1x4x32xf32> to vector<4x32xf32>
    %c0_15 = arith.constant 0 : index
    %c0_16 = arith.constant 0 : index
    %c0_17 = arith.constant 0 : index
    %19 = vector.load %arg10[%c0_15, %c0_16, %c0_17] : memref<2x4x96xf32, #tpu.memory_space<vmem>>, vector<1x4x96xf32>
    %20 = vector.shape_cast %19 : vector<1x4x96xf32> to vector<4x96xf32>
    %21 = vector.extract_strided_slice %18 {offsets = [0, 0], sizes = [1, 32], strides = [1, 1]} : vector<4x32xf32> to vector<1x32xf32>
    %22 = vector.extract_strided_slice %18 {offsets = [1, 0], sizes = [1, 32], strides = [1, 1]} : vector<4x32xf32> to vector<1x32xf32>
    %cst_18 = arith.constant dense<0.000000e+00> : vector<8xf32>
    %23 = vector.multi_reduction <add>, %1, %cst_18 [1] : vector<8x32xf32> to vector<8xf32>
    %24 = vector.shape_cast %23 : vector<8xf32> to vector<8x1xf32>
    %cst_19 = arith.constant 3.200000e+01 : f32
    %25 = vector.broadcast %cst_19 : f32 to vector<8x1xf32>
    %26 = arith.divf %24, %25 : vector<8x1xf32>
    %27 = vector.broadcast %26 : vector<8x1xf32> to vector<8x32xf32>
    %28 = arith.subf %1, %27 : vector<8x32xf32>
    %29 = arith.mulf %28, %28 : vector<8x32xf32>
    %cst_20 = arith.constant dense<0.000000e+00> : vector<8xf32>
    %30 = vector.multi_reduction <add>, %29, %cst_20 [1] : vector<8x32xf32> to vector<8xf32>
    %31 = vector.shape_cast %30 : vector<8xf32> to vector<8x1xf32>
    %cst_21 = arith.constant 0.0322580636 : f32
    %32 = vector.broadcast %cst_21 : f32 to vector<8x1xf32>
    %33 = arith.mulf %31, %32 : vector<8x1xf32>
    %34 = vector.broadcast %21 : vector<1x32xf32> to vector<8x32xf32>
    %35 = arith.mulf %34, %28 : vector<8x32xf32>
    %36 = math.sqrt %33 : vector<8x1xf32>
    %cst_22 = arith.constant 9.99999997E-7 : f32
    %37 = vector.broadcast %cst_22 : f32 to vector<8x1xf32>
    %38 = arith.addf %36, %37 : vector<8x1xf32>
    %39 = vector.broadcast %38 : vector<8x1xf32> to vector<8x32xf32>
    %40 = arith.divf %35, %39 : vector<8x32xf32>
    %41 = vector.broadcast %22 : vector<1x32xf32> to vector<8x32xf32>
    %42 = arith.addf %40, %41 : vector<8x32xf32>
    %c0_23 = arith.constant 0 : index
    %c0_24 = arith.constant 0 : index
    %c0_25 = arith.constant 0 : index
    %43 = vector.load %arg5[%c0_23, %c0_24, %c0_25] : memref<2x32x96xf32, #tpu.memory_space<vmem>>, vector<1x32x96xf32>
    %44 = vector.shape_cast %43 : vector<1x32x96xf32> to vector<32x96xf32>
    %45 = vector.extract_strided_slice %20 {offsets = [0, 0], sizes = [1, 96], strides = [1, 1]} : vector<4x96xf32> to vector<1x96xf32>
    %c0_26 = arith.constant 0 : index
    %c0_27 = arith.constant 0 : index
    %c0_28 = arith.constant 0 : index
    %46 = vector.load %arg6[%c0_26, %c0_27, %c0_28] : memref<2x32x32xf32, #tpu.memory_space<vmem>>, vector<1x32x32xf32>
    %47 = vector.shape_cast %46 : vector<1x32x32xf32> to vector<32x32xf32>
    %48 = vector.extract_strided_slice %20 {offsets = [1, 0], sizes = [1, 32], strides = [1, 1]} : vector<4x96xf32> to vector<1x32xf32>
    %cst_29 = arith.constant dense<0.000000e+00> : vector<8x96xf32>
    %49 = tpu.matmul %42, %44, %cst_29 {dimension_numbers = #tpu.dot_dimension_numbers<[1], [0], [0], [1], [0, 0, 1, 1], [], []>} : vector<8x32xf32>, vector<32x96xf32>, vector<8x96xf32> -> vector<8x96xf32>
    %50 = vector.broadcast %45 : vector<1x96xf32> to vector<8x96xf32>
    %51 = arith.addf %49, %50 : vector<8x96xf32>
    %52 = vector.extract_strided_slice %51 {offsets = [0, 0], sizes = [8, 32], strides = [1, 1]} : vector<8x96xf32> to vector<8x32xf32>
    %53 = vector.extract_strided_slice %51 {offsets = [0, 32], sizes = [8, 32], strides = [1, 1]} : vector<8x96xf32> to vector<8x32xf32>
    %54 = vector.extract_strided_slice %51 {offsets = [0, 64], sizes = [8, 32], strides = [1, 1]} : vector<8x96xf32> to vector<8x32xf32>
    %cst_30 = arith.constant 0.000000e+00 : f32
    %55 = vector.broadcast %cst_30 : f32 to vector<8x32xf32>
    %56 = vector.extract_strided_slice %52 {offsets = [0, 0], sizes = [8, 8], strides = [1, 1]} : vector<8x32xf32> to vector<8x8xf32>
    %57 = vector.extract_strided_slice %53 {offsets = [0, 0], sizes = [8, 8], strides = [1, 1]} : vector<8x32xf32> to vector<8x8xf32>
    %58 = vector.extract_strided_slice %54 {offsets = [0, 0], sizes = [8, 8], strides = [1, 1]} : vector<8x32xf32> to vector<8x8xf32>
    %cst_31 = arith.constant dense<0.000000e+00> : vector<8x8xf32>
    %59 = tpu.matmul %56, %57, %cst_31 {dimension_numbers = #tpu.dot_dimension_numbers<[1], [1], [0], [0], [0, 0, 1, 0], [], []>} : vector<8x8xf32>, vector<8x8xf32>, vector<8x8xf32> -> vector<8x8xf32>
    %cst_32 = arith.constant 0.353553385 : f32
    %60 = vector.broadcast %cst_32 : f32 to vector<8x8xf32>
    %61 = arith.mulf %59, %60 : vector<8x8xf32>
    %cst_33 = arith.constant -1.000000e+09 : f32
    %62 = vector.shape_cast %7 : vector<1x8xi1> to vector<1x8xi1>
    %63 = vector.broadcast %62 : vector<1x8xi1> to vector<8x8xi1>
    %64 = vector.broadcast %cst_33 : f32 to vector<8x8xf32>
    %65 = arith.select %63, %61, %64 : vector<8x8xi1>, vector<8x8xf32>
    %cst_34 = arith.constant dense<0xFF800000> : vector<8xf32>
    %66 = vector.multi_reduction <maximumf>, %65, %cst_34 [1] : vector<8x8xf32> to vector<8xf32>
    %67 = vector.shape_cast %66 : vector<8xf32> to vector<8x1xf32>
    %68 = vector.broadcast %67 : vector<8x1xf32> to vector<8x8xf32>
    %69 = arith.subf %65, %68 : vector<8x8xf32>
    %70 = math.exp %69 : vector<8x8xf32>
    %cst_35 = arith.constant dense<0.000000e+00> : vector<8xf32>
    %71 = vector.multi_reduction <add>, %70, %cst_35 [1] : vector<8x8xf32> to vector<8xf32>
    %72 = vector.shape_cast %71 : vector<8xf32> to vector<8x1xf32>
    %73 = tpu.reciprocal %72 {approx = true} : vector<8x1xf32> -> vector<8x1xf32>
    %74 = vector.broadcast %73 : vector<8x1xf32> to vector<8x8xf32>
    %75 = arith.mulf %70, %74 : vector<8x8xf32>
    %cst_36 = arith.constant dense<0.000000e+00> : vector<8x8xf32>
    %76 = tpu.matmul %75, %58, %cst_36 {dimension_numbers = #tpu.dot_dimension_numbers<[1], [0], [0], [1], [0, 0, 1, 1], [], []>} : vector<8x8xf32>, vector<8x8xf32>, vector<8x8xf32> -> vector<8x8xf32>
    %77 = vector.extract_strided_slice %47 {offsets = [0, 0], sizes = [8, 32], strides = [1, 1]} : vector<32x32xf32> to vector<8x32xf32>
    %cst_37 = arith.constant dense<0.000000e+00> : vector<8x32xf32>
    %78 = tpu.matmul %76, %77, %cst_37 {dimension_numbers = #tpu.dot_dimension_numbers<[1], [0], [0], [1], [0, 0, 1, 1], [], []>} : vector<8x8xf32>, vector<8x32xf32>, vector<8x32xf32> -> vector<8x32xf32>
    %79 = arith.addf %55, %78 : vector<8x32xf32>
    %80 = vector.extract_strided_slice %52 {offsets = [0, 8], sizes = [8, 8], strides = [1, 1]} : vector<8x32xf32> to vector<8x8xf32>
    %81 = vector.extract_strided_slice %53 {offsets = [0, 8], sizes = [8, 8], strides = [1, 1]} : vector<8x32xf32> to vector<8x8xf32>
    %82 = vector.extract_strided_slice %54 {offsets = [0, 8], sizes = [8, 8], strides = [1, 1]} : vector<8x32xf32> to vector<8x8xf32>
    %cst_38 = arith.constant dense<0.000000e+00> : vector<8x8xf32>
    %83 = tpu.matmul %80, %81, %cst_38 {dimension_numbers = #tpu.dot_dimension_numbers<[1], [1], [0], [0], [0, 0, 1, 0], [], []>} : vector<8x8xf32>, vector<8x8xf32>, vector<8x8xf32> -> vector<8x8xf32>
    %cst_39 = arith.constant 0.353553385 : f32
    %84 = vector.broadcast %cst_39 : f32 to vector<8x8xf32>
    %85 = arith.mulf %83, %84 : vector<8x8xf32>
    %cst_40 = arith.constant -1.000000e+09 : f32
    %86 = vector.shape_cast %7 : vector<1x8xi1> to vector<1x8xi1>
    %87 = vector.broadcast %86 : vector<1x8xi1> to vector<8x8xi1>
    %88 = vector.broadcast %cst_40 : f32 to vector<8x8xf32>
    %89 = arith.select %87, %85, %88 : vector<8x8xi1>, vector<8x8xf32>
    %cst_41 = arith.constant dense<0xFF800000> : vector<8xf32>
    %90 = vector.multi_reduction <maximumf>, %89, %cst_41 [1] : vector<8x8xf32> to vector<8xf32>
    %91 = vector.shape_cast %90 : vector<8xf32> to vector<8x1xf32>
    %92 = vector.broadcast %91 : vector<8x1xf32> to vector<8x8xf32>
    %93 = arith.subf %89, %92 : vector<8x8xf32>
    %94 = math.exp %93 : vector<8x8xf32>
    %cst_42 = arith.constant dense<0.000000e+00> : vector<8xf32>
    %95 = vector.multi_reduction <add>, %94, %cst_42 [1] : vector<8x8xf32> to vector<8xf32>
    %96 = vector.shape_cast %95 : vector<8xf32> to vector<8x1xf32>
    %97 = tpu.reciprocal %96 {approx = true} : vector<8x1xf32> -> vector<8x1xf32>
    %98 = vector.broadcast %97 : vector<8x1xf32> to vector<8x8xf32>
    %99 = arith.mulf %94, %98 : vector<8x8xf32>
    %cst_43 = arith.constant dense<0.000000e+00> : vector<8x8xf32>
    %100 = tpu.matmul %99, %82, %cst_43 {dimension_numbers = #tpu.dot_dimension_numbers<[1], [0], [0], [1], [0, 0, 1, 1], [], []>} : vector<8x8xf32>, vector<8x8xf32>, vector<8x8xf32> -> vector<8x8xf32>
    %101 = vector.extract_strided_slice %47 {offsets = [8, 0], sizes = [8, 32], strides = [1, 1]} : vector<32x32xf32> to vector<8x32xf32>
    %cst_44 = arith.constant dense<0.000000e+00> : vector<8x32xf32>
    %102 = tpu.matmul %100, %101, %cst_44 {dimension_numbers = #tpu.dot_dimension_numbers<[1], [0], [0], [1], [0, 0, 1, 1], [], []>} : vector<8x8xf32>, vector<8x32xf32>, vector<8x32xf32> -> vector<8x32xf32>
    %103 = arith.addf %79, %102 : vector<8x32xf32>
    %104 = vector.extract_strided_slice %52 {offsets = [0, 16], sizes = [8, 8], strides = [1, 1]} : vector<8x32xf32> to vector<8x8xf32>
    %105 = vector.extract_strided_slice %53 {offsets = [0, 16], sizes = [8, 8], strides = [1, 1]} : vector<8x32xf32> to vector<8x8xf32>
    %106 = vector.extract_strided_slice %54 {offsets = [0, 16], sizes = [8, 8], strides = [1, 1]} : vector<8x32xf32> to vector<8x8xf32>
    %cst_45 = arith.constant dense<0.000000e+00> : vector<8x8xf32>
    %107 = tpu.matmul %104, %105, %cst_45 {dimension_numbers = #tpu.dot_dimension_numbers<[1], [1], [0], [0], [0, 0, 1, 0], [], []>} : vector<8x8xf32>, vector<8x8xf32>, vector<8x8xf32> -> vector<8x8xf32>
    %cst_46 = arith.constant 0.353553385 : f32
    %108 = vector.broadcast %cst_46 : f32 to vector<8x8xf32>
    %109 = arith.mulf %107, %108 : vector<8x8xf32>
    %cst_47 = arith.constant -1.000000e+09 : f32
    %110 = vector.shape_cast %7 : vector<1x8xi1> to vector<1x8xi1>
    %111 = vector.broadcast %110 : vector<1x8xi1> to vector<8x8xi1>
    %112 = vector.broadcast %cst_47 : f32 to vector<8x8xf32>
    %113 = arith.select %111, %109, %112 : vector<8x8xi1>, vector<8x8xf32>
    %cst_48 = arith.constant dense<0xFF800000> : vector<8xf32>
    %114 = vector.multi_reduction <maximumf>, %113, %cst_48 [1] : vector<8x8xf32> to vector<8xf32>
    %115 = vector.shape_cast %114 : vector<8xf32> to vector<8x1xf32>
    %116 = vector.broadcast %115 : vector<8x1xf32> to vector<8x8xf32>
    %117 = arith.subf %113, %116 : vector<8x8xf32>
    %118 = math.exp %117 : vector<8x8xf32>
    %cst_49 = arith.constant dense<0.000000e+00> : vector<8xf32>
    %119 = vector.multi_reduction <add>, %118, %cst_49 [1] : vector<8x8xf32> to vector<8xf32>
    %120 = vector.shape_cast %119 : vector<8xf32> to vector<8x1xf32>
    %121 = tpu.reciprocal %120 {approx = true} : vector<8x1xf32> -> vector<8x1xf32>
    %122 = vector.broadcast %121 : vector<8x1xf32> to vector<8x8xf32>
    %123 = arith.mulf %118, %122 : vector<8x8xf32>
    %cst_50 = arith.constant dense<0.000000e+00> : vector<8x8xf32>
    %124 = tpu.matmul %123, %106, %cst_50 {dimension_numbers = #tpu.dot_dimension_numbers<[1], [0], [0], [1], [0, 0, 1, 1], [], []>} : vector<8x8xf32>, vector<8x8xf32>, vector<8x8xf32> -> vector<8x8xf32>
    %125 = vector.extract_strided_slice %47 {offsets = [16, 0], sizes = [8, 32], strides = [1, 1]} : vector<32x32xf32> to vector<8x32xf32>
    %cst_51 = arith.constant dense<0.000000e+00> : vector<8x32xf32>
    %126 = tpu.matmul %124, %125, %cst_51 {dimension_numbers = #tpu.dot_dimension_numbers<[1], [0], [0], [1], [0, 0, 1, 1], [], []>} : vector<8x8xf32>, vector<8x32xf32>, vector<8x32xf32> -> vector<8x32xf32>
    %127 = arith.addf %103, %126 : vector<8x32xf32>
    %128 = vector.extract_strided_slice %52 {offsets = [0, 24], sizes = [8, 8], strides = [1, 1]} : vector<8x32xf32> to vector<8x8xf32>
    %129 = vector.extract_strided_slice %53 {offsets = [0, 24], sizes = [8, 8], strides = [1, 1]} : vector<8x32xf32> to vector<8x8xf32>
    %130 = vector.extract_strided_slice %54 {offsets = [0, 24], sizes = [8, 8], strides = [1, 1]} : vector<8x32xf32> to vector<8x8xf32>
    %cst_52 = arith.constant dense<0.000000e+00> : vector<8x8xf32>
    %131 = tpu.matmul %128, %129, %cst_52 {dimension_numbers = #tpu.dot_dimension_numbers<[1], [1], [0], [0], [0, 0, 1, 0], [], []>} : vector<8x8xf32>, vector<8x8xf32>, vector<8x8xf32> -> vector<8x8xf32>
    %cst_53 = arith.constant 0.353553385 : f32
    %132 = vector.broadcast %cst_53 : f32 to vector<8x8xf32>
    %133 = arith.mulf %131, %132 : vector<8x8xf32>
    %cst_54 = arith.constant -1.000000e+09 : f32
    %134 = vector.shape_cast %7 : vector<1x8xi1> to vector<1x8xi1>
    %135 = vector.broadcast %134 : vector<1x8xi1> to vector<8x8xi1>
    %136 = vector.broadcast %cst_54 : f32 to vector<8x8xf32>
    %137 = arith.select %135, %133, %136 : vector<8x8xi1>, vector<8x8xf32>
    %cst_55 = arith.constant dense<0xFF800000> : vector<8xf32>
    %138 = vector.multi_reduction <maximumf>, %137, %cst_55 [1] : vector<8x8xf32> to vector<8xf32>
    %139 = vector.shape_cast %138 : vector<8xf32> to vector<8x1xf32>
    %140 = vector.broadcast %139 : vector<8x1xf32> to vector<8x8xf32>
    %141 = arith.subf %137, %140 : vector<8x8xf32>
    %142 = math.exp %141 : vector<8x8xf32>
    %cst_56 = arith.constant dense<0.000000e+00> : vector<8xf32>
    %143 = vector.multi_reduction <add>, %142, %cst_56 [1] : vector<8x8xf32> to vector<8xf32>
    %144 = vector.shape_cast %143 : vector<8xf32> to vector<8x1xf32>
    %145 = tpu.reciprocal %144 {approx = true} : vector<8x1xf32> -> vector<8x1xf32>
    %146 = vector.broadcast %145 : vector<8x1xf32> to vector<8x8xf32>
    %147 = arith.mulf %142, %146 : vector<8x8xf32>
    %cst_57 = arith.constant dense<0.000000e+00> : vector<8x8xf32>
    %148 = tpu.matmul %147, %130, %cst_57 {dimension_numbers = #tpu.dot_dimension_numbers<[1], [0], [0], [1], [0, 0, 1, 1], [], []>} : vector<8x8xf32>, vector<8x8xf32>, vector<8x8xf32> -> vector<8x8xf32>
    %149 = vector.extract_strided_slice %47 {offsets = [24, 0], sizes = [8, 32], strides = [1, 1]} : vector<32x32xf32> to vector<8x32xf32>
    %cst_58 = arith.constant dense<0.000000e+00> : vector<8x32xf32>
    %150 = tpu.matmul %148, %149, %cst_58 {dimension_numbers = #tpu.dot_dimension_numbers<[1], [0], [0], [1], [0, 0, 1, 1], [], []>} : vector<8x8xf32>, vector<8x32xf32>, vector<8x32xf32> -> vector<8x32xf32>
    %151 = arith.addf %127, %150 : vector<8x32xf32>
    %152 = vector.broadcast %48 : vector<1x32xf32> to vector<8x32xf32>
    %153 = arith.addf %151, %152 : vector<8x32xf32>
    %154 = arith.addf %1, %153 : vector<8x32xf32>
    %155 = vector.extract_strided_slice %18 {offsets = [2, 0], sizes = [1, 32], strides = [1, 1]} : vector<4x32xf32> to vector<1x32xf32>
    %156 = vector.extract_strided_slice %18 {offsets = [3, 0], sizes = [1, 32], strides = [1, 1]} : vector<4x32xf32> to vector<1x32xf32>
    %cst_59 = arith.constant dense<0.000000e+00> : vector<8xf32>
    %157 = vector.multi_reduction <add>, %154, %cst_59 [1] : vector<8x32xf32> to vector<8xf32>
    %158 = vector.shape_cast %157 : vector<8xf32> to vector<8x1xf32>
    %cst_60 = arith.constant 3.200000e+01 : f32
    %159 = vector.broadcast %cst_60 : f32 to vector<8x1xf32>
    %160 = arith.divf %158, %159 : vector<8x1xf32>
    %161 = vector.broadcast %160 : vector<8x1xf32> to vector<8x32xf32>
    %162 = arith.subf %154, %161 : vector<8x32xf32>
    %163 = arith.mulf %162, %162 : vector<8x32xf32>
    %cst_61 = arith.constant dense<0.000000e+00> : vector<8xf32>
    %164 = vector.multi_reduction <add>, %163, %cst_61 [1] : vector<8x32xf32> to vector<8xf32>
    %165 = vector.shape_cast %164 : vector<8xf32> to vector<8x1xf32>
    %cst_62 = arith.constant 0.0322580636 : f32
    %166 = vector.broadcast %cst_62 : f32 to vector<8x1xf32>
    %167 = arith.mulf %165, %166 : vector<8x1xf32>
    %168 = vector.broadcast %155 : vector<1x32xf32> to vector<8x32xf32>
    %169 = arith.mulf %168, %162 : vector<8x32xf32>
    %170 = math.sqrt %167 : vector<8x1xf32>
    %cst_63 = arith.constant 9.99999997E-7 : f32
    %171 = vector.broadcast %cst_63 : f32 to vector<8x1xf32>
    %172 = arith.addf %170, %171 : vector<8x1xf32>
    %173 = vector.broadcast %172 : vector<8x1xf32> to vector<8x32xf32>
    %174 = arith.divf %169, %173 : vector<8x32xf32>
    %175 = vector.broadcast %156 : vector<1x32xf32> to vector<8x32xf32>
    %176 = arith.addf %174, %175 : vector<8x32xf32>
    %c0_64 = arith.constant 0 : index
    %c0_65 = arith.constant 0 : index
    %c0_66 = arith.constant 0 : index
    %177 = vector.load %arg7[%c0_64, %c0_65, %c0_66] : memref<2x32x64xf32, #tpu.memory_space<vmem>>, vector<1x32x64xf32>
    %178 = vector.shape_cast %177 : vector<1x32x64xf32> to vector<32x64xf32>
    %179 = vector.extract_strided_slice %20 {offsets = [2, 0], sizes = [1, 64], strides = [1, 1]} : vector<4x96xf32> to vector<1x64xf32>
    %c0_67 = arith.constant 0 : index
    %c0_68 = arith.constant 0 : index
    %c0_69 = arith.constant 0 : index
    %180 = vector.load %arg8[%c0_67, %c0_68, %c0_69] : memref<2x64x32xf32, #tpu.memory_space<vmem>>, vector<1x64x32xf32>
    %181 = vector.shape_cast %180 : vector<1x64x32xf32> to vector<64x32xf32>
    %182 = vector.extract_strided_slice %20 {offsets = [3, 0], sizes = [1, 32], strides = [1, 1]} : vector<4x96xf32> to vector<1x32xf32>
    %cst_70 = arith.constant dense<0.000000e+00> : vector<8x64xf32>
    %183 = tpu.matmul %176, %178, %cst_70 {dimension_numbers = #tpu.dot_dimension_numbers<[1], [0], [0], [1], [0, 0, 1, 1], [], []>} : vector<8x32xf32>, vector<32x64xf32>, vector<8x64xf32> -> vector<8x64xf32>
    %184 = vector.broadcast %179 : vector<1x64xf32> to vector<8x64xf32>
    %185 = arith.addf %183, %184 : vector<8x64xf32>
    %cst_71 = arith.constant 0.000000e+00 : f32
    %186 = vector.broadcast %cst_71 : f32 to vector<8x64xf32>
    %187 = arith.maximumf %185, %186 : vector<8x64xf32>
    %cst_72 = arith.constant dense<0.000000e+00> : vector<8x32xf32>
    %188 = tpu.matmul %187, %181, %cst_72 {dimension_numbers = #tpu.dot_dimension_numbers<[1], [0], [0], [1], [0, 0, 1, 1], [], []>} : vector<8x64xf32>, vector<64x32xf32>, vector<8x32xf32> -> vector<8x32xf32>
    %189 = vector.broadcast %182 : vector<1x32xf32> to vector<8x32xf32>
    %190 = arith.addf %188, %189 : vector<8x32xf32>
    %191 = arith.addf %154, %190 : vector<8x32xf32>
    %c0_73 = arith.constant 0 : index
    %c0_74 = arith.constant 0 : index
    %c0_75 = arith.constant 0 : index
    %192 = vector.load %arg19[%c0_73, %c0_74, %c0_75] : memref<3x2x32xf32, #tpu.memory_space<vmem>>, vector<1x2x32xf32>
    %193 = vector.shape_cast %192 : vector<1x2x32xf32> to vector<2x32xf32>
    %194 = vector.extract_strided_slice %193 {offsets = [0, 0], sizes = [1, 32], strides = [1, 1]} : vector<2x32xf32> to vector<1x32xf32>
    %195 = vector.extract_strided_slice %193 {offsets = [1, 0], sizes = [1, 32], strides = [1, 1]} : vector<2x32xf32> to vector<1x32xf32>
    %cst_76 = arith.constant dense<0.000000e+00> : vector<8xf32>
    %196 = vector.multi_reduction <add>, %191, %cst_76 [1] : vector<8x32xf32> to vector<8xf32>
    %197 = vector.shape_cast %196 : vector<8xf32> to vector<8x1xf32>
    %cst_77 = arith.constant 3.200000e+01 : f32
    %198 = vector.broadcast %cst_77 : f32 to vector<8x1xf32>
    %199 = arith.divf %197, %198 : vector<8x1xf32>
    %200 = vector.broadcast %199 : vector<8x1xf32> to vector<8x32xf32>
    %201 = arith.subf %191, %200 : vector<8x32xf32>
    %202 = arith.mulf %201, %201 : vector<8x32xf32>
    %cst_78 = arith.constant dense<0.000000e+00> : vector<8xf32>
    %203 = vector.multi_reduction <add>, %202, %cst_78 [1] : vector<8x32xf32> to vector<8xf32>
    %204 = vector.shape_cast %203 : vector<8xf32> to vector<8x1xf32>
    %cst_79 = arith.constant 0.0322580636 : f32
    %205 = vector.broadcast %cst_79 : f32 to vector<8x1xf32>
    %206 = arith.mulf %204, %205 : vector<8x1xf32>
    %207 = vector.broadcast %194 : vector<1x32xf32> to vector<8x32xf32>
    %208 = arith.mulf %207, %201 : vector<8x32xf32>
    %209 = math.sqrt %206 : vector<8x1xf32>
    %cst_80 = arith.constant 9.99999997E-7 : f32
    %210 = vector.broadcast %cst_80 : f32 to vector<8x1xf32>
    %211 = arith.addf %209, %210 : vector<8x1xf32>
    %212 = vector.broadcast %211 : vector<8x1xf32> to vector<8x32xf32>
    %213 = arith.divf %208, %212 : vector<8x32xf32>
    %214 = vector.broadcast %195 : vector<1x32xf32> to vector<8x32xf32>
    %215 = arith.addf %213, %214 : vector<8x32xf32>
    %c0_81 = arith.constant 0 : index
    %c0_82 = arith.constant 0 : index
    %c0_83 = arith.constant 0 : index
    %216 = vector.load %arg17[%c0_81, %c0_82, %c0_83] : memref<2x6x32xf32, #tpu.memory_space<vmem>>, vector<1x6x32xf32>
    %217 = vector.shape_cast %216 : vector<1x6x32xf32> to vector<6x32xf32>
    %c0_84 = arith.constant 0 : index
    %c0_85 = arith.constant 0 : index
    %c0_86 = arith.constant 0 : index
    %218 = vector.load %arg18[%c0_84, %c0_85, %c0_86] : memref<2x6x96xf32, #tpu.memory_space<vmem>>, vector<1x6x96xf32>
    %219 = vector.shape_cast %218 : vector<1x6x96xf32> to vector<6x96xf32>
    %220 = vector.extract_strided_slice %217 {offsets = [0, 0], sizes = [1, 32], strides = [1, 1]} : vector<6x32xf32> to vector<1x32xf32>
    %221 = vector.extract_strided_slice %217 {offsets = [1, 0], sizes = [1, 32], strides = [1, 1]} : vector<6x32xf32> to vector<1x32xf32>
    %cst_87 = arith.constant dense<0.000000e+00> : vector<8xf32>
    %222 = vector.multi_reduction <add>, %3, %cst_87 [1] : vector<8x32xf32> to vector<8xf32>
    %223 = vector.shape_cast %222 : vector<8xf32> to vector<8x1xf32>
    %cst_88 = arith.constant 3.200000e+01 : f32
    %224 = vector.broadcast %cst_88 : f32 to vector<8x1xf32>
    %225 = arith.divf %223, %224 : vector<8x1xf32>
    %226 = vector.broadcast %225 : vector<8x1xf32> to vector<8x32xf32>
    %227 = arith.subf %3, %226 : vector<8x32xf32>
    %228 = arith.mulf %227, %227 : vector<8x32xf32>
    %cst_89 = arith.constant dense<0.000000e+00> : vector<8xf32>
    %229 = vector.multi_reduction <add>, %228, %cst_89 [1] : vector<8x32xf32> to vector<8xf32>
    %230 = vector.shape_cast %229 : vector<8xf32> to vector<8x1xf32>
    %cst_90 = arith.constant 0.0322580636 : f32
    %231 = vector.broadcast %cst_90 : f32 to vector<8x1xf32>
    %232 = arith.mulf %230, %231 : vector<8x1xf32>
    %233 = vector.broadcast %220 : vector<1x32xf32> to vector<8x32xf32>
    %234 = arith.mulf %233, %227 : vector<8x32xf32>
    %235 = math.sqrt %232 : vector<8x1xf32>
    %cst_91 = arith.constant 9.99999997E-7 : f32
    %236 = vector.broadcast %cst_91 : f32 to vector<8x1xf32>
    %237 = arith.addf %235, %236 : vector<8x1xf32>
    %238 = vector.broadcast %237 : vector<8x1xf32> to vector<8x32xf32>
    %239 = arith.divf %234, %238 : vector<8x32xf32>
    %240 = vector.broadcast %221 : vector<1x32xf32> to vector<8x32xf32>
    %241 = arith.addf %239, %240 : vector<8x32xf32>
    %c0_92 = arith.constant 0 : index
    %c0_93 = arith.constant 0 : index
    %c0_94 = arith.constant 0 : index
    %242 = vector.load %arg11[%c0_92, %c0_93, %c0_94] : memref<2x32x96xf32, #tpu.memory_space<vmem>>, vector<1x32x96xf32>
    %243 = vector.shape_cast %242 : vector<1x32x96xf32> to vector<32x96xf32>
    %244 = vector.extract_strided_slice %219 {offsets = [0, 0], sizes = [1, 96], strides = [1, 1]} : vector<6x96xf32> to vector<1x96xf32>
    %c0_95 = arith.constant 0 : index
    %c0_96 = arith.constant 0 : index
    %c0_97 = arith.constant 0 : index
    %245 = vector.load %arg13[%c0_95, %c0_96, %c0_97] : memref<2x32x32xf32, #tpu.memory_space<vmem>>, vector<1x32x32xf32>
    %246 = vector.shape_cast %245 : vector<1x32x32xf32> to vector<32x32xf32>
    %247 = vector.extract_strided_slice %219 {offsets = [2, 0], sizes = [1, 32], strides = [1, 1]} : vector<6x96xf32> to vector<1x32xf32>
    %cst_98 = arith.constant dense<0.000000e+00> : vector<8x96xf32>
    %248 = tpu.matmul %241, %243, %cst_98 {dimension_numbers = #tpu.dot_dimension_numbers<[1], [0], [0], [1], [0, 0, 1, 1], [], []>} : vector<8x32xf32>, vector<32x96xf32>, vector<8x96xf32> -> vector<8x96xf32>
    %249 = vector.broadcast %244 : vector<1x96xf32> to vector<8x96xf32>
    %250 = arith.addf %248, %249 : vector<8x96xf32>
    %251 = vector.extract_strided_slice %250 {offsets = [0, 0], sizes = [8, 32], strides = [1, 1]} : vector<8x96xf32> to vector<8x32xf32>
    %252 = vector.extract_strided_slice %250 {offsets = [0, 32], sizes = [8, 32], strides = [1, 1]} : vector<8x96xf32> to vector<8x32xf32>
    %253 = vector.extract_strided_slice %250 {offsets = [0, 64], sizes = [8, 32], strides = [1, 1]} : vector<8x96xf32> to vector<8x32xf32>
    %cst_99 = arith.constant 0.000000e+00 : f32
    %254 = vector.broadcast %cst_99 : f32 to vector<8x32xf32>
    %255 = vector.extract_strided_slice %251 {offsets = [0, 0], sizes = [8, 8], strides = [1, 1]} : vector<8x32xf32> to vector<8x8xf32>
    %256 = vector.extract_strided_slice %252 {offsets = [0, 0], sizes = [8, 8], strides = [1, 1]} : vector<8x32xf32> to vector<8x8xf32>
    %257 = vector.extract_strided_slice %253 {offsets = [0, 0], sizes = [8, 8], strides = [1, 1]} : vector<8x32xf32> to vector<8x8xf32>
    %cst_100 = arith.constant dense<0.000000e+00> : vector<8x8xf32>
    %258 = tpu.matmul %255, %256, %cst_100 {dimension_numbers = #tpu.dot_dimension_numbers<[1], [1], [0], [0], [0, 0, 1, 0], [], []>} : vector<8x8xf32>, vector<8x8xf32>, vector<8x8xf32> -> vector<8x8xf32>
    %cst_101 = arith.constant 0.353553385 : f32
    %259 = vector.broadcast %cst_101 : f32 to vector<8x8xf32>
    %260 = arith.mulf %258, %259 : vector<8x8xf32>
    %cst_102 = arith.constant -1.000000e+09 : f32
    %261 = vector.broadcast %cst_102 : f32 to vector<8x8xf32>
    %262 = arith.select %16, %260, %261 : vector<8x8xi1>, vector<8x8xf32>
    %cst_103 = arith.constant dense<0xFF800000> : vector<8xf32>
    %263 = vector.multi_reduction <maximumf>, %262, %cst_103 [1] : vector<8x8xf32> to vector<8xf32>
    %264 = vector.shape_cast %263 : vector<8xf32> to vector<8x1xf32>
    %265 = vector.broadcast %264 : vector<8x1xf32> to vector<8x8xf32>
    %266 = arith.subf %262, %265 : vector<8x8xf32>
    %267 = math.exp %266 : vector<8x8xf32>
    %cst_104 = arith.constant dense<0.000000e+00> : vector<8xf32>
    %268 = vector.multi_reduction <add>, %267, %cst_104 [1] : vector<8x8xf32> to vector<8xf32>
    %269 = vector.shape_cast %268 : vector<8xf32> to vector<8x1xf32>
    %270 = tpu.reciprocal %269 {approx = true} : vector<8x1xf32> -> vector<8x1xf32>
    %271 = vector.broadcast %270 : vector<8x1xf32> to vector<8x8xf32>
    %272 = arith.mulf %267, %271 : vector<8x8xf32>
    %cst_105 = arith.constant dense<0.000000e+00> : vector<8x8xf32>
    %273 = tpu.matmul %272, %257, %cst_105 {dimension_numbers = #tpu.dot_dimension_numbers<[1], [0], [0], [1], [0, 0, 1, 1], [], []>} : vector<8x8xf32>, vector<8x8xf32>, vector<8x8xf32> -> vector<8x8xf32>
    %274 = vector.extract_strided_slice %246 {offsets = [0, 0], sizes = [8, 32], strides = [1, 1]} : vector<32x32xf32> to vector<8x32xf32>
    %cst_106 = arith.constant dense<0.000000e+00> : vector<8x32xf32>
    %275 = tpu.matmul %273, %274, %cst_106 {dimension_numbers = #tpu.dot_dimension_numbers<[1], [0], [0], [1], [0, 0, 1, 1], [], []>} : vector<8x8xf32>, vector<8x32xf32>, vector<8x32xf32> -> vector<8x32xf32>
    %276 = arith.addf %254, %275 : vector<8x32xf32>
    %277 = vector.extract_strided_slice %251 {offsets = [0, 8], sizes = [8, 8], strides = [1, 1]} : vector<8x32xf32> to vector<8x8xf32>
    %278 = vector.extract_strided_slice %252 {offsets = [0, 8], sizes = [8, 8], strides = [1, 1]} : vector<8x32xf32> to vector<8x8xf32>
    %279 = vector.extract_strided_slice %253 {offsets = [0, 8], sizes = [8, 8], strides = [1, 1]} : vector<8x32xf32> to vector<8x8xf32>
    %cst_107 = arith.constant dense<0.000000e+00> : vector<8x8xf32>
    %280 = tpu.matmul %277, %278, %cst_107 {dimension_numbers = #tpu.dot_dimension_numbers<[1], [1], [0], [0], [0, 0, 1, 0], [], []>} : vector<8x8xf32>, vector<8x8xf32>, vector<8x8xf32> -> vector<8x8xf32>
    %cst_108 = arith.constant 0.353553385 : f32
    %281 = vector.broadcast %cst_108 : f32 to vector<8x8xf32>
    %282 = arith.mulf %280, %281 : vector<8x8xf32>
    %cst_109 = arith.constant -1.000000e+09 : f32
    %283 = vector.broadcast %cst_109 : f32 to vector<8x8xf32>
    %284 = arith.select %16, %282, %283 : vector<8x8xi1>, vector<8x8xf32>
    %cst_110 = arith.constant dense<0xFF800000> : vector<8xf32>
    %285 = vector.multi_reduction <maximumf>, %284, %cst_110 [1] : vector<8x8xf32> to vector<8xf32>
    %286 = vector.shape_cast %285 : vector<8xf32> to vector<8x1xf32>
    %287 = vector.broadcast %286 : vector<8x1xf32> to vector<8x8xf32>
    %288 = arith.subf %284, %287 : vector<8x8xf32>
    %289 = math.exp %288 : vector<8x8xf32>
    %cst_111 = arith.constant dense<0.000000e+00> : vector<8xf32>
    %290 = vector.multi_reduction <add>, %289, %cst_111 [1] : vector<8x8xf32> to vector<8xf32>
    %291 = vector.shape_cast %290 : vector<8xf32> to vector<8x1xf32>
    %292 = tpu.reciprocal %291 {approx = true} : vector<8x1xf32> -> vector<8x1xf32>
    %293 = vector.broadcast %292 : vector<8x1xf32> to vector<8x8xf32>
    %294 = arith.mulf %289, %293 : vector<8x8xf32>
    %cst_112 = arith.constant dense<0.000000e+00> : vector<8x8xf32>
    %295 = tpu.matmul %294, %279, %cst_112 {dimension_numbers = #tpu.dot_dimension_numbers<[1], [0], [0], [1], [0, 0, 1, 1], [], []>} : vector<8x8xf32>, vector<8x8xf32>, vector<8x8xf32> -> vector<8x8xf32>
    %296 = vector.extract_strided_slice %246 {offsets = [8, 0], sizes = [8, 32], strides = [1, 1]} : vector<32x32xf32> to vector<8x32xf32>
    %cst_113 = arith.constant dense<0.000000e+00> : vector<8x32xf32>
    %297 = tpu.matmul %295, %296, %cst_113 {dimension_numbers = #tpu.dot_dimension_numbers<[1], [0], [0], [1], [0, 0, 1, 1], [], []>} : vector<8x8xf32>, vector<8x32xf32>, vector<8x32xf32> -> vector<8x32xf32>
    %298 = arith.addf %276, %297 : vector<8x32xf32>
    %299 = vector.extract_strided_slice %251 {offsets = [0, 16], sizes = [8, 8], strides = [1, 1]} : vector<8x32xf32> to vector<8x8xf32>
    %300 = vector.extract_strided_slice %252 {offsets = [0, 16], sizes = [8, 8], strides = [1, 1]} : vector<8x32xf32> to vector<8x8xf32>
    %301 = vector.extract_strided_slice %253 {offsets = [0, 16], sizes = [8, 8], strides = [1, 1]} : vector<8x32xf32> to vector<8x8xf32>
    %cst_114 = arith.constant dense<0.000000e+00> : vector<8x8xf32>
    %302 = tpu.matmul %299, %300, %cst_114 {dimension_numbers = #tpu.dot_dimension_numbers<[1], [1], [0], [0], [0, 0, 1, 0], [], []>} : vector<8x8xf32>, vector<8x8xf32>, vector<8x8xf32> -> vector<8x8xf32>
    %cst_115 = arith.constant 0.353553385 : f32
    %303 = vector.broadcast %cst_115 : f32 to vector<8x8xf32>
    %304 = arith.mulf %302, %303 : vector<8x8xf32>
    %cst_116 = arith.constant -1.000000e+09 : f32
    %305 = vector.broadcast %cst_116 : f32 to vector<8x8xf32>
    %306 = arith.select %16, %304, %305 : vector<8x8xi1>, vector<8x8xf32>
    %cst_117 = arith.constant dense<0xFF800000> : vector<8xf32>
    %307 = vector.multi_reduction <maximumf>, %306, %cst_117 [1] : vector<8x8xf32> to vector<8xf32>
    %308 = vector.shape_cast %307 : vector<8xf32> to vector<8x1xf32>
    %309 = vector.broadcast %308 : vector<8x1xf32> to vector<8x8xf32>
    %310 = arith.subf %306, %309 : vector<8x8xf32>
    %311 = math.exp %310 : vector<8x8xf32>
    %cst_118 = arith.constant dense<0.000000e+00> : vector<8xf32>
    %312 = vector.multi_reduction <add>, %311, %cst_118 [1] : vector<8x8xf32> to vector<8xf32>
    %313 = vector.shape_cast %312 : vector<8xf32> to vector<8x1xf32>
    %314 = tpu.reciprocal %313 {approx = true} : vector<8x1xf32> -> vector<8x1xf32>
    %315 = vector.broadcast %314 : vector<8x1xf32> to vector<8x8xf32>
    %316 = arith.mulf %311, %315 : vector<8x8xf32>
    %cst_119 = arith.constant dense<0.000000e+00> : vector<8x8xf32>
    %317 = tpu.matmul %316, %301, %cst_119 {dimension_numbers = #tpu.dot_dimension_numbers<[1], [0], [0], [1], [0, 0, 1, 1], [], []>} : vector<8x8xf32>, vector<8x8xf32>, vector<8x8xf32> -> vector<8x8xf32>
    %318 = vector.extract_strided_slice %246 {offsets = [16, 0], sizes = [8, 32], strides = [1, 1]} : vector<32x32xf32> to vector<8x32xf32>
    %cst_120 = arith.constant dense<0.000000e+00> : vector<8x32xf32>
    %319 = tpu.matmul %317, %318, %cst_120 {dimension_numbers = #tpu.dot_dimension_numbers<[1], [0], [0], [1], [0, 0, 1, 1], [], []>} : vector<8x8xf32>, vector<8x32xf32>, vector<8x32xf32> -> vector<8x32xf32>
    %320 = arith.addf %298, %319 : vector<8x32xf32>
    %321 = vector.extract_strided_slice %251 {offsets = [0, 24], sizes = [8, 8], strides = [1, 1]} : vector<8x32xf32> to vector<8x8xf32>
    %322 = vector.extract_strided_slice %252 {offsets = [0, 24], sizes = [8, 8], strides = [1, 1]} : vector<8x32xf32> to vector<8x8xf32>
    %323 = vector.extract_strided_slice %253 {offsets = [0, 24], sizes = [8, 8], strides = [1, 1]} : vector<8x32xf32> to vector<8x8xf32>
    %cst_121 = arith.constant dense<0.000000e+00> : vector<8x8xf32>
    %324 = tpu.matmul %321, %322, %cst_121 {dimension_numbers = #tpu.dot_dimension_numbers<[1], [1], [0], [0], [0, 0, 1, 0], [], []>} : vector<8x8xf32>, vector<8x8xf32>, vector<8x8xf32> -> vector<8x8xf32>
    %cst_122 = arith.constant 0.353553385 : f32
    %325 = vector.broadcast %cst_122 : f32 to vector<8x8xf32>
    %326 = arith.mulf %324, %325 : vector<8x8xf32>
    %cst_123 = arith.constant -1.000000e+09 : f32
    %327 = vector.broadcast %cst_123 : f32 to vector<8x8xf32>
    %328 = arith.select %16, %326, %327 : vector<8x8xi1>, vector<8x8xf32>
    %cst_124 = arith.constant dense<0xFF800000> : vector<8xf32>
    %329 = vector.multi_reduction <maximumf>, %328, %cst_124 [1] : vector<8x8xf32> to vector<8xf32>
    %330 = vector.shape_cast %329 : vector<8xf32> to vector<8x1xf32>
    %331 = vector.broadcast %330 : vector<8x1xf32> to vector<8x8xf32>
    %332 = arith.subf %328, %331 : vector<8x8xf32>
    %333 = math.exp %332 : vector<8x8xf32>
    %cst_125 = arith.constant dense<0.000000e+00> : vector<8xf32>
    %334 = vector.multi_reduction <add>, %333, %cst_125 [1] : vector<8x8xf32> to vector<8xf32>
    %335 = vector.shape_cast %334 : vector<8xf32> to vector<8x1xf32>
    %336 = tpu.reciprocal %335 {approx = true} : vector<8x1xf32> -> vector<8x1xf32>
    %337 = vector.broadcast %336 : vector<8x1xf32> to vector<8x8xf32>
    %338 = arith.mulf %333, %337 : vector<8x8xf32>
    %cst_126 = arith.constant dense<0.000000e+00> : vector<8x8xf32>
    %339 = tpu.matmul %338, %323, %cst_126 {dimension_numbers = #tpu.dot_dimension_numbers<[1], [0], [0], [1], [0, 0, 1, 1], [], []>} : vector<8x8xf32>, vector<8x8xf32>, vector<8x8xf32> -> vector<8x8xf32>
    %340 = vector.extract_strided_slice %246 {offsets = [24, 0], sizes = [8, 32], strides = [1, 1]} : vector<32x32xf32> to vector<8x32xf32>
    %cst_127 = arith.constant dense<0.000000e+00> : vector<8x32xf32>
    %341 = tpu.matmul %339, %340, %cst_127 {dimension_numbers = #tpu.dot_dimension_numbers<[1], [0], [0], [1], [0, 0, 1, 1], [], []>} : vector<8x8xf32>, vector<8x32xf32>, vector<8x32xf32> -> vector<8x32xf32>
    %342 = arith.addf %320, %341 : vector<8x32xf32>
    %343 = vector.broadcast %247 : vector<1x32xf32> to vector<8x32xf32>
    %344 = arith.addf %342, %343 : vector<8x32xf32>
    %345 = arith.addf %3, %344 : vector<8x32xf32>
    %346 = vector.extract_strided_slice %217 {offsets = [2, 0], sizes = [1, 32], strides = [1, 1]} : vector<6x32xf32> to vector<1x32xf32>
    %347 = vector.extract_strided_slice %217 {offsets = [3, 0], sizes = [1, 32], strides = [1, 1]} : vector<6x32xf32> to vector<1x32xf32>
    %cst_128 = arith.constant dense<0.000000e+00> : vector<8xf32>
    %348 = vector.multi_reduction <add>, %345, %cst_128 [1] : vector<8x32xf32> to vector<8xf32>
    %349 = vector.shape_cast %348 : vector<8xf32> to vector<8x1xf32>
    %cst_129 = arith.constant 3.200000e+01 : f32
    %350 = vector.broadcast %cst_129 : f32 to vector<8x1xf32>
    %351 = arith.divf %349, %350 : vector<8x1xf32>
    %352 = vector.broadcast %351 : vector<8x1xf32> to vector<8x32xf32>
    %353 = arith.subf %345, %352 : vector<8x32xf32>
    %354 = arith.mulf %353, %353 : vector<8x32xf32>
    %cst_130 = arith.constant dense<0.000000e+00> : vector<8xf32>
    %355 = vector.multi_reduction <add>, %354, %cst_130 [1] : vector<8x32xf32> to vector<8xf32>
    %356 = vector.shape_cast %355 : vector<8xf32> to vector<8x1xf32>
    %cst_131 = arith.constant 0.0322580636 : f32
    %357 = vector.broadcast %cst_131 : f32 to vector<8x1xf32>
    %358 = arith.mulf %356, %357 : vector<8x1xf32>
    %359 = vector.broadcast %346 : vector<1x32xf32> to vector<8x32xf32>
    %360 = arith.mulf %359, %353 : vector<8x32xf32>
    %361 = math.sqrt %358 : vector<8x1xf32>
    %cst_132 = arith.constant 9.99999997E-7 : f32
    %362 = vector.broadcast %cst_132 : f32 to vector<8x1xf32>
    %363 = arith.addf %361, %362 : vector<8x1xf32>
    %364 = vector.broadcast %363 : vector<8x1xf32> to vector<8x32xf32>
    %365 = arith.divf %360, %364 : vector<8x32xf32>
    %366 = vector.broadcast %347 : vector<1x32xf32> to vector<8x32xf32>
    %367 = arith.addf %365, %366 : vector<8x32xf32>
    %c0_133 = arith.constant 0 : index
    %c0_134 = arith.constant 0 : index
    %c0_135 = arith.constant 0 : index
    %368 = vector.load %arg12[%c0_133, %c0_134, %c0_135] : memref<2x32x96xf32, #tpu.memory_space<vmem>>, vector<1x32x96xf32>
    %369 = vector.shape_cast %368 : vector<1x32x96xf32> to vector<32x96xf32>
    %370 = vector.extract_strided_slice %219 {offsets = [1, 0], sizes = [1, 96], strides = [1, 1]} : vector<6x96xf32> to vector<1x96xf32>
    %c0_136 = arith.constant 0 : index
    %c0_137 = arith.constant 0 : index
    %c0_138 = arith.constant 0 : index
    %371 = vector.load %arg14[%c0_136, %c0_137, %c0_138] : memref<2x32x32xf32, #tpu.memory_space<vmem>>, vector<1x32x32xf32>
    %372 = vector.shape_cast %371 : vector<1x32x32xf32> to vector<32x32xf32>
    %373 = vector.extract_strided_slice %219 {offsets = [3, 0], sizes = [1, 32], strides = [1, 1]} : vector<6x96xf32> to vector<1x32xf32>
    %374 = vector.extract_strided_slice %369 {offsets = [0, 0], sizes = [32, 32], strides = [1, 1]} : vector<32x96xf32> to vector<32x32xf32>
    %cst_139 = arith.constant dense<0.000000e+00> : vector<8x32xf32>
    %375 = tpu.matmul %367, %374, %cst_139 {dimension_numbers = #tpu.dot_dimension_numbers<[1], [0], [0], [1], [0, 0, 1, 1], [], []>} : vector<8x32xf32>, vector<32x32xf32>, vector<8x32xf32> -> vector<8x32xf32>
    %376 = vector.extract_strided_slice %370 {offsets = [0, 0], sizes = [1, 32], strides = [1, 1]} : vector<1x96xf32> to vector<1x32xf32>
    %377 = vector.broadcast %376 : vector<1x32xf32> to vector<8x32xf32>
    %378 = arith.addf %375, %377 : vector<8x32xf32>
    %379 = vector.extract_strided_slice %369 {offsets = [0, 32], sizes = [32, 64], strides = [1, 1]} : vector<32x96xf32> to vector<32x64xf32>
    %cst_140 = arith.constant dense<0.000000e+00> : vector<8x64xf32>
    %380 = tpu.matmul %215, %379, %cst_140 {dimension_numbers = #tpu.dot_dimension_numbers<[1], [0], [0], [1], [0, 0, 1, 1], [], []>} : vector<8x32xf32>, vector<32x64xf32>, vector<8x64xf32> -> vector<8x64xf32>
    %381 = vector.extract_strided_slice %370 {offsets = [0, 32], sizes = [1, 64], strides = [1, 1]} : vector<1x96xf32> to vector<1x64xf32>
    %382 = vector.broadcast %381 : vector<1x64xf32> to vector<8x64xf32>
    %383 = arith.addf %380, %382 : vector<8x64xf32>
    %384 = vector.extract_strided_slice %383 {offsets = [0, 0], sizes = [8, 32], strides = [1, 1]} : vector<8x64xf32> to vector<8x32xf32>
    %385 = vector.extract_strided_slice %383 {offsets = [0, 32], sizes = [8, 32], strides = [1, 1]} : vector<8x64xf32> to vector<8x32xf32>
    %cst_141 = arith.constant 0.000000e+00 : f32
    %386 = vector.broadcast %cst_141 : f32 to vector<8x32xf32>
    %387 = vector.extract_strided_slice %378 {offsets = [0, 0], sizes = [8, 8], strides = [1, 1]} : vector<8x32xf32> to vector<8x8xf32>
    %388 = vector.extract_strided_slice %384 {offsets = [0, 0], sizes = [8, 8], strides = [1, 1]} : vector<8x32xf32> to vector<8x8xf32>
    %389 = vector.extract_strided_slice %385 {offsets = [0, 0], sizes = [8, 8], strides = [1, 1]} : vector<8x32xf32> to vector<8x8xf32>
    %cst_142 = arith.constant dense<0.000000e+00> : vector<8x8xf32>
    %390 = tpu.matmul %387, %388, %cst_142 {dimension_numbers = #tpu.dot_dimension_numbers<[1], [1], [0], [0], [0, 0, 1, 0], [], []>} : vector<8x8xf32>, vector<8x8xf32>, vector<8x8xf32> -> vector<8x8xf32>
    %cst_143 = arith.constant 0.353553385 : f32
    %391 = vector.broadcast %cst_143 : f32 to vector<8x8xf32>
    %392 = arith.mulf %390, %391 : vector<8x8xf32>
    %cst_144 = arith.constant -1.000000e+09 : f32
    %393 = vector.shape_cast %7 : vector<1x8xi1> to vector<1x8xi1>
    %394 = vector.broadcast %393 : vector<1x8xi1> to vector<8x8xi1>
    %395 = vector.broadcast %cst_144 : f32 to vector<8x8xf32>
    %396 = arith.select %394, %392, %395 : vector<8x8xi1>, vector<8x8xf32>
    %cst_145 = arith.constant dense<0xFF800000> : vector<8xf32>
    %397 = vector.multi_reduction <maximumf>, %396, %cst_145 [1] : vector<8x8xf32> to vector<8xf32>
    %398 = vector.shape_cast %397 : vector<8xf32> to vector<8x1xf32>
    %399 = vector.broadcast %398 : vector<8x1xf32> to vector<8x8xf32>
    %400 = arith.subf %396, %399 : vector<8x8xf32>
    %401 = math.exp %400 : vector<8x8xf32>
    %cst_146 = arith.constant dense<0.000000e+00> : vector<8xf32>
    %402 = vector.multi_reduction <add>, %401, %cst_146 [1] : vector<8x8xf32> to vector<8xf32>
    %403 = vector.shape_cast %402 : vector<8xf32> to vector<8x1xf32>
    %404 = tpu.reciprocal %403 {approx = true} : vector<8x1xf32> -> vector<8x1xf32>
    %405 = vector.broadcast %404 : vector<8x1xf32> to vector<8x8xf32>
    %406 = arith.mulf %401, %405 : vector<8x8xf32>
    %cst_147 = arith.constant dense<0.000000e+00> : vector<8x8xf32>
    %407 = tpu.matmul %406, %389, %cst_147 {dimension_numbers = #tpu.dot_dimension_numbers<[1], [0], [0], [1], [0, 0, 1, 1], [], []>} : vector<8x8xf32>, vector<8x8xf32>, vector<8x8xf32> -> vector<8x8xf32>
    %408 = vector.extract_strided_slice %372 {offsets = [0, 0], sizes = [8, 32], strides = [1, 1]} : vector<32x32xf32> to vector<8x32xf32>
    %cst_148 = arith.constant dense<0.000000e+00> : vector<8x32xf32>
    %409 = tpu.matmul %407, %408, %cst_148 {dimension_numbers = #tpu.dot_dimension_numbers<[1], [0], [0], [1], [0, 0, 1, 1], [], []>} : vector<8x8xf32>, vector<8x32xf32>, vector<8x32xf32> -> vector<8x32xf32>
    %410 = arith.addf %386, %409 : vector<8x32xf32>
    %411 = vector.extract_strided_slice %378 {offsets = [0, 8], sizes = [8, 8], strides = [1, 1]} : vector<8x32xf32> to vector<8x8xf32>
    %412 = vector.extract_strided_slice %384 {offsets = [0, 8], sizes = [8, 8], strides = [1, 1]} : vector<8x32xf32> to vector<8x8xf32>
    %413 = vector.extract_strided_slice %385 {offsets = [0, 8], sizes = [8, 8], strides = [1, 1]} : vector<8x32xf32> to vector<8x8xf32>
    %cst_149 = arith.constant dense<0.000000e+00> : vector<8x8xf32>
    %414 = tpu.matmul %411, %412, %cst_149 {dimension_numbers = #tpu.dot_dimension_numbers<[1], [1], [0], [0], [0, 0, 1, 0], [], []>} : vector<8x8xf32>, vector<8x8xf32>, vector<8x8xf32> -> vector<8x8xf32>
    %cst_150 = arith.constant 0.353553385 : f32
    %415 = vector.broadcast %cst_150 : f32 to vector<8x8xf32>
    %416 = arith.mulf %414, %415 : vector<8x8xf32>
    %cst_151 = arith.constant -1.000000e+09 : f32
    %417 = vector.shape_cast %7 : vector<1x8xi1> to vector<1x8xi1>
    %418 = vector.broadcast %417 : vector<1x8xi1> to vector<8x8xi1>
    %419 = vector.broadcast %cst_151 : f32 to vector<8x8xf32>
    %420 = arith.select %418, %416, %419 : vector<8x8xi1>, vector<8x8xf32>
    %cst_152 = arith.constant dense<0xFF800000> : vector<8xf32>
    %421 = vector.multi_reduction <maximumf>, %420, %cst_152 [1] : vector<8x8xf32> to vector<8xf32>
    %422 = vector.shape_cast %421 : vector<8xf32> to vector<8x1xf32>
    %423 = vector.broadcast %422 : vector<8x1xf32> to vector<8x8xf32>
    %424 = arith.subf %420, %423 : vector<8x8xf32>
    %425 = math.exp %424 : vector<8x8xf32>
    %cst_153 = arith.constant dense<0.000000e+00> : vector<8xf32>
    %426 = vector.multi_reduction <add>, %425, %cst_153 [1] : vector<8x8xf32> to vector<8xf32>
    %427 = vector.shape_cast %426 : vector<8xf32> to vector<8x1xf32>
    %428 = tpu.reciprocal %427 {approx = true} : vector<8x1xf32> -> vector<8x1xf32>
    %429 = vector.broadcast %428 : vector<8x1xf32> to vector<8x8xf32>
    %430 = arith.mulf %425, %429 : vector<8x8xf32>
    %cst_154 = arith.constant dense<0.000000e+00> : vector<8x8xf32>
    %431 = tpu.matmul %430, %413, %cst_154 {dimension_numbers = #tpu.dot_dimension_numbers<[1], [0], [0], [1], [0, 0, 1, 1], [], []>} : vector<8x8xf32>, vector<8x8xf32>, vector<8x8xf32> -> vector<8x8xf32>
    %432 = vector.extract_strided_slice %372 {offsets = [8, 0], sizes = [8, 32], strides = [1, 1]} : vector<32x32xf32> to vector<8x32xf32>
    %cst_155 = arith.constant dense<0.000000e+00> : vector<8x32xf32>
    %433 = tpu.matmul %431, %432, %cst_155 {dimension_numbers = #tpu.dot_dimension_numbers<[1], [0], [0], [1], [0, 0, 1, 1], [], []>} : vector<8x8xf32>, vector<8x32xf32>, vector<8x32xf32> -> vector<8x32xf32>
    %434 = arith.addf %410, %433 : vector<8x32xf32>
    %435 = vector.extract_strided_slice %378 {offsets = [0, 16], sizes = [8, 8], strides = [1, 1]} : vector<8x32xf32> to vector<8x8xf32>
    %436 = vector.extract_strided_slice %384 {offsets = [0, 16], sizes = [8, 8], strides = [1, 1]} : vector<8x32xf32> to vector<8x8xf32>
    %437 = vector.extract_strided_slice %385 {offsets = [0, 16], sizes = [8, 8], strides = [1, 1]} : vector<8x32xf32> to vector<8x8xf32>
    %cst_156 = arith.constant dense<0.000000e+00> : vector<8x8xf32>
    %438 = tpu.matmul %435, %436, %cst_156 {dimension_numbers = #tpu.dot_dimension_numbers<[1], [1], [0], [0], [0, 0, 1, 0], [], []>} : vector<8x8xf32>, vector<8x8xf32>, vector<8x8xf32> -> vector<8x8xf32>
    %cst_157 = arith.constant 0.353553385 : f32
    %439 = vector.broadcast %cst_157 : f32 to vector<8x8xf32>
    %440 = arith.mulf %438, %439 : vector<8x8xf32>
    %cst_158 = arith.constant -1.000000e+09 : f32
    %441 = vector.shape_cast %7 : vector<1x8xi1> to vector<1x8xi1>
    %442 = vector.broadcast %441 : vector<1x8xi1> to vector<8x8xi1>
    %443 = vector.broadcast %cst_158 : f32 to vector<8x8xf32>
    %444 = arith.select %442, %440, %443 : vector<8x8xi1>, vector<8x8xf32>
    %cst_159 = arith.constant dense<0xFF800000> : vector<8xf32>
    %445 = vector.multi_reduction <maximumf>, %444, %cst_159 [1] : vector<8x8xf32> to vector<8xf32>
    %446 = vector.shape_cast %445 : vector<8xf32> to vector<8x1xf32>
    %447 = vector.broadcast %446 : vector<8x1xf32> to vector<8x8xf32>
    %448 = arith.subf %444, %447 : vector<8x8xf32>
    %449 = math.exp %448 : vector<8x8xf32>
    %cst_160 = arith.constant dense<0.000000e+00> : vector<8xf32>
    %450 = vector.multi_reduction <add>, %449, %cst_160 [1] : vector<8x8xf32> to vector<8xf32>
    %451 = vector.shape_cast %450 : vector<8xf32> to vector<8x1xf32>
    %452 = tpu.reciprocal %451 {approx = true} : vector<8x1xf32> -> vector<8x1xf32>
    %453 = vector.broadcast %452 : vector<8x1xf32> to vector<8x8xf32>
    %454 = arith.mulf %449, %453 : vector<8x8xf32>
    %cst_161 = arith.constant dense<0.000000e+00> : vector<8x8xf32>
    %455 = tpu.matmul %454, %437, %cst_161 {dimension_numbers = #tpu.dot_dimension_numbers<[1], [0], [0], [1], [0, 0, 1, 1], [], []>} : vector<8x8xf32>, vector<8x8xf32>, vector<8x8xf32> -> vector<8x8xf32>
    %456 = vector.extract_strided_slice %372 {offsets = [16, 0], sizes = [8, 32], strides = [1, 1]} : vector<32x32xf32> to vector<8x32xf32>
    %cst_162 = arith.constant dense<0.000000e+00> : vector<8x32xf32>
    %457 = tpu.matmul %455, %456, %cst_162 {dimension_numbers = #tpu.dot_dimension_numbers<[1], [0], [0], [1], [0, 0, 1, 1], [], []>} : vector<8x8xf32>, vector<8x32xf32>, vector<8x32xf32> -> vector<8x32xf32>
    %458 = arith.addf %434, %457 : vector<8x32xf32>
    %459 = vector.extract_strided_slice %378 {offsets = [0, 24], sizes = [8, 8], strides = [1, 1]} : vector<8x32xf32> to vector<8x8xf32>
    %460 = vector.extract_strided_slice %384 {offsets = [0, 24], sizes = [8, 8], strides = [1, 1]} : vector<8x32xf32> to vector<8x8xf32>
    %461 = vector.extract_strided_slice %385 {offsets = [0, 24], sizes = [8, 8], strides = [1, 1]} : vector<8x32xf32> to vector<8x8xf32>
    %cst_163 = arith.constant dense<0.000000e+00> : vector<8x8xf32>
    %462 = tpu.matmul %459, %460, %cst_163 {dimension_numbers = #tpu.dot_dimension_numbers<[1], [1], [0], [0], [0, 0, 1, 0], [], []>} : vector<8x8xf32>, vector<8x8xf32>, vector<8x8xf32> -> vector<8x8xf32>
    %cst_164 = arith.constant 0.353553385 : f32
    %463 = vector.broadcast %cst_164 : f32 to vector<8x8xf32>
    %464 = arith.mulf %462, %463 : vector<8x8xf32>
    %cst_165 = arith.constant -1.000000e+09 : f32
    %465 = vector.shape_cast %7 : vector<1x8xi1> to vector<1x8xi1>
    %466 = vector.broadcast %465 : vector<1x8xi1> to vector<8x8xi1>
    %467 = vector.broadcast %cst_165 : f32 to vector<8x8xf32>
    %468 = arith.select %466, %464, %467 : vector<8x8xi1>, vector<8x8xf32>
    %cst_166 = arith.constant dense<0xFF800000> : vector<8xf32>
    %469 = vector.multi_reduction <maximumf>, %468, %cst_166 [1] : vector<8x8xf32> to vector<8xf32>
    %470 = vector.shape_cast %469 : vector<8xf32> to vector<8x1xf32>
    %471 = vector.broadcast %470 : vector<8x1xf32> to vector<8x8xf32>
    %472 = arith.subf %468, %471 : vector<8x8xf32>
    %473 = math.exp %472 : vector<8x8xf32>
    %cst_167 = arith.constant dense<0.000000e+00> : vector<8xf32>
    %474 = vector.multi_reduction <add>, %473, %cst_167 [1] : vector<8x8xf32> to vector<8xf32>
    %475 = vector.shape_cast %474 : vector<8xf32> to vector<8x1xf32>
    %476 = tpu.reciprocal %475 {approx = true} : vector<8x1xf32> -> vector<8x1xf32>
    %477 = vector.broadcast %476 : vector<8x1xf32> to vector<8x8xf32>
    %478 = arith.mulf %473, %477 : vector<8x8xf32>
    %cst_168 = arith.constant dense<0.000000e+00> : vector<8x8xf32>
    %479 = tpu.matmul %478, %461, %cst_168 {dimension_numbers = #tpu.dot_dimension_numbers<[1], [0], [0], [1], [0, 0, 1, 1], [], []>} : vector<8x8xf32>, vector<8x8xf32>, vector<8x8xf32> -> vector<8x8xf32>
    %480 = vector.extract_strided_slice %372 {offsets = [24, 0], sizes = [8, 32], strides = [1, 1]} : vector<32x32xf32> to vector<8x32xf32>
    %cst_169 = arith.constant dense<0.000000e+00> : vector<8x32xf32>
    %481 = tpu.matmul %479, %480, %cst_169 {dimension_numbers = #tpu.dot_dimension_numbers<[1], [0], [0], [1], [0, 0, 1, 1], [], []>} : vector<8x8xf32>, vector<8x32xf32>, vector<8x32xf32> -> vector<8x32xf32>
    %482 = arith.addf %458, %481 : vector<8x32xf32>
    %483 = vector.broadcast %373 : vector<1x32xf32> to vector<8x32xf32>
    %484 = arith.addf %482, %483 : vector<8x32xf32>
    %485 = arith.addf %345, %484 : vector<8x32xf32>
    %486 = vector.extract_strided_slice %217 {offsets = [4, 0], sizes = [1, 32], strides = [1, 1]} : vector<6x32xf32> to vector<1x32xf32>
    %487 = vector.extract_strided_slice %217 {offsets = [5, 0], sizes = [1, 32], strides = [1, 1]} : vector<6x32xf32> to vector<1x32xf32>
    %cst_170 = arith.constant dense<0.000000e+00> : vector<8xf32>
    %488 = vector.multi_reduction <add>, %485, %cst_170 [1] : vector<8x32xf32> to vector<8xf32>
    %489 = vector.shape_cast %488 : vector<8xf32> to vector<8x1xf32>
    %cst_171 = arith.constant 3.200000e+01 : f32
    %490 = vector.broadcast %cst_171 : f32 to vector<8x1xf32>
    %491 = arith.divf %489, %490 : vector<8x1xf32>
    %492 = vector.broadcast %491 : vector<8x1xf32> to vector<8x32xf32>
    %493 = arith.subf %485, %492 : vector<8x32xf32>
    %494 = arith.mulf %493, %493 : vector<8x32xf32>
    %cst_172 = arith.constant dense<0.000000e+00> : vector<8xf32>
    %495 = vector.multi_reduction <add>, %494, %cst_172 [1] : vector<8x32xf32> to vector<8xf32>
    %496 = vector.shape_cast %495 : vector<8xf32> to vector<8x1xf32>
    %cst_173 = arith.constant 0.0322580636 : f32
    %497 = vector.broadcast %cst_173 : f32 to vector<8x1xf32>
    %498 = arith.mulf %496, %497 : vector<8x1xf32>
    %499 = vector.broadcast %486 : vector<1x32xf32> to vector<8x32xf32>
    %500 = arith.mulf %499, %493 : vector<8x32xf32>
    %501 = math.sqrt %498 : vector<8x1xf32>
    %cst_174 = arith.constant 9.99999997E-7 : f32
    %502 = vector.broadcast %cst_174 : f32 to vector<8x1xf32>
    %503 = arith.addf %501, %502 : vector<8x1xf32>
    %504 = vector.broadcast %503 : vector<8x1xf32> to vector<8x32xf32>
    %505 = arith.divf %500, %504 : vector<8x32xf32>
    %506 = vector.broadcast %487 : vector<1x32xf32> to vector<8x32xf32>
    %507 = arith.addf %505, %506 : vector<8x32xf32>
    %c0_175 = arith.constant 0 : index
    %c0_176 = arith.constant 0 : index
    %c0_177 = arith.constant 0 : index
    %508 = vector.load %arg15[%c0_175, %c0_176, %c0_177] : memref<2x32x64xf32, #tpu.memory_space<vmem>>, vector<1x32x64xf32>
    %509 = vector.shape_cast %508 : vector<1x32x64xf32> to vector<32x64xf32>
    %510 = vector.extract_strided_slice %219 {offsets = [4, 0], sizes = [1, 64], strides = [1, 1]} : vector<6x96xf32> to vector<1x64xf32>
    %c0_178 = arith.constant 0 : index
    %c0_179 = arith.constant 0 : index
    %c0_180 = arith.constant 0 : index
    %511 = vector.load %arg16[%c0_178, %c0_179, %c0_180] : memref<2x64x32xf32, #tpu.memory_space<vmem>>, vector<1x64x32xf32>
    %512 = vector.shape_cast %511 : vector<1x64x32xf32> to vector<64x32xf32>
    %513 = vector.extract_strided_slice %219 {offsets = [5, 0], sizes = [1, 32], strides = [1, 1]} : vector<6x96xf32> to vector<1x32xf32>
    %cst_181 = arith.constant dense<0.000000e+00> : vector<8x64xf32>
    %514 = tpu.matmul %507, %509, %cst_181 {dimension_numbers = #tpu.dot_dimension_numbers<[1], [0], [0], [1], [0, 0, 1, 1], [], []>} : vector<8x32xf32>, vector<32x64xf32>, vector<8x64xf32> -> vector<8x64xf32>
    %515 = vector.broadcast %510 : vector<1x64xf32> to vector<8x64xf32>
    %516 = arith.addf %514, %515 : vector<8x64xf32>
    %cst_182 = arith.constant 0.000000e+00 : f32
    %517 = vector.broadcast %cst_182 : f32 to vector<8x64xf32>
    %518 = arith.maximumf %516, %517 : vector<8x64xf32>
    %cst_183 = arith.constant dense<0.000000e+00> : vector<8x32xf32>
    %519 = tpu.matmul %518, %512, %cst_183 {dimension_numbers = #tpu.dot_dimension_numbers<[1], [0], [0], [1], [0, 0, 1, 1], [], []>} : vector<8x64xf32>, vector<64x32xf32>, vector<8x32xf32> -> vector<8x32xf32>
    %520 = vector.broadcast %513 : vector<1x32xf32> to vector<8x32xf32>
    %521 = arith.addf %519, %520 : vector<8x32xf32>
    %522 = arith.addf %485, %521 : vector<8x32xf32>
    %c1 = arith.constant 1 : index
    %c0_184 = arith.constant 0 : index
    %c0_185 = arith.constant 0 : index
    %523 = vector.load %arg9[%c1, %c0_184, %c0_185] : memref<2x4x32xf32, #tpu.memory_space<vmem>>, vector<1x4x32xf32>
    %524 = vector.shape_cast %523 : vector<1x4x32xf32> to vector<4x32xf32>
    %c1_186 = arith.constant 1 : index
    %c0_187 = arith.constant 0 : index
    %c0_188 = arith.constant 0 : index
    %525 = vector.load %arg10[%c1_186, %c0_187, %c0_188] : memref<2x4x96xf32, #tpu.memory_space<vmem>>, vector<1x4x96xf32>
    %526 = vector.shape_cast %525 : vector<1x4x96xf32> to vector<4x96xf32>
    %527 = vector.extract_strided_slice %524 {offsets = [0, 0], sizes = [1, 32], strides = [1, 1]} : vector<4x32xf32> to vector<1x32xf32>
    %528 = vector.extract_strided_slice %524 {offsets = [1, 0], sizes = [1, 32], strides = [1, 1]} : vector<4x32xf32> to vector<1x32xf32>
    %cst_189 = arith.constant dense<0.000000e+00> : vector<8xf32>
    %529 = vector.multi_reduction <add>, %191, %cst_189 [1] : vector<8x32xf32> to vector<8xf32>
    %530 = vector.shape_cast %529 : vector<8xf32> to vector<8x1xf32>
    %cst_190 = arith.constant 3.200000e+01 : f32
    %531 = vector.broadcast %cst_190 : f32 to vector<8x1xf32>
    %532 = arith.divf %530, %531 : vector<8x1xf32>
    %533 = vector.broadcast %532 : vector<8x1xf32> to vector<8x32xf32>
    %534 = arith.subf %191, %533 : vector<8x32xf32>
    %535 = arith.mulf %534, %534 : vector<8x32xf32>
    %cst_191 = arith.constant dense<0.000000e+00> : vector<8xf32>
    %536 = vector.multi_reduction <add>, %535, %cst_191 [1] : vector<8x32xf32> to vector<8xf32>
    %537 = vector.shape_cast %536 : vector<8xf32> to vector<8x1xf32>
    %cst_192 = arith.constant 0.0322580636 : f32
    %538 = vector.broadcast %cst_192 : f32 to vector<8x1xf32>
    %539 = arith.mulf %537, %538 : vector<8x1xf32>
    %540 = vector.broadcast %527 : vector<1x32xf32> to vector<8x32xf32>
    %541 = arith.mulf %540, %534 : vector<8x32xf32>
    %542 = math.sqrt %539 : vector<8x1xf32>
    %cst_193 = arith.constant 9.99999997E-7 : f32
    %543 = vector.broadcast %cst_193 : f32 to vector<8x1xf32>
    %544 = arith.addf %542, %543 : vector<8x1xf32>
    %545 = vector.broadcast %544 : vector<8x1xf32> to vector<8x32xf32>
    %546 = arith.divf %541, %545 : vector<8x32xf32>
    %547 = vector.broadcast %528 : vector<1x32xf32> to vector<8x32xf32>
    %548 = arith.addf %546, %547 : vector<8x32xf32>
    %c1_194 = arith.constant 1 : index
    %c0_195 = arith.constant 0 : index
    %c0_196 = arith.constant 0 : index
    %549 = vector.load %arg5[%c1_194, %c0_195, %c0_196] : memref<2x32x96xf32, #tpu.memory_space<vmem>>, vector<1x32x96xf32>
    %550 = vector.shape_cast %549 : vector<1x32x96xf32> to vector<32x96xf32>
    %551 = vector.extract_strided_slice %526 {offsets = [0, 0], sizes = [1, 96], strides = [1, 1]} : vector<4x96xf32> to vector<1x96xf32>
    %c1_197 = arith.constant 1 : index
    %c0_198 = arith.constant 0 : index
    %c0_199 = arith.constant 0 : index
    %552 = vector.load %arg6[%c1_197, %c0_198, %c0_199] : memref<2x32x32xf32, #tpu.memory_space<vmem>>, vector<1x32x32xf32>
    %553 = vector.shape_cast %552 : vector<1x32x32xf32> to vector<32x32xf32>
    %554 = vector.extract_strided_slice %526 {offsets = [1, 0], sizes = [1, 32], strides = [1, 1]} : vector<4x96xf32> to vector<1x32xf32>
    %cst_200 = arith.constant dense<0.000000e+00> : vector<8x96xf32>
    %555 = tpu.matmul %548, %550, %cst_200 {dimension_numbers = #tpu.dot_dimension_numbers<[1], [0], [0], [1], [0, 0, 1, 1], [], []>} : vector<8x32xf32>, vector<32x96xf32>, vector<8x96xf32> -> vector<8x96xf32>
    %556 = vector.broadcast %551 : vector<1x96xf32> to vector<8x96xf32>
    %557 = arith.addf %555, %556 : vector<8x96xf32>
    %558 = vector.extract_strided_slice %557 {offsets = [0, 0], sizes = [8, 32], strides = [1, 1]} : vector<8x96xf32> to vector<8x32xf32>
    %559 = vector.extract_strided_slice %557 {offsets = [0, 32], sizes = [8, 32], strides = [1, 1]} : vector<8x96xf32> to vector<8x32xf32>
    %560 = vector.extract_strided_slice %557 {offsets = [0, 64], sizes = [8, 32], strides = [1, 1]} : vector<8x96xf32> to vector<8x32xf32>
    %cst_201 = arith.constant 0.000000e+00 : f32
    %561 = vector.broadcast %cst_201 : f32 to vector<8x32xf32>
    %562 = vector.extract_strided_slice %558 {offsets = [0, 0], sizes = [8, 8], strides = [1, 1]} : vector<8x32xf32> to vector<8x8xf32>
    %563 = vector.extract_strided_slice %559 {offsets = [0, 0], sizes = [8, 8], strides = [1, 1]} : vector<8x32xf32> to vector<8x8xf32>
    %564 = vector.extract_strided_slice %560 {offsets = [0, 0], sizes = [8, 8], strides = [1, 1]} : vector<8x32xf32> to vector<8x8xf32>
    %cst_202 = arith.constant dense<0.000000e+00> : vector<8x8xf32>
    %565 = tpu.matmul %562, %563, %cst_202 {dimension_numbers = #tpu.dot_dimension_numbers<[1], [1], [0], [0], [0, 0, 1, 0], [], []>} : vector<8x8xf32>, vector<8x8xf32>, vector<8x8xf32> -> vector<8x8xf32>
    %cst_203 = arith.constant 0.353553385 : f32
    %566 = vector.broadcast %cst_203 : f32 to vector<8x8xf32>
    %567 = arith.mulf %565, %566 : vector<8x8xf32>
    %cst_204 = arith.constant -1.000000e+09 : f32
    %568 = vector.shape_cast %7 : vector<1x8xi1> to vector<1x8xi1>
    %569 = vector.broadcast %568 : vector<1x8xi1> to vector<8x8xi1>
    %570 = vector.broadcast %cst_204 : f32 to vector<8x8xf32>
    %571 = arith.select %569, %567, %570 : vector<8x8xi1>, vector<8x8xf32>
    %cst_205 = arith.constant dense<0xFF800000> : vector<8xf32>
    %572 = vector.multi_reduction <maximumf>, %571, %cst_205 [1] : vector<8x8xf32> to vector<8xf32>
    %573 = vector.shape_cast %572 : vector<8xf32> to vector<8x1xf32>
    %574 = vector.broadcast %573 : vector<8x1xf32> to vector<8x8xf32>
    %575 = arith.subf %571, %574 : vector<8x8xf32>
    %576 = math.exp %575 : vector<8x8xf32>
    %cst_206 = arith.constant dense<0.000000e+00> : vector<8xf32>
    %577 = vector.multi_reduction <add>, %576, %cst_206 [1] : vector<8x8xf32> to vector<8xf32>
    %578 = vector.shape_cast %577 : vector<8xf32> to vector<8x1xf32>
    %579 = tpu.reciprocal %578 {approx = true} : vector<8x1xf32> -> vector<8x1xf32>
    %580 = vector.broadcast %579 : vector<8x1xf32> to vector<8x8xf32>
    %581 = arith.mulf %576, %580 : vector<8x8xf32>
    %cst_207 = arith.constant dense<0.000000e+00> : vector<8x8xf32>
    %582 = tpu.matmul %581, %564, %cst_207 {dimension_numbers = #tpu.dot_dimension_numbers<[1], [0], [0], [1], [0, 0, 1, 1], [], []>} : vector<8x8xf32>, vector<8x8xf32>, vector<8x8xf32> -> vector<8x8xf32>
    %583 = vector.extract_strided_slice %553 {offsets = [0, 0], sizes = [8, 32], strides = [1, 1]} : vector<32x32xf32> to vector<8x32xf32>
    %cst_208 = arith.constant dense<0.000000e+00> : vector<8x32xf32>
    %584 = tpu.matmul %582, %583, %cst_208 {dimension_numbers = #tpu.dot_dimension_numbers<[1], [0], [0], [1], [0, 0, 1, 1], [], []>} : vector<8x8xf32>, vector<8x32xf32>, vector<8x32xf32> -> vector<8x32xf32>
    %585 = arith.addf %561, %584 : vector<8x32xf32>
    %586 = vector.extract_strided_slice %558 {offsets = [0, 8], sizes = [8, 8], strides = [1, 1]} : vector<8x32xf32> to vector<8x8xf32>
    %587 = vector.extract_strided_slice %559 {offsets = [0, 8], sizes = [8, 8], strides = [1, 1]} : vector<8x32xf32> to vector<8x8xf32>
    %588 = vector.extract_strided_slice %560 {offsets = [0, 8], sizes = [8, 8], strides = [1, 1]} : vector<8x32xf32> to vector<8x8xf32>
    %cst_209 = arith.constant dense<0.000000e+00> : vector<8x8xf32>
    %589 = tpu.matmul %586, %587, %cst_209 {dimension_numbers = #tpu.dot_dimension_numbers<[1], [1], [0], [0], [0, 0, 1, 0], [], []>} : vector<8x8xf32>, vector<8x8xf32>, vector<8x8xf32> -> vector<8x8xf32>
    %cst_210 = arith.constant 0.353553385 : f32
    %590 = vector.broadcast %cst_210 : f32 to vector<8x8xf32>
    %591 = arith.mulf %589, %590 : vector<8x8xf32>
    %cst_211 = arith.constant -1.000000e+09 : f32
    %592 = vector.shape_cast %7 : vector<1x8xi1> to vector<1x8xi1>
    %593 = vector.broadcast %592 : vector<1x8xi1> to vector<8x8xi1>
    %594 = vector.broadcast %cst_211 : f32 to vector<8x8xf32>
    %595 = arith.select %593, %591, %594 : vector<8x8xi1>, vector<8x8xf32>
    %cst_212 = arith.constant dense<0xFF800000> : vector<8xf32>
    %596 = vector.multi_reduction <maximumf>, %595, %cst_212 [1] : vector<8x8xf32> to vector<8xf32>
    %597 = vector.shape_cast %596 : vector<8xf32> to vector<8x1xf32>
    %598 = vector.broadcast %597 : vector<8x1xf32> to vector<8x8xf32>
    %599 = arith.subf %595, %598 : vector<8x8xf32>
    %600 = math.exp %599 : vector<8x8xf32>
    %cst_213 = arith.constant dense<0.000000e+00> : vector<8xf32>
    %601 = vector.multi_reduction <add>, %600, %cst_213 [1] : vector<8x8xf32> to vector<8xf32>
    %602 = vector.shape_cast %601 : vector<8xf32> to vector<8x1xf32>
    %603 = tpu.reciprocal %602 {approx = true} : vector<8x1xf32> -> vector<8x1xf32>
    %604 = vector.broadcast %603 : vector<8x1xf32> to vector<8x8xf32>
    %605 = arith.mulf %600, %604 : vector<8x8xf32>
    %cst_214 = arith.constant dense<0.000000e+00> : vector<8x8xf32>
    %606 = tpu.matmul %605, %588, %cst_214 {dimension_numbers = #tpu.dot_dimension_numbers<[1], [0], [0], [1], [0, 0, 1, 1], [], []>} : vector<8x8xf32>, vector<8x8xf32>, vector<8x8xf32> -> vector<8x8xf32>
    %607 = vector.extract_strided_slice %553 {offsets = [8, 0], sizes = [8, 32], strides = [1, 1]} : vector<32x32xf32> to vector<8x32xf32>
    %cst_215 = arith.constant dense<0.000000e+00> : vector<8x32xf32>
    %608 = tpu.matmul %606, %607, %cst_215 {dimension_numbers = #tpu.dot_dimension_numbers<[1], [0], [0], [1], [0, 0, 1, 1], [], []>} : vector<8x8xf32>, vector<8x32xf32>, vector<8x32xf32> -> vector<8x32xf32>
    %609 = arith.addf %585, %608 : vector<8x32xf32>
    %610 = vector.extract_strided_slice %558 {offsets = [0, 16], sizes = [8, 8], strides = [1, 1]} : vector<8x32xf32> to vector<8x8xf32>
    %611 = vector.extract_strided_slice %559 {offsets = [0, 16], sizes = [8, 8], strides = [1, 1]} : vector<8x32xf32> to vector<8x8xf32>
    %612 = vector.extract_strided_slice %560 {offsets = [0, 16], sizes = [8, 8], strides = [1, 1]} : vector<8x32xf32> to vector<8x8xf32>
    %cst_216 = arith.constant dense<0.000000e+00> : vector<8x8xf32>
    %613 = tpu.matmul %610, %611, %cst_216 {dimension_numbers = #tpu.dot_dimension_numbers<[1], [1], [0], [0], [0, 0, 1, 0], [], []>} : vector<8x8xf32>, vector<8x8xf32>, vector<8x8xf32> -> vector<8x8xf32>
    %cst_217 = arith.constant 0.353553385 : f32
    %614 = vector.broadcast %cst_217 : f32 to vector<8x8xf32>
    %615 = arith.mulf %613, %614 : vector<8x8xf32>
    %cst_218 = arith.constant -1.000000e+09 : f32
    %616 = vector.shape_cast %7 : vector<1x8xi1> to vector<1x8xi1>
    %617 = vector.broadcast %616 : vector<1x8xi1> to vector<8x8xi1>
    %618 = vector.broadcast %cst_218 : f32 to vector<8x8xf32>
    %619 = arith.select %617, %615, %618 : vector<8x8xi1>, vector<8x8xf32>
    %cst_219 = arith.constant dense<0xFF800000> : vector<8xf32>
    %620 = vector.multi_reduction <maximumf>, %619, %cst_219 [1] : vector<8x8xf32> to vector<8xf32>
    %621 = vector.shape_cast %620 : vector<8xf32> to vector<8x1xf32>
    %622 = vector.broadcast %621 : vector<8x1xf32> to vector<8x8xf32>
    %623 = arith.subf %619, %622 : vector<8x8xf32>
    %624 = math.exp %623 : vector<8x8xf32>
    %cst_220 = arith.constant dense<0.000000e+00> : vector<8xf32>
    %625 = vector.multi_reduction <add>, %624, %cst_220 [1] : vector<8x8xf32> to vector<8xf32>
    %626 = vector.shape_cast %625 : vector<8xf32> to vector<8x1xf32>
    %627 = tpu.reciprocal %626 {approx = true} : vector<8x1xf32> -> vector<8x1xf32>
    %628 = vector.broadcast %627 : vector<8x1xf32> to vector<8x8xf32>
    %629 = arith.mulf %624, %628 : vector<8x8xf32>
    %cst_221 = arith.constant dense<0.000000e+00> : vector<8x8xf32>
    %630 = tpu.matmul %629, %612, %cst_221 {dimension_numbers = #tpu.dot_dimension_numbers<[1], [0], [0], [1], [0, 0, 1, 1], [], []>} : vector<8x8xf32>, vector<8x8xf32>, vector<8x8xf32> -> vector<8x8xf32>
    %631 = vector.extract_strided_slice %553 {offsets = [16, 0], sizes = [8, 32], strides = [1, 1]} : vector<32x32xf32> to vector<8x32xf32>
    %cst_222 = arith.constant dense<0.000000e+00> : vector<8x32xf32>
    %632 = tpu.matmul %630, %631, %cst_222 {dimension_numbers = #tpu.dot_dimension_numbers<[1], [0], [0], [1], [0, 0, 1, 1], [], []>} : vector<8x8xf32>, vector<8x32xf32>, vector<8x32xf32> -> vector<8x32xf32>
    %633 = arith.addf %609, %632 : vector<8x32xf32>
    %634 = vector.extract_strided_slice %558 {offsets = [0, 24], sizes = [8, 8], strides = [1, 1]} : vector<8x32xf32> to vector<8x8xf32>
    %635 = vector.extract_strided_slice %559 {offsets = [0, 24], sizes = [8, 8], strides = [1, 1]} : vector<8x32xf32> to vector<8x8xf32>
    %636 = vector.extract_strided_slice %560 {offsets = [0, 24], sizes = [8, 8], strides = [1, 1]} : vector<8x32xf32> to vector<8x8xf32>
    %cst_223 = arith.constant dense<0.000000e+00> : vector<8x8xf32>
    %637 = tpu.matmul %634, %635, %cst_223 {dimension_numbers = #tpu.dot_dimension_numbers<[1], [1], [0], [0], [0, 0, 1, 0], [], []>} : vector<8x8xf32>, vector<8x8xf32>, vector<8x8xf32> -> vector<8x8xf32>
    %cst_224 = arith.constant 0.353553385 : f32
    %638 = vector.broadcast %cst_224 : f32 to vector<8x8xf32>
    %639 = arith.mulf %637, %638 : vector<8x8xf32>
    %cst_225 = arith.constant -1.000000e+09 : f32
    %640 = vector.shape_cast %7 : vector<1x8xi1> to vector<1x8xi1>
    %641 = vector.broadcast %640 : vector<1x8xi1> to vector<8x8xi1>
    %642 = vector.broadcast %cst_225 : f32 to vector<8x8xf32>
    %643 = arith.select %641, %639, %642 : vector<8x8xi1>, vector<8x8xf32>
    %cst_226 = arith.constant dense<0xFF800000> : vector<8xf32>
    %644 = vector.multi_reduction <maximumf>, %643, %cst_226 [1] : vector<8x8xf32> to vector<8xf32>
    %645 = vector.shape_cast %644 : vector<8xf32> to vector<8x1xf32>
    %646 = vector.broadcast %645 : vector<8x1xf32> to vector<8x8xf32>
    %647 = arith.subf %643, %646 : vector<8x8xf32>
    %648 = math.exp %647 : vector<8x8xf32>
    %cst_227 = arith.constant dense<0.000000e+00> : vector<8xf32>
    %649 = vector.multi_reduction <add>, %648, %cst_227 [1] : vector<8x8xf32> to vector<8xf32>
    %650 = vector.shape_cast %649 : vector<8xf32> to vector<8x1xf32>
    %651 = tpu.reciprocal %650 {approx = true} : vector<8x1xf32> -> vector<8x1xf32>
    %652 = vector.broadcast %651 : vector<8x1xf32> to vector<8x8xf32>
    %653 = arith.mulf %648, %652 : vector<8x8xf32>
    %cst_228 = arith.constant dense<0.000000e+00> : vector<8x8xf32>
    %654 = tpu.matmul %653, %636, %cst_228 {dimension_numbers = #tpu.dot_dimension_numbers<[1], [0], [0], [1], [0, 0, 1, 1], [], []>} : vector<8x8xf32>, vector<8x8xf32>, vector<8x8xf32> -> vector<8x8xf32>
    %655 = vector.extract_strided_slice %553 {offsets = [24, 0], sizes = [8, 32], strides = [1, 1]} : vector<32x32xf32> to vector<8x32xf32>
    %cst_229 = arith.constant dense<0.000000e+00> : vector<8x32xf32>
    %656 = tpu.matmul %654, %655, %cst_229 {dimension_numbers = #tpu.dot_dimension_numbers<[1], [0], [0], [1], [0, 0, 1, 1], [], []>} : vector<8x8xf32>, vector<8x32xf32>, vector<8x32xf32> -> vector<8x32xf32>
    %657 = arith.addf %633, %656 : vector<8x32xf32>
    %658 = vector.broadcast %554 : vector<1x32xf32> to vector<8x32xf32>
    %659 = arith.addf %657, %658 : vector<8x32xf32>
    %660 = arith.addf %191, %659 : vector<8x32xf32>
    %661 = vector.extract_strided_slice %524 {offsets = [2, 0], sizes = [1, 32], strides = [1, 1]} : vector<4x32xf32> to vector<1x32xf32>
    %662 = vector.extract_strided_slice %524 {offsets = [3, 0], sizes = [1, 32], strides = [1, 1]} : vector<4x32xf32> to vector<1x32xf32>
    %cst_230 = arith.constant dense<0.000000e+00> : vector<8xf32>
    %663 = vector.multi_reduction <add>, %660, %cst_230 [1] : vector<8x32xf32> to vector<8xf32>
    %664 = vector.shape_cast %663 : vector<8xf32> to vector<8x1xf32>
    %cst_231 = arith.constant 3.200000e+01 : f32
    %665 = vector.broadcast %cst_231 : f32 to vector<8x1xf32>
    %666 = arith.divf %664, %665 : vector<8x1xf32>
    %667 = vector.broadcast %666 : vector<8x1xf32> to vector<8x32xf32>
    %668 = arith.subf %660, %667 : vector<8x32xf32>
    %669 = arith.mulf %668, %668 : vector<8x32xf32>
    %cst_232 = arith.constant dense<0.000000e+00> : vector<8xf32>
    %670 = vector.multi_reduction <add>, %669, %cst_232 [1] : vector<8x32xf32> to vector<8xf32>
    %671 = vector.shape_cast %670 : vector<8xf32> to vector<8x1xf32>
    %cst_233 = arith.constant 0.0322580636 : f32
    %672 = vector.broadcast %cst_233 : f32 to vector<8x1xf32>
    %673 = arith.mulf %671, %672 : vector<8x1xf32>
    %674 = vector.broadcast %661 : vector<1x32xf32> to vector<8x32xf32>
    %675 = arith.mulf %674, %668 : vector<8x32xf32>
    %676 = math.sqrt %673 : vector<8x1xf32>
    %cst_234 = arith.constant 9.99999997E-7 : f32
    %677 = vector.broadcast %cst_234 : f32 to vector<8x1xf32>
    %678 = arith.addf %676, %677 : vector<8x1xf32>
    %679 = vector.broadcast %678 : vector<8x1xf32> to vector<8x32xf32>
    %680 = arith.divf %675, %679 : vector<8x32xf32>
    %681 = vector.broadcast %662 : vector<1x32xf32> to vector<8x32xf32>
    %682 = arith.addf %680, %681 : vector<8x32xf32>
    %c1_235 = arith.constant 1 : index
    %c0_236 = arith.constant 0 : index
    %c0_237 = arith.constant 0 : index
    %683 = vector.load %arg7[%c1_235, %c0_236, %c0_237] : memref<2x32x64xf32, #tpu.memory_space<vmem>>, vector<1x32x64xf32>
    %684 = vector.shape_cast %683 : vector<1x32x64xf32> to vector<32x64xf32>
    %685 = vector.extract_strided_slice %526 {offsets = [2, 0], sizes = [1, 64], strides = [1, 1]} : vector<4x96xf32> to vector<1x64xf32>
    %c1_238 = arith.constant 1 : index
    %c0_239 = arith.constant 0 : index
    %c0_240 = arith.constant 0 : index
    %686 = vector.load %arg8[%c1_238, %c0_239, %c0_240] : memref<2x64x32xf32, #tpu.memory_space<vmem>>, vector<1x64x32xf32>
    %687 = vector.shape_cast %686 : vector<1x64x32xf32> to vector<64x32xf32>
    %688 = vector.extract_strided_slice %526 {offsets = [3, 0], sizes = [1, 32], strides = [1, 1]} : vector<4x96xf32> to vector<1x32xf32>
    %cst_241 = arith.constant dense<0.000000e+00> : vector<8x64xf32>
    %689 = tpu.matmul %682, %684, %cst_241 {dimension_numbers = #tpu.dot_dimension_numbers<[1], [0], [0], [1], [0, 0, 1, 1], [], []>} : vector<8x32xf32>, vector<32x64xf32>, vector<8x64xf32> -> vector<8x64xf32>
    %690 = vector.broadcast %685 : vector<1x64xf32> to vector<8x64xf32>
    %691 = arith.addf %689, %690 : vector<8x64xf32>
    %cst_242 = arith.constant 0.000000e+00 : f32
    %692 = vector.broadcast %cst_242 : f32 to vector<8x64xf32>
    %693 = arith.maximumf %691, %692 : vector<8x64xf32>
    %cst_243 = arith.constant dense<0.000000e+00> : vector<8x32xf32>
    %694 = tpu.matmul %693, %687, %cst_243 {dimension_numbers = #tpu.dot_dimension_numbers<[1], [0], [0], [1], [0, 0, 1, 1], [], []>} : vector<8x64xf32>, vector<64x32xf32>, vector<8x32xf32> -> vector<8x32xf32>
    %695 = vector.broadcast %688 : vector<1x32xf32> to vector<8x32xf32>
    %696 = arith.addf %694, %695 : vector<8x32xf32>
    %697 = arith.addf %660, %696 : vector<8x32xf32>
    %c1_244 = arith.constant 1 : index
    %c0_245 = arith.constant 0 : index
    %c0_246 = arith.constant 0 : index
    %698 = vector.load %arg19[%c1_244, %c0_245, %c0_246] : memref<3x2x32xf32, #tpu.memory_space<vmem>>, vector<1x2x32xf32>
    %699 = vector.shape_cast %698 : vector<1x2x32xf32> to vector<2x32xf32>
    %700 = vector.extract_strided_slice %699 {offsets = [0, 0], sizes = [1, 32], strides = [1, 1]} : vector<2x32xf32> to vector<1x32xf32>
    %701 = vector.extract_strided_slice %699 {offsets = [1, 0], sizes = [1, 32], strides = [1, 1]} : vector<2x32xf32> to vector<1x32xf32>
    %cst_247 = arith.constant dense<0.000000e+00> : vector<8xf32>
    %702 = vector.multi_reduction <add>, %697, %cst_247 [1] : vector<8x32xf32> to vector<8xf32>
    %703 = vector.shape_cast %702 : vector<8xf32> to vector<8x1xf32>
    %cst_248 = arith.constant 3.200000e+01 : f32
    %704 = vector.broadcast %cst_248 : f32 to vector<8x1xf32>
    %705 = arith.divf %703, %704 : vector<8x1xf32>
    %706 = vector.broadcast %705 : vector<8x1xf32> to vector<8x32xf32>
    %707 = arith.subf %697, %706 : vector<8x32xf32>
    %708 = arith.mulf %707, %707 : vector<8x32xf32>
    %cst_249 = arith.constant dense<0.000000e+00> : vector<8xf32>
    %709 = vector.multi_reduction <add>, %708, %cst_249 [1] : vector<8x32xf32> to vector<8xf32>
    %710 = vector.shape_cast %709 : vector<8xf32> to vector<8x1xf32>
    %cst_250 = arith.constant 0.0322580636 : f32
    %711 = vector.broadcast %cst_250 : f32 to vector<8x1xf32>
    %712 = arith.mulf %710, %711 : vector<8x1xf32>
    %713 = vector.broadcast %700 : vector<1x32xf32> to vector<8x32xf32>
    %714 = arith.mulf %713, %707 : vector<8x32xf32>
    %715 = math.sqrt %712 : vector<8x1xf32>
    %cst_251 = arith.constant 9.99999997E-7 : f32
    %716 = vector.broadcast %cst_251 : f32 to vector<8x1xf32>
    %717 = arith.addf %715, %716 : vector<8x1xf32>
    %718 = vector.broadcast %717 : vector<8x1xf32> to vector<8x32xf32>
    %719 = arith.divf %714, %718 : vector<8x32xf32>
    %720 = vector.broadcast %701 : vector<1x32xf32> to vector<8x32xf32>
    %721 = arith.addf %719, %720 : vector<8x32xf32>
    %c1_252 = arith.constant 1 : index
    %c0_253 = arith.constant 0 : index
    %c0_254 = arith.constant 0 : index
    %722 = vector.load %arg17[%c1_252, %c0_253, %c0_254] : memref<2x6x32xf32, #tpu.memory_space<vmem>>, vector<1x6x32xf32>
    %723 = vector.shape_cast %722 : vector<1x6x32xf32> to vector<6x32xf32>
    %c1_255 = arith.constant 1 : index
    %c0_256 = arith.constant 0 : index
    %c0_257 = arith.constant 0 : index
    %724 = vector.load %arg18[%c1_255, %c0_256, %c0_257] : memref<2x6x96xf32, #tpu.memory_space<vmem>>, vector<1x6x96xf32>
    %725 = vector.shape_cast %724 : vector<1x6x96xf32> to vector<6x96xf32>
    %726 = vector.extract_strided_slice %723 {offsets = [0, 0], sizes = [1, 32], strides = [1, 1]} : vector<6x32xf32> to vector<1x32xf32>
    %727 = vector.extract_strided_slice %723 {offsets = [1, 0], sizes = [1, 32], strides = [1, 1]} : vector<6x32xf32> to vector<1x32xf32>
    %cst_258 = arith.constant dense<0.000000e+00> : vector<8xf32>
    %728 = vector.multi_reduction <add>, %522, %cst_258 [1] : vector<8x32xf32> to vector<8xf32>
    %729 = vector.shape_cast %728 : vector<8xf32> to vector<8x1xf32>
    %cst_259 = arith.constant 3.200000e+01 : f32
    %730 = vector.broadcast %cst_259 : f32 to vector<8x1xf32>
    %731 = arith.divf %729, %730 : vector<8x1xf32>
    %732 = vector.broadcast %731 : vector<8x1xf32> to vector<8x32xf32>
    %733 = arith.subf %522, %732 : vector<8x32xf32>
    %734 = arith.mulf %733, %733 : vector<8x32xf32>
    %cst_260 = arith.constant dense<0.000000e+00> : vector<8xf32>
    %735 = vector.multi_reduction <add>, %734, %cst_260 [1] : vector<8x32xf32> to vector<8xf32>
    %736 = vector.shape_cast %735 : vector<8xf32> to vector<8x1xf32>
    %cst_261 = arith.constant 0.0322580636 : f32
    %737 = vector.broadcast %cst_261 : f32 to vector<8x1xf32>
    %738 = arith.mulf %736, %737 : vector<8x1xf32>
    %739 = vector.broadcast %726 : vector<1x32xf32> to vector<8x32xf32>
    %740 = arith.mulf %739, %733 : vector<8x32xf32>
    %741 = math.sqrt %738 : vector<8x1xf32>
    %cst_262 = arith.constant 9.99999997E-7 : f32
    %742 = vector.broadcast %cst_262 : f32 to vector<8x1xf32>
    %743 = arith.addf %741, %742 : vector<8x1xf32>
    %744 = vector.broadcast %743 : vector<8x1xf32> to vector<8x32xf32>
    %745 = arith.divf %740, %744 : vector<8x32xf32>
    %746 = vector.broadcast %727 : vector<1x32xf32> to vector<8x32xf32>
    %747 = arith.addf %745, %746 : vector<8x32xf32>
    %c1_263 = arith.constant 1 : index
    %c0_264 = arith.constant 0 : index
    %c0_265 = arith.constant 0 : index
    %748 = vector.load %arg11[%c1_263, %c0_264, %c0_265] : memref<2x32x96xf32, #tpu.memory_space<vmem>>, vector<1x32x96xf32>
    %749 = vector.shape_cast %748 : vector<1x32x96xf32> to vector<32x96xf32>
    %750 = vector.extract_strided_slice %725 {offsets = [0, 0], sizes = [1, 96], strides = [1, 1]} : vector<6x96xf32> to vector<1x96xf32>
    %c1_266 = arith.constant 1 : index
    %c0_267 = arith.constant 0 : index
    %c0_268 = arith.constant 0 : index
    %751 = vector.load %arg13[%c1_266, %c0_267, %c0_268] : memref<2x32x32xf32, #tpu.memory_space<vmem>>, vector<1x32x32xf32>
    %752 = vector.shape_cast %751 : vector<1x32x32xf32> to vector<32x32xf32>
    %753 = vector.extract_strided_slice %725 {offsets = [2, 0], sizes = [1, 32], strides = [1, 1]} : vector<6x96xf32> to vector<1x32xf32>
    %cst_269 = arith.constant dense<0.000000e+00> : vector<8x96xf32>
    %754 = tpu.matmul %747, %749, %cst_269 {dimension_numbers = #tpu.dot_dimension_numbers<[1], [0], [0], [1], [0, 0, 1, 1], [], []>} : vector<8x32xf32>, vector<32x96xf32>, vector<8x96xf32> -> vector<8x96xf32>
    %755 = vector.broadcast %750 : vector<1x96xf32> to vector<8x96xf32>
    %756 = arith.addf %754, %755 : vector<8x96xf32>
    %757 = vector.extract_strided_slice %756 {offsets = [0, 0], sizes = [8, 32], strides = [1, 1]} : vector<8x96xf32> to vector<8x32xf32>
    %758 = vector.extract_strided_slice %756 {offsets = [0, 32], sizes = [8, 32], strides = [1, 1]} : vector<8x96xf32> to vector<8x32xf32>
    %759 = vector.extract_strided_slice %756 {offsets = [0, 64], sizes = [8, 32], strides = [1, 1]} : vector<8x96xf32> to vector<8x32xf32>
    %cst_270 = arith.constant 0.000000e+00 : f32
    %760 = vector.broadcast %cst_270 : f32 to vector<8x32xf32>
    %761 = vector.extract_strided_slice %757 {offsets = [0, 0], sizes = [8, 8], strides = [1, 1]} : vector<8x32xf32> to vector<8x8xf32>
    %762 = vector.extract_strided_slice %758 {offsets = [0, 0], sizes = [8, 8], strides = [1, 1]} : vector<8x32xf32> to vector<8x8xf32>
    %763 = vector.extract_strided_slice %759 {offsets = [0, 0], sizes = [8, 8], strides = [1, 1]} : vector<8x32xf32> to vector<8x8xf32>
    %cst_271 = arith.constant dense<0.000000e+00> : vector<8x8xf32>
    %764 = tpu.matmul %761, %762, %cst_271 {dimension_numbers = #tpu.dot_dimension_numbers<[1], [1], [0], [0], [0, 0, 1, 0], [], []>} : vector<8x8xf32>, vector<8x8xf32>, vector<8x8xf32> -> vector<8x8xf32>
    %cst_272 = arith.constant 0.353553385 : f32
    %765 = vector.broadcast %cst_272 : f32 to vector<8x8xf32>
    %766 = arith.mulf %764, %765 : vector<8x8xf32>
    %cst_273 = arith.constant -1.000000e+09 : f32
    %767 = vector.broadcast %cst_273 : f32 to vector<8x8xf32>
    %768 = arith.select %16, %766, %767 : vector<8x8xi1>, vector<8x8xf32>
    %cst_274 = arith.constant dense<0xFF800000> : vector<8xf32>
    %769 = vector.multi_reduction <maximumf>, %768, %cst_274 [1] : vector<8x8xf32> to vector<8xf32>
    %770 = vector.shape_cast %769 : vector<8xf32> to vector<8x1xf32>
    %771 = vector.broadcast %770 : vector<8x1xf32> to vector<8x8xf32>
    %772 = arith.subf %768, %771 : vector<8x8xf32>
    %773 = math.exp %772 : vector<8x8xf32>
    %cst_275 = arith.constant dense<0.000000e+00> : vector<8xf32>
    %774 = vector.multi_reduction <add>, %773, %cst_275 [1] : vector<8x8xf32> to vector<8xf32>
    %775 = vector.shape_cast %774 : vector<8xf32> to vector<8x1xf32>
    %776 = tpu.reciprocal %775 {approx = true} : vector<8x1xf32> -> vector<8x1xf32>
    %777 = vector.broadcast %776 : vector<8x1xf32> to vector<8x8xf32>
    %778 = arith.mulf %773, %777 : vector<8x8xf32>
    %cst_276 = arith.constant dense<0.000000e+00> : vector<8x8xf32>
    %779 = tpu.matmul %778, %763, %cst_276 {dimension_numbers = #tpu.dot_dimension_numbers<[1], [0], [0], [1], [0, 0, 1, 1], [], []>} : vector<8x8xf32>, vector<8x8xf32>, vector<8x8xf32> -> vector<8x8xf32>
    %780 = vector.extract_strided_slice %752 {offsets = [0, 0], sizes = [8, 32], strides = [1, 1]} : vector<32x32xf32> to vector<8x32xf32>
    %cst_277 = arith.constant dense<0.000000e+00> : vector<8x32xf32>
    %781 = tpu.matmul %779, %780, %cst_277 {dimension_numbers = #tpu.dot_dimension_numbers<[1], [0], [0], [1], [0, 0, 1, 1], [], []>} : vector<8x8xf32>, vector<8x32xf32>, vector<8x32xf32> -> vector<8x32xf32>
    %782 = arith.addf %760, %781 : vector<8x32xf32>
    %783 = vector.extract_strided_slice %757 {offsets = [0, 8], sizes = [8, 8], strides = [1, 1]} : vector<8x32xf32> to vector<8x8xf32>
    %784 = vector.extract_strided_slice %758 {offsets = [0, 8], sizes = [8, 8], strides = [1, 1]} : vector<8x32xf32> to vector<8x8xf32>
    %785 = vector.extract_strided_slice %759 {offsets = [0, 8], sizes = [8, 8], strides = [1, 1]} : vector<8x32xf32> to vector<8x8xf32>
    %cst_278 = arith.constant dense<0.000000e+00> : vector<8x8xf32>
    %786 = tpu.matmul %783, %784, %cst_278 {dimension_numbers = #tpu.dot_dimension_numbers<[1], [1], [0], [0], [0, 0, 1, 0], [], []>} : vector<8x8xf32>, vector<8x8xf32>, vector<8x8xf32> -> vector<8x8xf32>
    %cst_279 = arith.constant 0.353553385 : f32
    %787 = vector.broadcast %cst_279 : f32 to vector<8x8xf32>
    %788 = arith.mulf %786, %787 : vector<8x8xf32>
    %cst_280 = arith.constant -1.000000e+09 : f32
    %789 = vector.broadcast %cst_280 : f32 to vector<8x8xf32>
    %790 = arith.select %16, %788, %789 : vector<8x8xi1>, vector<8x8xf32>
    %cst_281 = arith.constant dense<0xFF800000> : vector<8xf32>
    %791 = vector.multi_reduction <maximumf>, %790, %cst_281 [1] : vector<8x8xf32> to vector<8xf32>
    %792 = vector.shape_cast %791 : vector<8xf32> to vector<8x1xf32>
    %793 = vector.broadcast %792 : vector<8x1xf32> to vector<8x8xf32>
    %794 = arith.subf %790, %793 : vector<8x8xf32>
    %795 = math.exp %794 : vector<8x8xf32>
    %cst_282 = arith.constant dense<0.000000e+00> : vector<8xf32>
    %796 = vector.multi_reduction <add>, %795, %cst_282 [1] : vector<8x8xf32> to vector<8xf32>
    %797 = vector.shape_cast %796 : vector<8xf32> to vector<8x1xf32>
    %798 = tpu.reciprocal %797 {approx = true} : vector<8x1xf32> -> vector<8x1xf32>
    %799 = vector.broadcast %798 : vector<8x1xf32> to vector<8x8xf32>
    %800 = arith.mulf %795, %799 : vector<8x8xf32>
    %cst_283 = arith.constant dense<0.000000e+00> : vector<8x8xf32>
    %801 = tpu.matmul %800, %785, %cst_283 {dimension_numbers = #tpu.dot_dimension_numbers<[1], [0], [0], [1], [0, 0, 1, 1], [], []>} : vector<8x8xf32>, vector<8x8xf32>, vector<8x8xf32> -> vector<8x8xf32>
    %802 = vector.extract_strided_slice %752 {offsets = [8, 0], sizes = [8, 32], strides = [1, 1]} : vector<32x32xf32> to vector<8x32xf32>
    %cst_284 = arith.constant dense<0.000000e+00> : vector<8x32xf32>
    %803 = tpu.matmul %801, %802, %cst_284 {dimension_numbers = #tpu.dot_dimension_numbers<[1], [0], [0], [1], [0, 0, 1, 1], [], []>} : vector<8x8xf32>, vector<8x32xf32>, vector<8x32xf32> -> vector<8x32xf32>
    %804 = arith.addf %782, %803 : vector<8x32xf32>
    %805 = vector.extract_strided_slice %757 {offsets = [0, 16], sizes = [8, 8], strides = [1, 1]} : vector<8x32xf32> to vector<8x8xf32>
    %806 = vector.extract_strided_slice %758 {offsets = [0, 16], sizes = [8, 8], strides = [1, 1]} : vector<8x32xf32> to vector<8x8xf32>
    %807 = vector.extract_strided_slice %759 {offsets = [0, 16], sizes = [8, 8], strides = [1, 1]} : vector<8x32xf32> to vector<8x8xf32>
    %cst_285 = arith.constant dense<0.000000e+00> : vector<8x8xf32>
    %808 = tpu.matmul %805, %806, %cst_285 {dimension_numbers = #tpu.dot_dimension_numbers<[1], [1], [0], [0], [0, 0, 1, 0], [], []>} : vector<8x8xf32>, vector<8x8xf32>, vector<8x8xf32> -> vector<8x8xf32>
    %cst_286 = arith.constant 0.353553385 : f32
    %809 = vector.broadcast %cst_286 : f32 to vector<8x8xf32>
    %810 = arith.mulf %808, %809 : vector<8x8xf32>
    %cst_287 = arith.constant -1.000000e+09 : f32
    %811 = vector.broadcast %cst_287 : f32 to vector<8x8xf32>
    %812 = arith.select %16, %810, %811 : vector<8x8xi1>, vector<8x8xf32>
    %cst_288 = arith.constant dense<0xFF800000> : vector<8xf32>
    %813 = vector.multi_reduction <maximumf>, %812, %cst_288 [1] : vector<8x8xf32> to vector<8xf32>
    %814 = vector.shape_cast %813 : vector<8xf32> to vector<8x1xf32>
    %815 = vector.broadcast %814 : vector<8x1xf32> to vector<8x8xf32>
    %816 = arith.subf %812, %815 : vector<8x8xf32>
    %817 = math.exp %816 : vector<8x8xf32>
    %cst_289 = arith.constant dense<0.000000e+00> : vector<8xf32>
    %818 = vector.multi_reduction <add>, %817, %cst_289 [1] : vector<8x8xf32> to vector<8xf32>
    %819 = vector.shape_cast %818 : vector<8xf32> to vector<8x1xf32>
    %820 = tpu.reciprocal %819 {approx = true} : vector<8x1xf32> -> vector<8x1xf32>
    %821 = vector.broadcast %820 : vector<8x1xf32> to vector<8x8xf32>
    %822 = arith.mulf %817, %821 : vector<8x8xf32>
    %cst_290 = arith.constant dense<0.000000e+00> : vector<8x8xf32>
    %823 = tpu.matmul %822, %807, %cst_290 {dimension_numbers = #tpu.dot_dimension_numbers<[1], [0], [0], [1], [0, 0, 1, 1], [], []>} : vector<8x8xf32>, vector<8x8xf32>, vector<8x8xf32> -> vector<8x8xf32>
    %824 = vector.extract_strided_slice %752 {offsets = [16, 0], sizes = [8, 32], strides = [1, 1]} : vector<32x32xf32> to vector<8x32xf32>
    %cst_291 = arith.constant dense<0.000000e+00> : vector<8x32xf32>
    %825 = tpu.matmul %823, %824, %cst_291 {dimension_numbers = #tpu.dot_dimension_numbers<[1], [0], [0], [1], [0, 0, 1, 1], [], []>} : vector<8x8xf32>, vector<8x32xf32>, vector<8x32xf32> -> vector<8x32xf32>
    %826 = arith.addf %804, %825 : vector<8x32xf32>
    %827 = vector.extract_strided_slice %757 {offsets = [0, 24], sizes = [8, 8], strides = [1, 1]} : vector<8x32xf32> to vector<8x8xf32>
    %828 = vector.extract_strided_slice %758 {offsets = [0, 24], sizes = [8, 8], strides = [1, 1]} : vector<8x32xf32> to vector<8x8xf32>
    %829 = vector.extract_strided_slice %759 {offsets = [0, 24], sizes = [8, 8], strides = [1, 1]} : vector<8x32xf32> to vector<8x8xf32>
    %cst_292 = arith.constant dense<0.000000e+00> : vector<8x8xf32>
    %830 = tpu.matmul %827, %828, %cst_292 {dimension_numbers = #tpu.dot_dimension_numbers<[1], [1], [0], [0], [0, 0, 1, 0], [], []>} : vector<8x8xf32>, vector<8x8xf32>, vector<8x8xf32> -> vector<8x8xf32>
    %cst_293 = arith.constant 0.353553385 : f32
    %831 = vector.broadcast %cst_293 : f32 to vector<8x8xf32>
    %832 = arith.mulf %830, %831 : vector<8x8xf32>
    %cst_294 = arith.constant -1.000000e+09 : f32
    %833 = vector.broadcast %cst_294 : f32 to vector<8x8xf32>
    %834 = arith.select %16, %832, %833 : vector<8x8xi1>, vector<8x8xf32>
    %cst_295 = arith.constant dense<0xFF800000> : vector<8xf32>
    %835 = vector.multi_reduction <maximumf>, %834, %cst_295 [1] : vector<8x8xf32> to vector<8xf32>
    %836 = vector.shape_cast %835 : vector<8xf32> to vector<8x1xf32>
    %837 = vector.broadcast %836 : vector<8x1xf32> to vector<8x8xf32>
    %838 = arith.subf %834, %837 : vector<8x8xf32>
    %839 = math.exp %838 : vector<8x8xf32>
    %cst_296 = arith.constant dense<0.000000e+00> : vector<8xf32>
    %840 = vector.multi_reduction <add>, %839, %cst_296 [1] : vector<8x8xf32> to vector<8xf32>
    %841 = vector.shape_cast %840 : vector<8xf32> to vector<8x1xf32>
    %842 = tpu.reciprocal %841 {approx = true} : vector<8x1xf32> -> vector<8x1xf32>
    %843 = vector.broadcast %842 : vector<8x1xf32> to vector<8x8xf32>
    %844 = arith.mulf %839, %843 : vector<8x8xf32>
    %cst_297 = arith.constant dense<0.000000e+00> : vector<8x8xf32>
    %845 = tpu.matmul %844, %829, %cst_297 {dimension_numbers = #tpu.dot_dimension_numbers<[1], [0], [0], [1], [0, 0, 1, 1], [], []>} : vector<8x8xf32>, vector<8x8xf32>, vector<8x8xf32> -> vector<8x8xf32>
    %846 = vector.extract_strided_slice %752 {offsets = [24, 0], sizes = [8, 32], strides = [1, 1]} : vector<32x32xf32> to vector<8x32xf32>
    %cst_298 = arith.constant dense<0.000000e+00> : vector<8x32xf32>
    %847 = tpu.matmul %845, %846, %cst_298 {dimension_numbers = #tpu.dot_dimension_numbers<[1], [0], [0], [1], [0, 0, 1, 1], [], []>} : vector<8x8xf32>, vector<8x32xf32>, vector<8x32xf32> -> vector<8x32xf32>
    %848 = arith.addf %826, %847 : vector<8x32xf32>
    %849 = vector.broadcast %753 : vector<1x32xf32> to vector<8x32xf32>
    %850 = arith.addf %848, %849 : vector<8x32xf32>
    %851 = arith.addf %522, %850 : vector<8x32xf32>
    %852 = vector.extract_strided_slice %723 {offsets = [2, 0], sizes = [1, 32], strides = [1, 1]} : vector<6x32xf32> to vector<1x32xf32>
    %853 = vector.extract_strided_slice %723 {offsets = [3, 0], sizes = [1, 32], strides = [1, 1]} : vector<6x32xf32> to vector<1x32xf32>
    %cst_299 = arith.constant dense<0.000000e+00> : vector<8xf32>
    %854 = vector.multi_reduction <add>, %851, %cst_299 [1] : vector<8x32xf32> to vector<8xf32>
    %855 = vector.shape_cast %854 : vector<8xf32> to vector<8x1xf32>
    %cst_300 = arith.constant 3.200000e+01 : f32
    %856 = vector.broadcast %cst_300 : f32 to vector<8x1xf32>
    %857 = arith.divf %855, %856 : vector<8x1xf32>
    %858 = vector.broadcast %857 : vector<8x1xf32> to vector<8x32xf32>
    %859 = arith.subf %851, %858 : vector<8x32xf32>
    %860 = arith.mulf %859, %859 : vector<8x32xf32>
    %cst_301 = arith.constant dense<0.000000e+00> : vector<8xf32>
    %861 = vector.multi_reduction <add>, %860, %cst_301 [1] : vector<8x32xf32> to vector<8xf32>
    %862 = vector.shape_cast %861 : vector<8xf32> to vector<8x1xf32>
    %cst_302 = arith.constant 0.0322580636 : f32
    %863 = vector.broadcast %cst_302 : f32 to vector<8x1xf32>
    %864 = arith.mulf %862, %863 : vector<8x1xf32>
    %865 = vector.broadcast %852 : vector<1x32xf32> to vector<8x32xf32>
    %866 = arith.mulf %865, %859 : vector<8x32xf32>
    %867 = math.sqrt %864 : vector<8x1xf32>
    %cst_303 = arith.constant 9.99999997E-7 : f32
    %868 = vector.broadcast %cst_303 : f32 to vector<8x1xf32>
    %869 = arith.addf %867, %868 : vector<8x1xf32>
    %870 = vector.broadcast %869 : vector<8x1xf32> to vector<8x32xf32>
    %871 = arith.divf %866, %870 : vector<8x32xf32>
    %872 = vector.broadcast %853 : vector<1x32xf32> to vector<8x32xf32>
    %873 = arith.addf %871, %872 : vector<8x32xf32>
    %c1_304 = arith.constant 1 : index
    %c0_305 = arith.constant 0 : index
    %c0_306 = arith.constant 0 : index
    %874 = vector.load %arg12[%c1_304, %c0_305, %c0_306] : memref<2x32x96xf32, #tpu.memory_space<vmem>>, vector<1x32x96xf32>
    %875 = vector.shape_cast %874 : vector<1x32x96xf32> to vector<32x96xf32>
    %876 = vector.extract_strided_slice %725 {offsets = [1, 0], sizes = [1, 96], strides = [1, 1]} : vector<6x96xf32> to vector<1x96xf32>
    %c1_307 = arith.constant 1 : index
    %c0_308 = arith.constant 0 : index
    %c0_309 = arith.constant 0 : index
    %877 = vector.load %arg14[%c1_307, %c0_308, %c0_309] : memref<2x32x32xf32, #tpu.memory_space<vmem>>, vector<1x32x32xf32>
    %878 = vector.shape_cast %877 : vector<1x32x32xf32> to vector<32x32xf32>
    %879 = vector.extract_strided_slice %725 {offsets = [3, 0], sizes = [1, 32], strides = [1, 1]} : vector<6x96xf32> to vector<1x32xf32>
    %880 = vector.extract_strided_slice %875 {offsets = [0, 0], sizes = [32, 32], strides = [1, 1]} : vector<32x96xf32> to vector<32x32xf32>
    %cst_310 = arith.constant dense<0.000000e+00> : vector<8x32xf32>
    %881 = tpu.matmul %873, %880, %cst_310 {dimension_numbers = #tpu.dot_dimension_numbers<[1], [0], [0], [1], [0, 0, 1, 1], [], []>} : vector<8x32xf32>, vector<32x32xf32>, vector<8x32xf32> -> vector<8x32xf32>
    %882 = vector.extract_strided_slice %876 {offsets = [0, 0], sizes = [1, 32], strides = [1, 1]} : vector<1x96xf32> to vector<1x32xf32>
    %883 = vector.broadcast %882 : vector<1x32xf32> to vector<8x32xf32>
    %884 = arith.addf %881, %883 : vector<8x32xf32>
    %885 = vector.extract_strided_slice %875 {offsets = [0, 32], sizes = [32, 64], strides = [1, 1]} : vector<32x96xf32> to vector<32x64xf32>
    %cst_311 = arith.constant dense<0.000000e+00> : vector<8x64xf32>
    %886 = tpu.matmul %721, %885, %cst_311 {dimension_numbers = #tpu.dot_dimension_numbers<[1], [0], [0], [1], [0, 0, 1, 1], [], []>} : vector<8x32xf32>, vector<32x64xf32>, vector<8x64xf32> -> vector<8x64xf32>
    %887 = vector.extract_strided_slice %876 {offsets = [0, 32], sizes = [1, 64], strides = [1, 1]} : vector<1x96xf32> to vector<1x64xf32>
    %888 = vector.broadcast %887 : vector<1x64xf32> to vector<8x64xf32>
    %889 = arith.addf %886, %888 : vector<8x64xf32>
    %890 = vector.extract_strided_slice %889 {offsets = [0, 0], sizes = [8, 32], strides = [1, 1]} : vector<8x64xf32> to vector<8x32xf32>
    %891 = vector.extract_strided_slice %889 {offsets = [0, 32], sizes = [8, 32], strides = [1, 1]} : vector<8x64xf32> to vector<8x32xf32>
    %cst_312 = arith.constant 0.000000e+00 : f32
    %892 = vector.broadcast %cst_312 : f32 to vector<8x32xf32>
    %893 = vector.extract_strided_slice %884 {offsets = [0, 0], sizes = [8, 8], strides = [1, 1]} : vector<8x32xf32> to vector<8x8xf32>
    %894 = vector.extract_strided_slice %890 {offsets = [0, 0], sizes = [8, 8], strides = [1, 1]} : vector<8x32xf32> to vector<8x8xf32>
    %895 = vector.extract_strided_slice %891 {offsets = [0, 0], sizes = [8, 8], strides = [1, 1]} : vector<8x32xf32> to vector<8x8xf32>
    %cst_313 = arith.constant dense<0.000000e+00> : vector<8x8xf32>
    %896 = tpu.matmul %893, %894, %cst_313 {dimension_numbers = #tpu.dot_dimension_numbers<[1], [1], [0], [0], [0, 0, 1, 0], [], []>} : vector<8x8xf32>, vector<8x8xf32>, vector<8x8xf32> -> vector<8x8xf32>
    %cst_314 = arith.constant 0.353553385 : f32
    %897 = vector.broadcast %cst_314 : f32 to vector<8x8xf32>
    %898 = arith.mulf %896, %897 : vector<8x8xf32>
    %cst_315 = arith.constant -1.000000e+09 : f32
    %899 = vector.shape_cast %7 : vector<1x8xi1> to vector<1x8xi1>
    %900 = vector.broadcast %899 : vector<1x8xi1> to vector<8x8xi1>
    %901 = vector.broadcast %cst_315 : f32 to vector<8x8xf32>
    %902 = arith.select %900, %898, %901 : vector<8x8xi1>, vector<8x8xf32>
    %cst_316 = arith.constant dense<0xFF800000> : vector<8xf32>
    %903 = vector.multi_reduction <maximumf>, %902, %cst_316 [1] : vector<8x8xf32> to vector<8xf32>
    %904 = vector.shape_cast %903 : vector<8xf32> to vector<8x1xf32>
    %905 = vector.broadcast %904 : vector<8x1xf32> to vector<8x8xf32>
    %906 = arith.subf %902, %905 : vector<8x8xf32>
    %907 = math.exp %906 : vector<8x8xf32>
    %cst_317 = arith.constant dense<0.000000e+00> : vector<8xf32>
    %908 = vector.multi_reduction <add>, %907, %cst_317 [1] : vector<8x8xf32> to vector<8xf32>
    %909 = vector.shape_cast %908 : vector<8xf32> to vector<8x1xf32>
    %910 = tpu.reciprocal %909 {approx = true} : vector<8x1xf32> -> vector<8x1xf32>
    %911 = vector.broadcast %910 : vector<8x1xf32> to vector<8x8xf32>
    %912 = arith.mulf %907, %911 : vector<8x8xf32>
    %cst_318 = arith.constant dense<0.000000e+00> : vector<8x8xf32>
    %913 = tpu.matmul %912, %895, %cst_318 {dimension_numbers = #tpu.dot_dimension_numbers<[1], [0], [0], [1], [0, 0, 1, 1], [], []>} : vector<8x8xf32>, vector<8x8xf32>, vector<8x8xf32> -> vector<8x8xf32>
    %914 = vector.extract_strided_slice %878 {offsets = [0, 0], sizes = [8, 32], strides = [1, 1]} : vector<32x32xf32> to vector<8x32xf32>
    %cst_319 = arith.constant dense<0.000000e+00> : vector<8x32xf32>
    %915 = tpu.matmul %913, %914, %cst_319 {dimension_numbers = #tpu.dot_dimension_numbers<[1], [0], [0], [1], [0, 0, 1, 1], [], []>} : vector<8x8xf32>, vector<8x32xf32>, vector<8x32xf32> -> vector<8x32xf32>
    %916 = arith.addf %892, %915 : vector<8x32xf32>
    %917 = vector.extract_strided_slice %884 {offsets = [0, 8], sizes = [8, 8], strides = [1, 1]} : vector<8x32xf32> to vector<8x8xf32>
    %918 = vector.extract_strided_slice %890 {offsets = [0, 8], sizes = [8, 8], strides = [1, 1]} : vector<8x32xf32> to vector<8x8xf32>
    %919 = vector.extract_strided_slice %891 {offsets = [0, 8], sizes = [8, 8], strides = [1, 1]} : vector<8x32xf32> to vector<8x8xf32>
    %cst_320 = arith.constant dense<0.000000e+00> : vector<8x8xf32>
    %920 = tpu.matmul %917, %918, %cst_320 {dimension_numbers = #tpu.dot_dimension_numbers<[1], [1], [0], [0], [0, 0, 1, 0], [], []>} : vector<8x8xf32>, vector<8x8xf32>, vector<8x8xf32> -> vector<8x8xf32>
    %cst_321 = arith.constant 0.353553385 : f32
    %921 = vector.broadcast %cst_321 : f32 to vector<8x8xf32>
    %922 = arith.mulf %920, %921 : vector<8x8xf32>
    %cst_322 = arith.constant -1.000000e+09 : f32
    %923 = vector.shape_cast %7 : vector<1x8xi1> to vector<1x8xi1>
    %924 = vector.broadcast %923 : vector<1x8xi1> to vector<8x8xi1>
    %925 = vector.broadcast %cst_322 : f32 to vector<8x8xf32>
    %926 = arith.select %924, %922, %925 : vector<8x8xi1>, vector<8x8xf32>
    %cst_323 = arith.constant dense<0xFF800000> : vector<8xf32>
    %927 = vector.multi_reduction <maximumf>, %926, %cst_323 [1] : vector<8x8xf32> to vector<8xf32>
    %928 = vector.shape_cast %927 : vector<8xf32> to vector<8x1xf32>
    %929 = vector.broadcast %928 : vector<8x1xf32> to vector<8x8xf32>
    %930 = arith.subf %926, %929 : vector<8x8xf32>
    %931 = math.exp %930 : vector<8x8xf32>
    %cst_324 = arith.constant dense<0.000000e+00> : vector<8xf32>
    %932 = vector.multi_reduction <add>, %931, %cst_324 [1] : vector<8x8xf32> to vector<8xf32>
    %933 = vector.shape_cast %932 : vector<8xf32> to vector<8x1xf32>
    %934 = tpu.reciprocal %933 {approx = true} : vector<8x1xf32> -> vector<8x1xf32>
    %935 = vector.broadcast %934 : vector<8x1xf32> to vector<8x8xf32>
    %936 = arith.mulf %931, %935 : vector<8x8xf32>
    %cst_325 = arith.constant dense<0.000000e+00> : vector<8x8xf32>
    %937 = tpu.matmul %936, %919, %cst_325 {dimension_numbers = #tpu.dot_dimension_numbers<[1], [0], [0], [1], [0, 0, 1, 1], [], []>} : vector<8x8xf32>, vector<8x8xf32>, vector<8x8xf32> -> vector<8x8xf32>
    %938 = vector.extract_strided_slice %878 {offsets = [8, 0], sizes = [8, 32], strides = [1, 1]} : vector<32x32xf32> to vector<8x32xf32>
    %cst_326 = arith.constant dense<0.000000e+00> : vector<8x32xf32>
    %939 = tpu.matmul %937, %938, %cst_326 {dimension_numbers = #tpu.dot_dimension_numbers<[1], [0], [0], [1], [0, 0, 1, 1], [], []>} : vector<8x8xf32>, vector<8x32xf32>, vector<8x32xf32> -> vector<8x32xf32>
    %940 = arith.addf %916, %939 : vector<8x32xf32>
    %941 = vector.extract_strided_slice %884 {offsets = [0, 16], sizes = [8, 8], strides = [1, 1]} : vector<8x32xf32> to vector<8x8xf32>
    %942 = vector.extract_strided_slice %890 {offsets = [0, 16], sizes = [8, 8], strides = [1, 1]} : vector<8x32xf32> to vector<8x8xf32>
    %943 = vector.extract_strided_slice %891 {offsets = [0, 16], sizes = [8, 8], strides = [1, 1]} : vector<8x32xf32> to vector<8x8xf32>
    %cst_327 = arith.constant dense<0.000000e+00> : vector<8x8xf32>
    %944 = tpu.matmul %941, %942, %cst_327 {dimension_numbers = #tpu.dot_dimension_numbers<[1], [1], [0], [0], [0, 0, 1, 0], [], []>} : vector<8x8xf32>, vector<8x8xf32>, vector<8x8xf32> -> vector<8x8xf32>
    %cst_328 = arith.constant 0.353553385 : f32
    %945 = vector.broadcast %cst_328 : f32 to vector<8x8xf32>
    %946 = arith.mulf %944, %945 : vector<8x8xf32>
    %cst_329 = arith.constant -1.000000e+09 : f32
    %947 = vector.shape_cast %7 : vector<1x8xi1> to vector<1x8xi1>
    %948 = vector.broadcast %947 : vector<1x8xi1> to vector<8x8xi1>
    %949 = vector.broadcast %cst_329 : f32 to vector<8x8xf32>
    %950 = arith.select %948, %946, %949 : vector<8x8xi1>, vector<8x8xf32>
    %cst_330 = arith.constant dense<0xFF800000> : vector<8xf32>
    %951 = vector.multi_reduction <maximumf>, %950, %cst_330 [1] : vector<8x8xf32> to vector<8xf32>
    %952 = vector.shape_cast %951 : vector<8xf32> to vector<8x1xf32>
    %953 = vector.broadcast %952 : vector<8x1xf32> to vector<8x8xf32>
    %954 = arith.subf %950, %953 : vector<8x8xf32>
    %955 = math.exp %954 : vector<8x8xf32>
    %cst_331 = arith.constant dense<0.000000e+00> : vector<8xf32>
    %956 = vector.multi_reduction <add>, %955, %cst_331 [1] : vector<8x8xf32> to vector<8xf32>
    %957 = vector.shape_cast %956 : vector<8xf32> to vector<8x1xf32>
    %958 = tpu.reciprocal %957 {approx = true} : vector<8x1xf32> -> vector<8x1xf32>
    %959 = vector.broadcast %958 : vector<8x1xf32> to vector<8x8xf32>
    %960 = arith.mulf %955, %959 : vector<8x8xf32>
    %cst_332 = arith.constant dense<0.000000e+00> : vector<8x8xf32>
    %961 = tpu.matmul %960, %943, %cst_332 {dimension_numbers = #tpu.dot_dimension_numbers<[1], [0], [0], [1], [0, 0, 1, 1], [], []>} : vector<8x8xf32>, vector<8x8xf32>, vector<8x8xf32> -> vector<8x8xf32>
    %962 = vector.extract_strided_slice %878 {offsets = [16, 0], sizes = [8, 32], strides = [1, 1]} : vector<32x32xf32> to vector<8x32xf32>
    %cst_333 = arith.constant dense<0.000000e+00> : vector<8x32xf32>
    %963 = tpu.matmul %961, %962, %cst_333 {dimension_numbers = #tpu.dot_dimension_numbers<[1], [0], [0], [1], [0, 0, 1, 1], [], []>} : vector<8x8xf32>, vector<8x32xf32>, vector<8x32xf32> -> vector<8x32xf32>
    %964 = arith.addf %940, %963 : vector<8x32xf32>
    %965 = vector.extract_strided_slice %884 {offsets = [0, 24], sizes = [8, 8], strides = [1, 1]} : vector<8x32xf32> to vector<8x8xf32>
    %966 = vector.extract_strided_slice %890 {offsets = [0, 24], sizes = [8, 8], strides = [1, 1]} : vector<8x32xf32> to vector<8x8xf32>
    %967 = vector.extract_strided_slice %891 {offsets = [0, 24], sizes = [8, 8], strides = [1, 1]} : vector<8x32xf32> to vector<8x8xf32>
    %cst_334 = arith.constant dense<0.000000e+00> : vector<8x8xf32>
    %968 = tpu.matmul %965, %966, %cst_334 {dimension_numbers = #tpu.dot_dimension_numbers<[1], [1], [0], [0], [0, 0, 1, 0], [], []>} : vector<8x8xf32>, vector<8x8xf32>, vector<8x8xf32> -> vector<8x8xf32>
    %cst_335 = arith.constant 0.353553385 : f32
    %969 = vector.broadcast %cst_335 : f32 to vector<8x8xf32>
    %970 = arith.mulf %968, %969 : vector<8x8xf32>
    %cst_336 = arith.constant -1.000000e+09 : f32
    %971 = vector.shape_cast %7 : vector<1x8xi1> to vector<1x8xi1>
    %972 = vector.broadcast %971 : vector<1x8xi1> to vector<8x8xi1>
    %973 = vector.broadcast %cst_336 : f32 to vector<8x8xf32>
    %974 = arith.select %972, %970, %973 : vector<8x8xi1>, vector<8x8xf32>
    %cst_337 = arith.constant dense<0xFF800000> : vector<8xf32>
    %975 = vector.multi_reduction <maximumf>, %974, %cst_337 [1] : vector<8x8xf32> to vector<8xf32>
    %976 = vector.shape_cast %975 : vector<8xf32> to vector<8x1xf32>
    %977 = vector.broadcast %976 : vector<8x1xf32> to vector<8x8xf32>
    %978 = arith.subf %974, %977 : vector<8x8xf32>
    %979 = math.exp %978 : vector<8x8xf32>
    %cst_338 = arith.constant dense<0.000000e+00> : vector<8xf32>
    %980 = vector.multi_reduction <add>, %979, %cst_338 [1] : vector<8x8xf32> to vector<8xf32>
    %981 = vector.shape_cast %980 : vector<8xf32> to vector<8x1xf32>
    %982 = tpu.reciprocal %981 {approx = true} : vector<8x1xf32> -> vector<8x1xf32>
    %983 = vector.broadcast %982 : vector<8x1xf32> to vector<8x8xf32>
    %984 = arith.mulf %979, %983 : vector<8x8xf32>
    %cst_339 = arith.constant dense<0.000000e+00> : vector<8x8xf32>
    %985 = tpu.matmul %984, %967, %cst_339 {dimension_numbers = #tpu.dot_dimension_numbers<[1], [0], [0], [1], [0, 0, 1, 1], [], []>} : vector<8x8xf32>, vector<8x8xf32>, vector<8x8xf32> -> vector<8x8xf32>
    %986 = vector.extract_strided_slice %878 {offsets = [24, 0], sizes = [8, 32], strides = [1, 1]} : vector<32x32xf32> to vector<8x32xf32>
    %cst_340 = arith.constant dense<0.000000e+00> : vector<8x32xf32>
    %987 = tpu.matmul %985, %986, %cst_340 {dimension_numbers = #tpu.dot_dimension_numbers<[1], [0], [0], [1], [0, 0, 1, 1], [], []>} : vector<8x8xf32>, vector<8x32xf32>, vector<8x32xf32> -> vector<8x32xf32>
    %988 = arith.addf %964, %987 : vector<8x32xf32>
    %989 = vector.broadcast %879 : vector<1x32xf32> to vector<8x32xf32>
    %990 = arith.addf %988, %989 : vector<8x32xf32>
    %991 = arith.addf %851, %990 : vector<8x32xf32>
    %992 = vector.extract_strided_slice %723 {offsets = [4, 0], sizes = [1, 32], strides = [1, 1]} : vector<6x32xf32> to vector<1x32xf32>
    %993 = vector.extract_strided_slice %723 {offsets = [5, 0], sizes = [1, 32], strides = [1, 1]} : vector<6x32xf32> to vector<1x32xf32>
    %cst_341 = arith.constant dense<0.000000e+00> : vector<8xf32>
    %994 = vector.multi_reduction <add>, %991, %cst_341 [1] : vector<8x32xf32> to vector<8xf32>
    %995 = vector.shape_cast %994 : vector<8xf32> to vector<8x1xf32>
    %cst_342 = arith.constant 3.200000e+01 : f32
    %996 = vector.broadcast %cst_342 : f32 to vector<8x1xf32>
    %997 = arith.divf %995, %996 : vector<8x1xf32>
    %998 = vector.broadcast %997 : vector<8x1xf32> to vector<8x32xf32>
    %999 = arith.subf %991, %998 : vector<8x32xf32>
    %1000 = arith.mulf %999, %999 : vector<8x32xf32>
    %cst_343 = arith.constant dense<0.000000e+00> : vector<8xf32>
    %1001 = vector.multi_reduction <add>, %1000, %cst_343 [1] : vector<8x32xf32> to vector<8xf32>
    %1002 = vector.shape_cast %1001 : vector<8xf32> to vector<8x1xf32>
    %cst_344 = arith.constant 0.0322580636 : f32
    %1003 = vector.broadcast %cst_344 : f32 to vector<8x1xf32>
    %1004 = arith.mulf %1002, %1003 : vector<8x1xf32>
    %1005 = vector.broadcast %992 : vector<1x32xf32> to vector<8x32xf32>
    %1006 = arith.mulf %1005, %999 : vector<8x32xf32>
    %1007 = math.sqrt %1004 : vector<8x1xf32>
    %cst_345 = arith.constant 9.99999997E-7 : f32
    %1008 = vector.broadcast %cst_345 : f32 to vector<8x1xf32>
    %1009 = arith.addf %1007, %1008 : vector<8x1xf32>
    %1010 = vector.broadcast %1009 : vector<8x1xf32> to vector<8x32xf32>
    %1011 = arith.divf %1006, %1010 : vector<8x32xf32>
    %1012 = vector.broadcast %993 : vector<1x32xf32> to vector<8x32xf32>
    %1013 = arith.addf %1011, %1012 : vector<8x32xf32>
    %c1_346 = arith.constant 1 : index
    %c0_347 = arith.constant 0 : index
    %c0_348 = arith.constant 0 : index
    %1014 = vector.load %arg15[%c1_346, %c0_347, %c0_348] : memref<2x32x64xf32, #tpu.memory_space<vmem>>, vector<1x32x64xf32>
    %1015 = vector.shape_cast %1014 : vector<1x32x64xf32> to vector<32x64xf32>
    %1016 = vector.extract_strided_slice %725 {offsets = [4, 0], sizes = [1, 64], strides = [1, 1]} : vector<6x96xf32> to vector<1x64xf32>
    %c1_349 = arith.constant 1 : index
    %c0_350 = arith.constant 0 : index
    %c0_351 = arith.constant 0 : index
    %1017 = vector.load %arg16[%c1_349, %c0_350, %c0_351] : memref<2x64x32xf32, #tpu.memory_space<vmem>>, vector<1x64x32xf32>
    %1018 = vector.shape_cast %1017 : vector<1x64x32xf32> to vector<64x32xf32>
    %1019 = vector.extract_strided_slice %725 {offsets = [5, 0], sizes = [1, 32], strides = [1, 1]} : vector<6x96xf32> to vector<1x32xf32>
    %cst_352 = arith.constant dense<0.000000e+00> : vector<8x64xf32>
    %1020 = tpu.matmul %1013, %1015, %cst_352 {dimension_numbers = #tpu.dot_dimension_numbers<[1], [0], [0], [1], [0, 0, 1, 1], [], []>} : vector<8x32xf32>, vector<32x64xf32>, vector<8x64xf32> -> vector<8x64xf32>
    %1021 = vector.broadcast %1016 : vector<1x64xf32> to vector<8x64xf32>
    %1022 = arith.addf %1020, %1021 : vector<8x64xf32>
    %cst_353 = arith.constant 0.000000e+00 : f32
    %1023 = vector.broadcast %cst_353 : f32 to vector<8x64xf32>
    %1024 = arith.maximumf %1022, %1023 : vector<8x64xf32>
    %cst_354 = arith.constant dense<0.000000e+00> : vector<8x32xf32>
    %1025 = tpu.matmul %1024, %1018, %cst_354 {dimension_numbers = #tpu.dot_dimension_numbers<[1], [0], [0], [1], [0, 0, 1, 1], [], []>} : vector<8x64xf32>, vector<64x32xf32>, vector<8x32xf32> -> vector<8x32xf32>
    %1026 = vector.broadcast %1019 : vector<1x32xf32> to vector<8x32xf32>
    %1027 = arith.addf %1025, %1026 : vector<8x32xf32>
    %1028 = arith.addf %991, %1027 : vector<8x32xf32>
    %c1_355 = arith.constant 1 : index
    %c0_356 = arith.constant 0 : index
    %c0_357 = arith.constant 0 : index
    %1029 = vector.load %arg19[%c1_355, %c0_356, %c0_357] : memref<3x2x32xf32, #tpu.memory_space<vmem>>, vector<1x2x32xf32>
    %1030 = vector.shape_cast %1029 : vector<1x2x32xf32> to vector<2x32xf32>
    %1031 = vector.extract_strided_slice %1030 {offsets = [0, 0], sizes = [1, 32], strides = [1, 1]} : vector<2x32xf32> to vector<1x32xf32>
    %1032 = vector.extract_strided_slice %1030 {offsets = [1, 0], sizes = [1, 32], strides = [1, 1]} : vector<2x32xf32> to vector<1x32xf32>
    %cst_358 = arith.constant dense<0.000000e+00> : vector<8xf32>
    %1033 = vector.multi_reduction <add>, %697, %cst_358 [1] : vector<8x32xf32> to vector<8xf32>
    %1034 = vector.shape_cast %1033 : vector<8xf32> to vector<8x1xf32>
    %cst_359 = arith.constant 3.200000e+01 : f32
    %1035 = vector.broadcast %cst_359 : f32 to vector<8x1xf32>
    %1036 = arith.divf %1034, %1035 : vector<8x1xf32>
    %1037 = vector.broadcast %1036 : vector<8x1xf32> to vector<8x32xf32>
    %1038 = arith.subf %697, %1037 : vector<8x32xf32>
    %1039 = arith.mulf %1038, %1038 : vector<8x32xf32>
    %cst_360 = arith.constant dense<0.000000e+00> : vector<8xf32>
    %1040 = vector.multi_reduction <add>, %1039, %cst_360 [1] : vector<8x32xf32> to vector<8xf32>
    %1041 = vector.shape_cast %1040 : vector<8xf32> to vector<8x1xf32>
    %cst_361 = arith.constant 0.0322580636 : f32
    %1042 = vector.broadcast %cst_361 : f32 to vector<8x1xf32>
    %1043 = arith.mulf %1041, %1042 : vector<8x1xf32>
    %1044 = vector.broadcast %1031 : vector<1x32xf32> to vector<8x32xf32>
    %1045 = arith.mulf %1044, %1038 : vector<8x32xf32>
    %1046 = math.sqrt %1043 : vector<8x1xf32>
    %cst_362 = arith.constant 9.99999997E-7 : f32
    %1047 = vector.broadcast %cst_362 : f32 to vector<8x1xf32>
    %1048 = arith.addf %1046, %1047 : vector<8x1xf32>
    %1049 = vector.broadcast %1048 : vector<8x1xf32> to vector<8x32xf32>
    %1050 = arith.divf %1045, %1049 : vector<8x32xf32>
    %1051 = vector.broadcast %1032 : vector<1x32xf32> to vector<8x32xf32>
    %1052 = arith.addf %1050, %1051 : vector<8x32xf32>
    %c0_363 = arith.constant 0 : index
    %c0_364 = arith.constant 0 : index
    %c0_365 = arith.constant 0 : index
    %1053 = vector.load %arg20[%c0_363, %c0_364, %c0_365] : memref<1x8x32xf32, #tpu.memory_space<vmem>>, vector<1x8x32xf32>
    %1054 = vector.shape_cast %1053 : vector<1x8x32xf32> to vector<8x32xf32>
    %1055 = vector.shape_cast %1052 : vector<8x32xf32> to vector<1x8x32xf32>
    tpu.vector_store %arg20[%c0_363, %c0_364, %c0_365], %1055 {strides = array<i32>} : memref<1x8x32xf32, #tpu.memory_space<vmem>>, vector<1x8x32xf32>,
    %c2 = arith.constant 2 : index
    %c0_366 = arith.constant 0 : index
    %c0_367 = arith.constant 0 : index
    %1056 = vector.load %arg19[%c2, %c0_366, %c0_367] : memref<3x2x32xf32, #tpu.memory_space<vmem>>, vector<1x2x32xf32>
    %1057 = vector.shape_cast %1056 : vector<1x2x32xf32> to vector<2x32xf32>
    %1058 = vector.extract_strided_slice %1057 {offsets = [0, 0], sizes = [1, 32], strides = [1, 1]} : vector<2x32xf32> to vector<1x32xf32>
    %1059 = vector.extract_strided_slice %1057 {offsets = [1, 0], sizes = [1, 32], strides = [1, 1]} : vector<2x32xf32> to vector<1x32xf32>
    %cst_368 = arith.constant dense<0.000000e+00> : vector<8xf32>
    %1060 = vector.multi_reduction <add>, %1028, %cst_368 [1] : vector<8x32xf32> to vector<8xf32>
    %1061 = vector.shape_cast %1060 : vector<8xf32> to vector<8x1xf32>
    %cst_369 = arith.constant 3.200000e+01 : f32
    %1062 = vector.broadcast %cst_369 : f32 to vector<8x1xf32>
    %1063 = arith.divf %1061, %1062 : vector<8x1xf32>
    %1064 = vector.broadcast %1063 : vector<8x1xf32> to vector<8x32xf32>
    %1065 = arith.subf %1028, %1064 : vector<8x32xf32>
    %1066 = arith.mulf %1065, %1065 : vector<8x32xf32>
    %cst_370 = arith.constant dense<0.000000e+00> : vector<8xf32>
    %1067 = vector.multi_reduction <add>, %1066, %cst_370 [1] : vector<8x32xf32> to vector<8xf32>
    %1068 = vector.shape_cast %1067 : vector<8xf32> to vector<8x1xf32>
    %cst_371 = arith.constant 0.0322580636 : f32
    %1069 = vector.broadcast %cst_371 : f32 to vector<8x1xf32>
    %1070 = arith.mulf %1068, %1069 : vector<8x1xf32>
    %1071 = vector.broadcast %1058 : vector<1x32xf32> to vector<8x32xf32>
    %1072 = arith.mulf %1071, %1065 : vector<8x32xf32>
    %1073 = math.sqrt %1070 : vector<8x1xf32>
    %cst_372 = arith.constant 9.99999997E-7 : f32
    %1074 = vector.broadcast %cst_372 : f32 to vector<8x1xf32>
    %1075 = arith.addf %1073, %1074 : vector<8x1xf32>
    %1076 = vector.broadcast %1075 : vector<8x1xf32> to vector<8x32xf32>
    %1077 = arith.divf %1072, %1076 : vector<8x32xf32>
    %1078 = vector.broadcast %1059 : vector<1x32xf32> to vector<8x32xf32>
    %1079 = arith.addf %1077, %1078 : vector<8x32xf32>
    %c0_373 = arith.constant 0 : index
    %c0_374 = arith.constant 0 : index
    %c0_375 = arith.constant 0 : index
    %1080 = vector.load %arg21[%c0_373, %c0_374, %c0_375] : memref<1x8x32xf32, #tpu.memory_space<vmem>>, vector<1x8x32xf32>
    %1081 = vector.shape_cast %1080 : vector<1x8x32xf32> to vector<8x32xf32>
    %1082 = vector.shape_cast %1079 : vector<8x32xf32> to vector<1x8x32xf32>
    tpu.vector_store %arg21[%c0_373, %c0_374, %c0_375], %1082 {strides = array<i32>} : memref<1x8x32xf32, #tpu.memory_space<vmem>>, vector<1x8x32xf32>,
    return
  }
  func.func @transform_0(%arg0: i32) -> (i32, i32, i32) {
    %c0_i32 = arith.constant 0 : i32
    %c0_i32_0 = arith.constant 0 : i32
    %c0_i32_1 = arith.constant 0 : i32
    return %arg0, %c0_i32, %c0_i32_0 : i32, i32, i32
  }
  func.func @transform_1(%arg0: i32) -> (i32, i32, i32) {
    %c0_i32 = arith.constant 0 : i32
    %c0_i32_0 = arith.constant 0 : i32
    %c0_i32_1 = arith.constant 0 : i32
    return %arg0, %c0_i32, %c0_i32_0 : i32, i32, i32
  }
  func.func @transform_2(%arg0: i32) -> (i32, i32, i32) {
    %c0_i32 = arith.constant 0 : i32
    %c0_i32_0 = arith.constant 0 : i32
    %c0_i32_1 = arith.constant 0 : i32
    return %arg0, %c0_i32, %c0_i32_0 : i32, i32, i32
  }
  func.func @transform_3(%arg0: i32) -> (i32, i32, i32) {
    %c0_i32 = arith.constant 0 : i32
    %c0_i32_0 = arith.constant 0 : i32
    %c0_i32_1 = arith.constant 0 : i32
    return %arg0, %c0_i32, %c0_i32_0 : i32, i32, i32
  }
  func.func @transform_4(%arg0: i32) -> (i32, i32, i32) {
    %c0_i32 = arith.constant 0 : i32
    %c0_i32_0 = arith.constant 0 : i32
    %c0_i32_1 = arith.constant 0 : i32
    %c0_i32_2 = arith.constant 0 : i32
    return %c0_i32, %c0_i32_0, %c0_i32_1 : i32, i32, i32
  }
  func.func @transform_5(%arg0: i32) -> (i32, i32, i32) {
    %c0_i32 = arith.constant 0 : i32
    %c0_i32_0 = arith.constant 0 : i32
    %c0_i32_1 = arith.constant 0 : i32
    %c0_i32_2 = arith.constant 0 : i32
    return %c0_i32, %c0_i32_0, %c0_i32_1 : i32, i32, i32
  }
  func.func @transform_6(%arg0: i32) -> (i32, i32, i32) {
    %c0_i32 = arith.constant 0 : i32
    %c0_i32_0 = arith.constant 0 : i32
    %c0_i32_1 = arith.constant 0 : i32
    %c0_i32_2 = arith.constant 0 : i32
    return %c0_i32, %c0_i32_0, %c0_i32_1 : i32, i32, i32
  }
  func.func @transform_7(%arg0: i32) -> (i32, i32, i32) {
    %c0_i32 = arith.constant 0 : i32
    %c0_i32_0 = arith.constant 0 : i32
    %c0_i32_1 = arith.constant 0 : i32
    %c0_i32_2 = arith.constant 0 : i32
    return %c0_i32, %c0_i32_0, %c0_i32_1 : i32, i32, i32
  }
  func.func @transform_8(%arg0: i32) -> (i32, i32, i32) {
    %c0_i32 = arith.constant 0 : i32
    %c0_i32_0 = arith.constant 0 : i32
    %c0_i32_1 = arith.constant 0 : i32
    %c0_i32_2 = arith.constant 0 : i32
    return %c0_i32, %c0_i32_0, %c0_i32_1 : i32, i32, i32
  }
  func.func @transform_9(%arg0: i32) -> (i32, i32, i32) {
    %c0_i32 = arith.constant 0 : i32
    %c0_i32_0 = arith.constant 0 : i32
    %c0_i32_1 = arith.constant 0 : i32
    %c0_i32_2 = arith.constant 0 : i32
    return %c0_i32, %c0_i32_0, %c0_i32_1 : i32, i32, i32
  }
  func.func @transform_10(%arg0: i32) -> (i32, i32, i32) {
    %c0_i32 = arith.constant 0 : i32
    %c0_i32_0 = arith.constant 0 : i32
    %c0_i32_1 = arith.constant 0 : i32
    %c0_i32_2 = arith.constant 0 : i32
    return %c0_i32, %c0_i32_0, %c0_i32_1 : i32, i32, i32
  }
  func.func @transform_11(%arg0: i32) -> (i32, i32, i32) {
    %c0_i32 = arith.constant 0 : i32
    %c0_i32_0 = arith.constant 0 : i32
    %c0_i32_1 = arith.constant 0 : i32
    %c0_i32_2 = arith.constant 0 : i32
    return %c0_i32, %c0_i32_0, %c0_i32_1 : i32, i32, i32
  }
  func.func @transform_12(%arg0: i32) -> (i32, i32, i32) {
    %c0_i32 = arith.constant 0 : i32
    %c0_i32_0 = arith.constant 0 : i32
    %c0_i32_1 = arith.constant 0 : i32
    %c0_i32_2 = arith.constant 0 : i32
    return %c0_i32, %c0_i32_0, %c0_i32_1 : i32, i32, i32
  }
  func.func @transform_13(%arg0: i32) -> (i32, i32, i32) {
    %c0_i32 = arith.constant 0 : i32
    %c0_i32_0 = arith.constant 0 : i32
    %c0_i32_1 = arith.constant 0 : i32
    %c0_i32_2 = arith.constant 0 : i32
    return %c0_i32, %c0_i32_0, %c0_i32_1 : i32, i32, i32
  }
  func.func @transform_14(%arg0: i32) -> (i32, i32, i32) {
    %c0_i32 = arith.constant 0 : i32
    %c0_i32_0 = arith.constant 0 : i32
    %c0_i32_1 = arith.constant 0 : i32
    %c0_i32_2 = arith.constant 0 : i32
    return %c0_i32, %c0_i32_0, %c0_i32_1 : i32, i32, i32
  }
  func.func @transform_15(%arg0: i32) -> (i32, i32, i32) {
    %c0_i32 = arith.constant 0 : i32
    %c0_i32_0 = arith.constant 0 : i32
    %c0_i32_1 = arith.constant 0 : i32
    %c0_i32_2 = arith.constant 0 : i32
    return %c0_i32, %c0_i32_0, %c0_i32_1 : i32, i32, i32
  }
  func.func @transform_16(%arg0: i32) -> (i32, i32, i32) {
    %c0_i32 = arith.constant 0 : i32
    %c0_i32_0 = arith.constant 0 : i32
    %c0_i32_1 = arith.constant 0 : i32
    %c0_i32_2 = arith.constant 0 : i32
    return %c0_i32, %c0_i32_0, %c0_i32_1 : i32, i32, i32
  }
  func.func @transform_17(%arg0: i32) -> (i32, i32, i32) {
    %c0_i32 = arith.constant 0 : i32
    %c0_i32_0 = arith.constant 0 : i32
    %c0_i32_1 = arith.constant 0 : i32
    %c0_i32_2 = arith.constant 0 : i32
    return %c0_i32, %c0_i32_0, %c0_i32_1 : i32, i32, i32
  }
  func.func @transform_18(%arg0: i32) -> (i32, i32, i32) {
    %c0_i32 = arith.constant 0 : i32
    %c0_i32_0 = arith.constant 0 : i32
    %c0_i32_1 = arith.constant 0 : i32
    %c0_i32_2 = arith.constant 0 : i32
    return %c0_i32, %c0_i32_0, %c0_i32_1 : i32, i32, i32
  }
  func.func @transform_19(%arg0: i32) -> (i32, i32, i32) {
    %c0_i32 = arith.constant 0 : i32
    %c0_i32_0 = arith.constant 0 : i32
    %c0_i32_1 = arith.constant 0 : i32
    return %arg0, %c0_i32, %c0_i32_0 : i32, i32, i32
  }
  func.func @transform_20(%arg0: i32) -> (i32, i32, i32) {
    %c0_i32 = arith.constant 0 : i32
    %c0_i32_0 = arith.constant 0 : i32
    %c0_i32_1 = arith.constant 0 : i32
    return %arg0, %c0_i32, %c0_i32_0 : i32, i32, i32
  }
}

</mosaic_0001>

<bundles_post_ra>
// kernel: _lambda_.1
= control target key start
LH: loop header
LB: loop body
LE: loop exit
PB: predicated region body
PF: predicated region fallthrough
CT: control target
= control target key end

     0   :  { %s12024_s0 = inlined_call_operand.vmem [shape: f32[2,8,32], index: 0, kind: input, shape index: {}]   ;;  %s12025_s1 = inlined_call_operand.hbm [shape: f32[2,8,32], index: 1, kind: input, shape index: {}]   ;;  %s12026_s2 = inlined_call_operand.hbm [shape: f32[2,1,8], index: 2, kind: input, shape index: {}]   ;;  %s12027_s3 = inlined_call_operand.hbm [shape: f32[2,1,8], index: 3, kind: input, shape index: {}]   ;;  %s12028_s4 = inlined_call_operand.hbm [shape: f32[2,32,96], index: 4, kind: input, shape index: {}]   ;;  %s12029_s5 = inlined_call_operand.hbm [shape: f32[2,32,32], index: 5, kind: input, shape index: {}]   ;;  %s12030_s6 = inlined_call_operand.hbm [shape: f32[2,32,64], index: 6, kind: input, shape index: {}]   ;;  %s12031_s7 = inlined_call_operand.hbm [shape: f32[2,64,32], index: 7, kind: input, shape index: {}]   ;;  %s12032_s8 = inlined_call_operand.vmem [shape: f32[2,4,32], index: 8, kind: input, shape index: {}]   ;;  %s12033_s9 = inlined_call_operand.vmem [shape: f32[2,4,96], index: 9, kind: input, shape index: {}]   ;;  %s12034_s10 = inlined_call_operand.hbm [shape: f32[2,32,96], index: 10, kind: input, shape index: {}]   ;;  %s12035_s11 = inlined_call_operand.hbm [shape: f32[2,32,96], index: 11, kind: input, shape index: {}]   ;;  %s12036_s12 = inlined_call_operand.hbm [shape: f32[2,32,32], index: 12, kind: input, shape index: {}]   ;;  %s12037_s13 = inlined_call_operand.hbm [shape: f32[2,32,32], index: 13, kind: input, shape index: {}]   ;;  %s12038_s14 = inlined_call_operand.hbm [shape: f32[2,32,64], index: 14, kind: input, shape index: {}]   ;;  %s12039_s15 = inlined_call_operand.hbm [shape: f32[2,64,32], index: 15, kind: input, shape index: {}]   ;;  %s12040_s16 = inlined_call_operand.vmem [shape: f32[2,6,32], index: 16, kind: input, shape index: {}]   ;;  %s12041_s17 = inlined_call_operand.vmem [shape: f32[2,6,96], index: 17, kind: input, shape index: {}]   ;;  %s12042_s18 = inlined_call_operand.vmem [shape: f32[3,2,32], index: 18, kind: input, shape index: {}]   ;;  %s12043_s19 = inlined_call_operand.hbm [shape: f32[2,8,32], index: 19, kind: output, shape index: {0}]   ;;  %s12044_s20 = inlined_call_operand.hbm [shape: f32[2,8,32], index: 20, kind: output, shape index: {1}]  }
   0x1   :  { %12079 = sst [smem:[#allocation41_spill]] %s12024_s0 }
   0x2   :  { %12080 = sst [smem:[#allocation42_spill]] %s12025_s1 }
   0x3   :  { %12081 = sst [smem:[#allocation43_spill]] %s12026_s2 }
   0x4   :  { %12082 = sst [smem:[#allocation44_spill]] %s12027_s3 }
   0x5   :  { %12083 = sst [smem:[#allocation45_spill]] %s12028_s4 }
   0x6   :  { %12084 = sst [smem:[#allocation46_spill]] %s12029_s5 }
   0x7   :  { %12085 = sst [smem:[#allocation47_spill]] %s12030_s6 }
   0x8   :  { %12086 = sst [smem:[#allocation48_spill]] %s12031_s7 }
   0x9   :  { %12087 = sst [smem:[#allocation49_spill]] %s12032_s8 }
   0xa   :  { %12088 = sst [smem:[#allocation50_spill]] %s12033_s9 }
   0xb   :  { %12089 = sst [smem:[#allocation51_spill]] %s12034_s10 }
   0xc   :  { %12090 = sst [smem:[#allocation52_spill]] %s12036_s12 }
   0xd   :  { %12091 = sst [smem:[#allocation53_spill]] %s12038_s14 }
   0xe   :  { %12092 = sst [smem:[#allocation54_spill]] %s12040_s16 }
   0xf   :  { %12093 = sst [smem:[#allocation55_spill]] %s12041_s17 }
  0x10   :  { %12094 = sst [smem:[#allocation56_spill]] %s12042_s18 }
  0x11   :  { %12095 = sst [smem:[#allocation57_spill]] %s12043_s19 }
  0x12   :  { %12096 = sst [smem:[#allocation58_spill]] %s12044_s20 }
  0x13   :  { %26 = vsyncpa [#allocation3], 0 }
  0x14   :  { %28 = vsyncpa [#allocation3 + $0x1], 0 }
  0x15   :  { %29 = vsyncpa [#allocation6], 0 }
  0x16   :  { %31 = vsyncpa [#allocation6 + $0x1], 0 }
  0x17   :  { %32 = vsyncpa [#allocation9], 0 }
  0x18   :  { %33 = vsyncpa [#allocation12], 0 }
  0x19   :  { %34 = vsyncpa [#allocation15], 0 }
  0x1a   :  { %35 = vsyncpa [#allocation18], 0 }
  0x1b   :  { %36 = vsyncpa [#allocation21], 0 }
  0x1c   :  { %37 = vsyncpa [#allocation4], 0 }
  0x1d   :  { %39 = vsyncpa [#allocation4 + $0x1], 0 }
  0x1e   :  { %40 = vsyncpa [#allocation25], 0 }
  0x1f   :  { %42 = vsyncpa [#allocation25 + $0x1], 0  ;;  %s10647_s1 = smov 0   ;;  %s10649_s22 = smov 0  }
  0x20   :  { %s10651_s23 = smov 0   ;;  %s10653_s24 = smov 0  }
  0x21 LB: > { %12097 = sst [smem:[#allocation35_spill]] %s10497_s1  ;;  %s10511_s2 = smov [#allocation8]   ;;  %s10509_s24 = sphi %s10653_s24, %s12159_s24   ;;  %s10505_s23 = sphi %s10651_s23, %s12161_s23   ;;  %s10501_s22 = sphi %s10649_s22, %s12163_s22   ;;  %s10497_s1 = sphi %s10647_s1, %s12162_s1  }
  0x22   : > { %12098 = sst [smem:[#allocation36_spill]] %s10505_s23  ;;  %s536_s25 = sshll.u32 %s10511_s2, 4  ;;  %s537_s25 = int_to_ptr.vmem [resolvable:$true] %s536_s25 }
  0x23   : > { %s10668_s3 = sadd.s32 4294967295, %s10509_s24   ;;  %p8758_p0 = scmp.ge.s32.totalorder %s10509_s24, 1 }
  0x24   : > { %p12064_p1 = scmp.eq.s32.totalorder %s10668_s3, 0  ;;  %p524_p2 = scmp.lt.s32.totalorder %s10509_s24, 3 }
  0x25   : > { %s10512_s27 = smov [#allocation11]   ;;  %s10513_s29 = smov [#allocation14]  }
  0x26   : > { %p10673_p3 = pnand %p8758_p0, %p524_p2  ;;  %s562_s28 = sshll.u32 %s10512_s27, 4  ;;  %s10686_s28 = int_to_ptr.vmem [resolvable:$true] %s562_s28 }
  0x27   : > { %s594_s30 = sshll.u32 %s10513_s29, 4  ;;  %s10058_s21 = scalar_lea.vmem %s537_s25, 1024  ;;  %s10688_s30 = int_to_ptr.vmem [resolvable:$true] %s594_s30 }
  0x28   : > { %s12099_s26 = scalar_select %p10673_p3, 1, 0 }
  0x29   : > { %p9771_p5 = pneg %p10673_p3  ;;  %p10059_p8 = scmp.ne.s32.totalorder %s537_s25, %s10058_s21 }
  0x2a   : > { %p10066_p11 = scmp.lt.s32.totalorder %s537_s25, %s537_s25  ;;  %p10067_p12 = scmp.lt.s32.totalorder %s10058_s21, %s10058_s21 }
  0x2b   : > { %p10682_p6 = pnand %p9771_p5, %p12064_p1 }
  0x2c   : > { %p10068_p13 = por %p10067_p12, %p10066_p11 }
  0x2d   : > { %s12100_s4 = scalar_select %p10682_p6, 1, 0 }
  0x2e   : > { %p10692_p7 = pneg %p10682_p6 }
  0x30   : > { %s12101_s0 = scalar_select %p10692_p7, 1, 0 }
  0x31   : > { %p10061_p9 = pnand %p10059_p8, %p10692_p7 }
  0x33   : > { %p10062_p10 = pneg %p10061_p9 }
  0x35   : > { %p10069_p0 = pnand %p10068_p13, %p10062_p10 }
  0x37   : > { %10072 = shalt.err (!%p10069_p0)
}
  0x38   : > { %s12052_s2 = smov 128   ;;  %s12054_s27 = smov 8  }
  0x39   : > { %s12102_s19 = sld [smem:[#allocation45_spill]]  ;;  %s10084_s18 = scalar_lea.vmem %s10686_s28, 1024 }
  0x3a   : > { %p10085_p2 = scmp.ne.s32.totalorder %s10686_s28, %s10084_s18  ;;  %p10092_p9 = scmp.lt.s32.totalorder %s10686_s28, %s10686_s28 }
  0x3b   : > { %p10093_p10 = scmp.lt.s32.totalorder %s10084_s18, %s10084_s18 }
  0x3c   : > { %p10087_p5 = pnand %p10085_p2, %p10692_p7 }
  0x3d   : > { %p10094_p11 = por %p10093_p10, %p10092_p9 }
  0x3e   : > { %p10088_p8 = pneg %p10087_p5 }
  0x3f   : > { %9774 = dma.hbm_to_vmem [thread:$0]  (!%p10682_p6), %s12102_s19, 1024, %s537_s25, [#allocation9], %s12052_s2, %s12052_s2, %s12054_s27  }
  0x40   : > { %p10095_p12 = pnand %p10094_p11, %p10088_p8 }
  0x42   : > { %10098 = shalt.err (!%p10095_p12)
}
  0x43   : > { %s12103_s6 = sld [smem:[#allocation47_spill]]  ;;  %s10110_s19 = scalar_lea.vmem %s10688_s30, 1024 }
  0x44   : > { %p10111_p13 = scmp.ne.s32.totalorder %s10688_s30, %s10110_s19  ;;  %p10118_p5 = scmp.lt.s32.totalorder %s10688_s30, %s10688_s30 }
  0x45   : > { %p10119_p8 = scmp.lt.s32.totalorder %s10110_s19, %s10110_s19 }
  0x46   : > { %p10113_p0 = pnand %p10111_p13, %p10692_p7 }
  0x47   : > { %p10120_p9 = por %p10119_p8, %p10118_p5 }
  0x48   : > { %p10114_p2 = pneg %p10113_p0 }
  0x49   : > { %9780 = dma.hbm_to_vmem [thread:$0]  (!%p10682_p6), %s12103_s6, 1024, %s10686_s28, [#allocation12], %s12052_s2, %s12052_s2, %s12054_s27  }
  0x4a   : > { %p10121_p10 = pnand %p10120_p9, %p10114_p2 }
  0x4c   : > { %10124 = shalt.err (!%p10121_p10)
}
  0x4d   : > { %s12104_s10 = sld [smem:[#allocation51_spill]]  ;;  %s10516_s28 = smov [#allocation17]  }
  0x4e   : > { %s620_s29 = sshll.u32 %s10516_s28, 4  ;;  %s10517_s21 = smov [#allocation20]   ;;  %s621_s29 = int_to_ptr.vmem [resolvable:$true] %s620_s29 }
  0x4f   : > { %s646_s20 = sshll.u32 %s10517_s21, 4  ;;  %s10136_s19 = scalar_lea.vmem %s621_s29, 1024  ;;  %s647_s20 = int_to_ptr.vmem [resolvable:$true] %s646_s20 }
  0x50   : > { %p10137_p11 = scmp.ne.s32.totalorder %s621_s29, %s10136_s19  ;;  %p10144_p0 = scmp.lt.s32.totalorder %s621_s29, %s621_s29 }
  0x51   : > { %p10145_p2 = scmp.lt.s32.totalorder %s10136_s19, %s10136_s19 }
  0x52   : > { %p10139_p12 = pnand %p10137_p11, %p10692_p7 }
  0x53   : > { %9786 = dma.hbm_to_vmem [thread:$0]  (!%p10682_p6), %s12104_s10, 1024, %s10688_s30, [#allocation15], %s12052_s2, %s12052_s2, %s12054_s27  }
  0x54   : > { %p10140_p13 = pneg %p10139_p12  ;;  %p10146_p5 = por %p10145_p2, %p10144_p0 }
  0x56   : > { %p10147_p8 = pnand %p10146_p5, %p10140_p13 }
  0x58   : > { %10150 = shalt.err (!%p10147_p8)
}
  0x59   : > { %s12105_s12 = sld [smem:[#allocation52_spill]]  ;;  %s10162_s25 = scalar_lea.vmem %s647_s20, 1024 }
  0x5a   : > { %p10163_p9 = scmp.ne.s32.totalorder %s647_s20, %s10162_s25  ;;  %p10170_p12 = scmp.lt.s32.totalorder %s647_s20, %s647_s20 }
  0x5b   : > { %p10171_p0 = scmp.lt.s32.totalorder %s10162_s25, %s10162_s25 }
  0x5c   : > { %p10165_p10 = pnand %p10163_p9, %p10692_p7 }
  0x5d   : > { %p10172_p13 = por %p10171_p0, %p10170_p12 }
  0x5e   : > { %p10166_p11 = pneg %p10165_p10 }
  0x5f   : > { %9792 = dma.hbm_to_vmem [thread:$0]  (!%p10682_p6), %s12105_s12, 1024, %s621_s29, [#allocation18], %s12052_s2, %s12052_s2, %s12054_s27  }
  0x60   : > { %p10173_p2 = pnand %p10172_p13, %p10166_p11 }
  0x62   : > { %10176 = shalt.err (!%p10173_p2)
}
  0x63   : > { %s12106_s14 = sld [smem:[#allocation53_spill]]  ;;  %s8757_s29 = sadd.s32 4294967294, %s10509_s24  }
  0x64   : > { %s10758_s19 = sadd.s32 1, %s10509_s24   ;;  %s81_s30 = sadd.s32 1, %s10505_s23 }
  0x65   : > { %12107 = sst [smem:[#allocation37_spill]] %s10758_s19  ;;  %s78_s18 = ssub.s32 %s10509_s24, %s10758_s19 }
  0x66   : > { %p88_p5 = scmp.ne.s32.totalorder %s10505_s23, %s10501_s22  ;;  %p79_p8 = scmp.eq.s32.totalorder %s78_s18, 0 }
  0x67   : > { %p89_p9 = scmp.eq.s32.totalorder %s10509_s24, 0  ;;  %p94_p10 = scmp.ne.s32.totalorder %s10501_s22, %s10497_s1 }
  0x68   : > { %p485_p11 = scmp.eq.s32.totalorder %s10668_s3, 1  ;;  %p491_p2 = scmp.eq.s32.totalorder %s8757_s29, 1 }
  0x69   : > { %9798 = dma.hbm_to_vmem [thread:$0]  (!%p10682_p6), %s12106_s14, 1024, %s647_s20, [#allocation21], %s12052_s2, %s12052_s2, %s12054_s27  }
  0x6a   : > { %s10770_s25 = scalar_select %p79_p8, %s10505_s23, %s81_s30  }
  0x6b   : > { %p90_p12 = por %p89_p9, %p88_p5  ;;  %p10774_p0 = por %p12064_p1, %p94_p10 }
  0x6c   : > { %12108 = sst [smem:[#allocation38_spill]] %s10770_s25  ;;  %p10778_p13 = por %p485_p11, %p88_p5 }
  0x6d   : > { %s12109_s20 = scalar_select %p10774_p0, 1, 0 }
  0x6e   : > { %s12110_s28 = scalar_select %p10778_p13, 1, 0 }
  0x6f   : > { %p9829_p4 = scmp.lt.s32.totalorder %s10509_s24, 2  ;;  %s10784_s21 = sand.u32 1, %s10505_s23  }
  0x70   : > { %12111 = sst [smem:[#allocation39_spill]] %s12110_s28  ;;  %p10786_p3 = por %p491_p2, %p94_p10 }
  0x71   : > { %s707_s30 = sand.u32 1, %s10509_s24   ;;  %p10791_p8 = pnand %p9829_p4, %p90_p12 }
  0x72   : > { %s12112_s18 = scalar_select %p10786_p3, 1, 0 }
  0x73   : > { %s8772_s27 = sshll.u32 %s10509_s24, 4  ;;  %s12115_s12 = sld [smem:[#allocation43_spill]] }
  0x74   : > { %12113 = sst [smem:[#allocation40_spill]] %s12112_s18  ;;  %s710_s29 = scalar_lea.vmem [#allocation5], %s10784_s21 }
  0x75   : > { %s717_s25 = sshll.u32 %s710_s29, 4  ;;  %s12116_s18 = sld [smem:[#allocation44_spill]]  ;;  %s718_s25 = int_to_ptr.vmem [resolvable:$true] %s717_s25 }
  0x76   : > { %s10807_s28 = scalar_lea.sflag [#allocation6], %s707_s30  ;;  %p10813_p5 = pneg %p10791_p8 }
  0x79   : > { %s10799_s14 = scalar_lea.hbm %s12115_s12, %s8772_s27  ;;  %s10182_s23 = scalar_lea.hbm %s12115_s12, 32 }
  0x7a   : > { %s10177_s17 = scalar_lea.hbm %s10799_s14, 16  ;;  %p10183_p11 = scmp.lt.s32.totalorder %s10799_s14, %s12115_s12 }
  0x7b   : > { %s10805_s1 = scalar_lea.hbm %s12116_s18, %s8772_s27  ;;  %p10178_p4 = scmp.ne.s32.totalorder %s10799_s14, %s10177_s17 }
  0x7c   : > { %p10184_p12 = scmp.lt.s32.totalorder %s10182_s23, %s10177_s17 }
  0x7d   : > { %p10180_p9 = pnand %p10813_p5, %p10178_p4 }
  0x7e   : > { %p10185_p2 = por %p10184_p12, %p10183_p11 }
  0x7f   : > { %p10181_p10 = pneg %p10180_p9 }
  0x81   : > { %p10186_p1 = pnand %p10185_p2, %p10181_p10 }
  0x83   : > { %10189 = shalt.err (!%p10186_p1)
}
  0x84   : > { %s10190_s30 = scalar_lea.vmem %s718_s25, 16  ;;  %s10518_s16 = smov [#allocation5]  }
  0x85   : > { %p10191_p3 = scmp.ne.s32.totalorder %s718_s25, %s10190_s30  ;;  %s10195_s9 = sshll.u32 %s10518_s16, 4  ;;  %s10196_s9 = int_to_ptr.vmem [resolvable:$false] %s10195_s9 }
  0x86   : > { %s10197_s8 = scalar_lea.vmem %s10196_s9, 32  ;;  %p10198_p4 = scmp.lt.s32.totalorder %s718_s25, %s10196_s9 }
  0x87   : > { %p10193_p13 = pnand %p10191_p3, %p10813_p5  ;;  %p10199_p9 = scmp.lt.s32.totalorder %s10197_s8, %s10190_s30 }
  0x89   : > { %p10194_p0 = pneg %p10193_p13  ;;  %p10200_p6 = por %p10199_p9, %p10198_p4 }
  0x8b   : > { %p10201_p7 = pnand %p10200_p6, %p10194_p0 }
  0x8d   : > { %10204 = shalt.err (!%p10201_p7)
}
  0x8e   : > { %9808 = dma.hbm_to_vmem [thread:$0]  (!%p10791_p8), %s10799_s14, 16, %s718_s25, %s10807_s28  }
  0x8f   : > { %s10519_s17 = smov [#allocation10]   ;;  %s10520_s29 = smov [#allocation13]  }
  0x90   : > { %s549_s10 = sshll.u32 %s10519_s17, 4  ;;  %s575_s23 = sshll.u32 %s10520_s29, 4  ;;  %s550_s10 = int_to_ptr.vmem [resolvable:$true] %s549_s10  ;;  %s576_s23 = int_to_ptr.vmem [resolvable:$true] %s575_s23 }
  0x91   : > { %s10216_s27 = scalar_lea.vmem %s550_s10, 1024  ;;  %p12118_p3 = scmp.ne.s32.totalorder %s12101_s0, 0 }
  0x92   : > { %p10217_p1 = scmp.ne.s32.totalorder %s550_s10, %s10216_s27  ;;  %p10224_p11 = scmp.lt.s32.totalorder %s550_s10, %s550_s10 }
  0x93   : > { %p10225_p12 = scmp.lt.s32.totalorder %s10216_s27, %s10216_s27 }
  0x94   : > { %p10219_p13 = pnand %p10217_p1, %p12118_p3 }
  0x95   : > { %p10226_p6 = por %p10225_p12, %p10224_p11 }
  0x96   : > { %p10220_p10 = pneg %p10219_p13 }
  0x98   : > { %p10227_p7 = pnand %p10226_p6, %p10220_p10 }
  0x9a   : > { %10230 = shalt.err (!%p10227_p7)
}
  0x9b   : > { %p12119_p0 = scmp.ne.s32.totalorder %s12100_s4, 0  ;;  %s12120_s8 = smov 8  }
  0x9c   : > { %s12121_s9 = smov 128   ;;  %s12122_s5 = sld [smem:[#allocation46_spill]] }
  0x9d   : > { %s10242_s25 = scalar_lea.vmem %s576_s23, 2048  ;;  %p10250_p1 = scmp.lt.s32.totalorder %s576_s23, %s576_s23 }
  0x9e   : > { %p10243_p2 = scmp.ne.s32.totalorder %s576_s23, %s10242_s25  ;;  %p10251_p13 = scmp.lt.s32.totalorder %s10242_s25, %s10242_s25 }
  0xa0   : > { %p10245_p4 = pnand %p10243_p2, %p12118_p3  ;;  %p10252_p10 = por %p10251_p13, %p10250_p1 }
  0xa2   : > { %9777 = dma.hbm_to_vmem [thread:$0]  (!%p12119_p0), %s12122_s5, 1024, %s550_s10, [#allocation9], %s12121_s9, %s12121_s9, %s12120_s8  }
  0xa3   : > { %p10246_p9 = pneg %p10245_p4 }
  0xa5   : > { %p10253_p11 = pnand %p10252_p10, %p10246_p9 }
  0xa7   : > { %10256 = shalt.err (!%p10253_p11)
}
  0xa8   : > { %s12123_s7 = sld [smem:[#allocation48_spill]]  ;;  %s10521_s17 = smov [#allocation16]  }
  0xa9   : > { %s607_s10 = sshll.u32 %s10521_s17, 4  ;;  %s10522_s29 = smov [#allocation19]   ;;  %s608_s10 = int_to_ptr.vmem [resolvable:$true] %s607_s10 }
  0xaa   : > { %s633_s27 = sshll.u32 %s10522_s29, 4  ;;  %s10268_s14 = scalar_lea.vmem %s608_s10, 1024  ;;  %s634_s27 = int_to_ptr.vmem [resolvable:$true] %s633_s27 }
  0xab   : > { %p10269_p12 = scmp.ne.s32.totalorder %s608_s10, %s10268_s14  ;;  %p10276_p2 = scmp.lt.s32.totalorder %s608_s10, %s608_s10 }
  0xac   : > { %p10277_p4 = scmp.lt.s32.totalorder %s10268_s14, %s10268_s14 }
  0xad   : > { %p10271_p6 = pnand %p10269_p12, %p12118_p3 }
  0xae   : > { %9783 = dma.hbm_to_vmem [thread:$0]  (!%p12119_p0), %s12123_s7, 2048, %s576_s23, [#allocation12], %s12121_s9, %s12121_s9, %s12120_s8  }
  0xaf   : > { %p10272_p7 = pneg %p10271_p6  ;;  %p10278_p9 = por %p10277_p4, %p10276_p2 }
  0xb1   : > { %p10279_p1 = pnand %p10278_p9, %p10272_p7 }
  0xb3   : > { %10282 = shalt.err (!%p10279_p1)
}
  0xb4   : > { %9789 = dma.hbm_to_vmem [thread:$0]  (!%p12119_p0), %s12035_s11, 1024, %s608_s10, [#allocation15], %s12121_s9, %s12121_s9, %s12120_s8  }
  0xb5   : > { %s10294_s25 = scalar_lea.vmem %s634_s27, 1024  ;;  %p10302_p12 = scmp.lt.s32.totalorder %s634_s27, %s634_s27 }
  0xb6   : > { %p10295_p13 = scmp.ne.s32.totalorder %s634_s27, %s10294_s25  ;;  %p10303_p6 = scmp.lt.s32.totalorder %s10294_s25, %s10294_s25 }
  0xb8   : > { %p10297_p10 = pnand %p10295_p13, %p12118_p3  ;;  %p10304_p7 = por %p10303_p6, %p10302_p12 }
  0xba   : > { %p10298_p11 = pneg %p10297_p10 }
  0xbc   : > { %p10305_p2 = pnand %p10304_p7, %p10298_p11 }
  0xbe   : > { %10308 = shalt.err (!%p10305_p2)
}
  0xbf   : > { %9795 = dma.hbm_to_vmem [thread:$0]  (!%p12119_p0), %s12037_s13, 1024, %s634_s27, [#allocation18], %s12121_s9, %s12121_s9, %s12120_s8  }
  0xc0   : > { %s10523_s17 = smov [#allocation22]   ;;  %s8770_s29 = sshll.u32 %s10784_s21, 3 }
  0xc1   : > { %s659_s10 = sshll.u32 %s10523_s17, 4  ;;  %s660_s10 = int_to_ptr.vmem [resolvable:$true] %s659_s10 }
  0xc2   : > { %s10320_s14 = scalar_lea.vmem %s660_s10, 2048  ;;  %p10328_p13 = scmp.lt.s32.totalorder %s660_s10, %s660_s10 }
  0xc3   : > { %p10321_p4 = scmp.ne.s32.totalorder %s660_s10, %s10320_s14  ;;  %p10329_p10 = scmp.lt.s32.totalorder %s10320_s14, %s10320_s14 }
  0xc5   : > { %p10323_p9 = pnand %p10321_p4, %p12118_p3  ;;  %p10330_p11 = por %p10329_p10, %p10328_p13 }
  0xc7   : > { %p10324_p1 = pneg %p10323_p9 }
  0xc9   : > { %p10331_p12 = pnand %p10330_p11, %p10324_p1 }
  0xcb   : > { %10334 = shalt.err (!%p10331_p12)
}
  0xcc   : > { %9801 = dma.hbm_to_vmem [thread:$0]  (!%p12119_p0), %s12039_s15, 2048, %s660_s10, [#allocation21], %s12121_s9, %s12121_s9, %s12120_s8  }
  0xcd   : > { %s8771_s0 = sshll.u32 %s10509_s24, 7  ;;  %s12124_s19 = sld [smem:[#allocation42_spill]] }
  0xce   : > { %s693_s4 = scalar_lea.vmem [#allocation2], %s8770_s29  ;;  %s690_s14 = scalar_lea.sflag [#allocation3], %s10784_s21 }
  0xcf   : > { %s700_s17 = sshll.u32 %s693_s4, 4  ;;  %s701_s17 = int_to_ptr.vmem [resolvable:$true] %s700_s17 }
  0xd3   : > { %s10887_s30 = scalar_lea.hbm %s12124_s19, %s8771_s0  ;;  %s10340_s9 = scalar_lea.hbm %s12124_s19, 256 }
  0xd4   : > { %s10335_s5 = scalar_lea.hbm %s10887_s30, 128  ;;  %p10341_p0 = scmp.lt.s32.totalorder %s10887_s30, %s12124_s19 }
  0xd5   : > { %p10336_p3 = scmp.ne.s32.totalorder %s10887_s30, %s10335_s5  ;;  %p10342_p2 = scmp.lt.s32.totalorder %s10340_s9, %s10335_s5 }
  0xd7   : > { %p10338_p6 = pnand %p10336_p3, %p10813_p5  ;;  %p10343_p4 = por %p10342_p2, %p10341_p0 }
  0xd9   : > { %p10339_p7 = pneg %p10338_p6 }
  0xdb   : > { %p10344_p9 = pnand %p10343_p4, %p10339_p7 }
  0xdd   : > { %10347 = shalt.err (!%p10344_p9)
}
  0xde   : > { %s10348_s29 = scalar_lea.vmem %s701_s17, 128  ;;  %s10524_s0 = smov [#allocation2]  }
  0xdf   : > { %p10349_p1 = scmp.ne.s32.totalorder %s701_s17, %s10348_s29  ;;  %s10353_s16 = sshll.u32 %s10524_s0, 4  ;;  %s10354_s16 = int_to_ptr.vmem [resolvable:$false] %s10353_s16 }
  0xe0   : > { %s10355_s25 = scalar_lea.vmem %s10354_s16, 256  ;;  %p10356_p11 = scmp.lt.s32.totalorder %s701_s17, %s10354_s16 }
  0xe1   : > { %p10351_p13 = pnand %p10349_p1, %p10813_p5  ;;  %p10357_p12 = scmp.lt.s32.totalorder %s10355_s25, %s10348_s29 }
  0xe3   : > { %p10352_p10 = pneg %p10351_p13  ;;  %p10358_p3 = por %p10357_p12, %p10356_p11 }
  0xe5   : > { %p10359_p6 = pnand %p10358_p3, %p10352_p10 }
  0xe7   : > { %10362 = shalt.err (!%p10359_p6)
}
  0xe8   : > { %9805 = dma.hbm_to_vmem [thread:$0]  (!%p10791_p8), %s10887_s30, 128, %s701_s17, %s690_s14  }
  0xe9   : > { %s727_s5 = scalar_lea.vmem [#allocation7], %s10784_s21  ;;  %s10363_s27 = scalar_lea.hbm %s10805_s1, 16 }
  0xea   : > { %s734_s4 = sshll.u32 %s727_s5, 4  ;;  %p10364_p7 = scmp.ne.s32.totalorder %s10805_s1, %s10363_s27  ;;  %s735_s4 = int_to_ptr.vmem [resolvable:$true] %s734_s4 }
  0xeb   : > { %s10368_s10 = scalar_lea.hbm %s12116_s18, 32  ;;  %p10369_p4 = scmp.lt.s32.totalorder %s10805_s1, %s12116_s18 }
  0xec   : > { %p10366_p0 = pnand %p10364_p7, %p10813_p5  ;;  %p10370_p9 = scmp.lt.s32.totalorder %s10368_s10, %s10363_s27 }
  0xee   : > { %p10367_p2 = pneg %p10366_p0  ;;  %p10371_p1 = por %p10370_p9, %p10369_p4 }
  0xf0   : > { %p10372_p13 = pnand %p10371_p1, %p10367_p2 }
  0xf2   : > { %10375 = shalt.err (!%p10372_p13)
}
  0xf3   : > { %s10376_s21 = scalar_lea.vmem %s735_s4, 16  ;;  %s10525_s30 = smov [#allocation7]  }
  0xf4   : > { %p10377_p10 = scmp.ne.s32.totalorder %s735_s4, %s10376_s21  ;;  %s10381_s17 = sshll.u32 %s10525_s30, 4  ;;  %s10382_s17 = int_to_ptr.vmem [resolvable:$false] %s10381_s17 }
  0xf5   : > { %s10383_s14 = scalar_lea.vmem %s10382_s17, 32  ;;  %p10384_p3 = scmp.lt.s32.totalorder %s735_s4, %s10382_s17 }
  0xf6   : > { %p10379_p11 = pnand %p10377_p10, %p10813_p5  ;;  %p10385_p6 = scmp.lt.s32.totalorder %s10383_s14, %s10376_s21 }
  0xf8   : > { %p10380_p12 = pneg %p10379_p11  ;;  %p10386_p7 = por %p10385_p6, %p10384_p3 }
  0xfa   : > { %p10387_p0 = pnand %p10386_p7, %p10380_p12 }
  0xfc   : > { %10390 = shalt.err (!%p10387_p0)
}
  0xfd   : > { %9811 = dma.hbm_to_vmem [thread:$0]  (!%p10791_p8), %s10805_s1, 16, %s735_s4, %s10807_s28  }
  0xfe   : > { %p12125_p2 = scmp.ne.s32.totalorder %s12099_s26, 0 }
  0xff   : > { %s10927_s6 = sand.u32 (!%p12125_p2), 1, %s10501_s22   ;;  %p12126_p5 = scmp.ne.s32.totalorder (!%p12125_p2), %s12109_s20, 0 }
 0x100   : > { %743 = sbr.rel (%p12125_p2) target bundleno = 17902 (0x45ee), region = 96  ;;  %s10930_s0 = sshll.u32 (!%p12125_p2), %s10927_s6, 3 }
 0x101   : > { %s746_s16 = scalar_lea.sflag (!%p12125_p2), [#allocation3], %s10927_s6  ;;  %s749_s25 = scalar_lea.vmem (!%p12125_p2), [#allocation2], %s10930_s0 }
 0x105   : > { %10460 = dma.done.wait (%p12126_p5), %s746_s16, 128  }
 0x106   : > { %10462 = vsyncadd (%p12126_p5), %s746_s16, 4294967168  ;;  %s754_s1 = sand.u32 1, %s10668_s3   ;;  %s757_s2 = scalar_lea.vmem [#allocation5], %s10927_s6 }
 0x107   : > { %s755_s26 = scalar_lea.sflag [#allocation6], %s754_s1 }
 0x108   : > { %10464 = dma.done.wait (%p12126_p5), %s755_s26, 32  }
 0x109   : > { %10466 = vsyncadd (%p12126_p5), %s755_s26, 4294967264  ;;  %s765_s28 = scalar_lea.vmem [#allocation7], %s10927_s6  ;;  %p12127_p8 = scmp.eq.s32.totalorder %s10668_s3, 0 }
 0x10b   : > { %10468 = dma.done.wait (%p12127_p8), [#allocation9], 2048   ;;  %p12128_p4 = pmov %p12127_p8 }
 0x10d   : > { %10470 = vsyncadd (%p12128_p4), [#allocation9], 4294965248  ;;  %p12129_p9 = pmov %p12128_p4 }
 0x10e   : > { %p12130_p1 = pmov %p12128_p4 }
 0x10f   : > { %10472 = dma.done.wait (%p12129_p9), [#allocation12], 3072  }
 0x110   : > { %10474 = vsyncadd (%p12130_p1), [#allocation12], 4294964224  ;;  %p12131_p13 = pmov %p12130_p1 }
 0x111   : > { %p12132_p10 = pmov %p12130_p1 }
 0x112   : > { %10476 = dma.done.wait (%p12131_p13), [#allocation15], 2048  }
 0x113   : > { %10478 = vsyncadd (%p12132_p10), [#allocation15], 4294965248  ;;  %p12133_p11 = pmov %p12130_p1 }
 0x114   : > { %p12134_p12 = pmov %p12130_p1 }
 0x115   : > { %10480 = dma.done.wait (%p12133_p11), [#allocation18], 2048  }
 0x116   : > { %10482 = vsyncadd (%p12134_p12), [#allocation18], 4294965248  ;;  %p12135_p3 = pmov %p12130_p1 }
 0x117   : > { %p12136_p6 = pmov %p12130_p1 }
 0x118   : > { %10484 = dma.done.wait (%p12135_p3), [#allocation21], 3072  }
 0x119   : > { %10486 = vsyncadd (%p12136_p6), [#allocation21], 4294964224  ;;  %p879_p7 = scmp.lt.s32.totalorder %s10668_s3, 1  ;;  %s12137_s8 = sld [smem:[#allocation41_spill]]  ;;  %vm903_vm0 = vcmask 261120   ;;  %v938_v7 = vld [vmem:[#allocation8 + $0x18] sm:$0xff]  ;;  %v889_v17 = vlaneseq }
 0x11a   : > { %v10526_v8 = vmov 0.0   ;;  %v937_v9 = vld [vmem:[#allocation8 + $0x10] sm:$0xff]  ;;  %vm10527_vm1 = vmmov 0   ;;  %v936_v10 = vld [vmem:[#allocation8 + $0x8] sm:$0xff]  ;;  %v935_v11 = vld [vmem:[#allocation8] sm:$0xff]  ;;  %s12138_s29 = sld [smem:[#allocation49_spill]] }
 0x11b   : > { %s880_s20 = scalar_select %p879_p7, %s10668_s3, 1  ;;  %9153 = vmatprep.subr.mxu0 %v10526_v8  ;;  %9161 = vmatprep.mubr.msk.f32.mxu0 %vm10527_vm1, %v10526_v8  ;;  %v10987_v21 = vshrl.u32 %v889_v17, 7  ;;  %vm1023_vm4 = vcmask 64512   ;;  %v885_v39 = vld [vmem:[%s757_s2] sm:$0x1]  ;;  %v10531_v40 = vmov 0  }
 0x11c   : > { %9154 = vmatpush3.msra.mxu0 %v938_v7  ;;  %9169 = vmatprep.subr.mxu1 %v10526_v8  ;;  %s12139_s17 = sld [smem:[#allocation50_spill]]  ;;  %s10528_s14 = smov 120   ;;  %vm886_vm5 = vcmp.ne.f32.partialorder %v885_v39, 0.0  ;;  %vm2118_vm11 = vcmask 523264  }
 0x11d   : > { %s8788_s5 = sshll.u32 %s880_s20, 3  ;;  %9155 = vmatprep.subr.mxu0 %v10526_v8  ;;  %9171 = vmatprep.mubr.msk.f32.mxu1 %vm10527_vm1, %v10526_v8  ;;  %v10990_v22 = vsub.s32 0, %v10987_v21  ;;  %v11000_v25 = vsub.s32 1, %v10987_v21  ;;  %s10529_s16 = smov 96   ;;  %v1099_v41 = vsel %vm886_vm5, 1, %v10531_v40 }
 0x11e   : > { %9156 = vmatpush3.msra.mxu0 %v937_v9  ;;  %s10530_s1 = smov 88   ;;  %s10532_s26 = smov 56  }
 0x11f   : > { %s882_s9 = scalar_lea.vmem %s12137_s8, %s8788_s5  ;;  %9157 = vmatprep.subr.mxu0 %v10526_v8  ;;  %v1103_v42 = vrot.slane %v1099_v41, %v10990_v22  ;;  %s10533_s2 = smov 64  }
 0x120   : > { %v10970_v0 = vld [vmem:[%s882_s9] sm:$0xff]  ;;  %9158 = vmatpush3.msra.mxu0 %v936_v10  ;;  %s10534_s20 = smov 80   ;;  %s10535_s5 = smov 112   ;;  %v939_v10 = vld [vmem:[#allocation10] sm:$0xff] }
 0x121   : > { %v904_v1 = vsel %vm903_vm0, %v10970_v0, 0.0  ;;  %9159 = vmatprep.subr.mxu0 %v10526_v8  ;;  %v10995_v23 = vld [vmem:[%s12138_s29] sm:$0xf]  ;;  %vm11037_vm6 = vcmp.eq.s32.totalorder %v1103_v42, 1  ;;  %s10536_s4 = smov 48   ;;  %s10537_s27 = smov 104  }
 0x122   : > { %905 = vadd.xlane.f32.xlu0 %v904_v1  ;;  %9160 = vmatpush3.msra.mxu0 %v935_v11  ;;  %v918_v24 = vrot.slane %v10995_v23, %v10990_v22  ;;  %v933_v27 = vrot.slane %v10995_v23, %v11000_v25  ;;  %v11010_v31 = vld [vmem:[%s12139_s17] sm:$0xf]  ;;  %s12076_s8 = smov 72   ;;  %s12074_s9 = smov 40  }
 0x123   : > { %9164 = vmatprep.subr.mxu0 %v10526_v8  ;;  %v946_v32 = vrot.slane %v11010_v31, %v10990_v22  ;;  %v940_v11 = vld [vmem:[#allocation10 + $0x8] sm:$0xff]  ;;  %s12142_s23 = sld [smem:[#allocation54_spill]]  ;;  %s12148_s30 = smov 40  }
 0x124   : > { %s12144_s10 = sld [smem:[#allocation55_spill]] }
 0x129   : > { %s12143_s21 = smov %s12142_s23 }
 0x1ab   : > { %v906_v2 = vpop.xlane.xlu0 %905 }
 0x1ac   : > { %v908_v3 = vmul.f32 0.03125, %v906_v2 }
 0x1ae   : > { %v909_v4 = vsub.f32 %v10970_v0, %v908_v3 }
 0x1b0   : > { %v910_v5 = vmul.f32 %v909_v4, %v909_v4  ;;  %v919_v26 = vmul.f32 %v918_v24, %v909_v4 }
 0x1b2   : > { %v911_v6 = vsel %vm903_vm0, %v910_v5, 0.0 }
 0x1b3   : > { %912 = vadd.xlane.f32.xlu0 %v911_v6 }
 0x23c   : > { %v913_v12 = vpop.xlane.xlu0 %912 }
 0x23d   : > { %v914_v13 = vmul.f32 0.032258064, %v913_v12 }
 0x23f   : > { %9899 = vrsqrt.f32 %v914_v13  ;;  %vm922_vm2 = vcmp.eq.f32.partialorder %v914_v13, inf  ;;  %v925_v16 = vand.u32 2147483648, %v914_v13  ;;  %vm924_vm3 = vcmp.eq.f32.partialorder %v914_v13, 0.0 }
 0x24c   : > { %v9900_v14 = vpop.eup %9899 }
 0x24d   : > { %v921_v15 = vmul.f32 %v9900_v14, %v914_v13 }
 0x24f   : > { %v923_v18 = vsel %vm922_vm2, %v914_v13, %v921_v15 }
 0x250   : > { %v926_v19 = vsel %vm924_vm3, %v925_v16, %v923_v18 }
 0x251   : > { %v927_v20 = vadd.f32 1e-06, %v926_v19 }
 0x253   : > { %9901 = vrcp.f32 %v927_v20 }
 0x260   : > { %v9902_v28 = vpop.eup %9901 }
 0x261   : > { %v929_v29 = vmul.f32 %v9902_v28, %v919_v26 }
 0x263   : > { %v934_v30 = vadd.f32 %v933_v27, %v929_v29 }
 0x265   : > { %9162 = vmatmul.mubr.msk.f32.vlgmr.msra.gmra.mxu0 %vm903_vm0, %v934_v30 }
 0x266   : > { %9166 = vmatprep.mubr.msk.f32.mxu0 %vm10527_vm1, %v10526_v8 }
 0x325   : > { %v1016_v33 = vpop.f32.mrf.mxu0 }
 0x326   : > { %v11014_v34 = vadd.f32 %v1016_v33, %v946_v32 }
 0x327   : > { %v9163_v35 = vpop.f32.mrf.mxu0 }
 0x328   : > { %1193 = vrot.lane.b32.xlu0 %v11014_v34, %s10528_s14  ;;  %1021 = vrot.lane.b32.xlu1 %v11014_v34, %s10529_s16 }
 0x32c   : > { %1195 = vrot.lane.b32.xlu1 %v11014_v34, %s10530_s1 }
 0x39a   : > { %v1022_v36 = vpop.permute.xlu1 %1021  ;;  %v1194_v38 = vpop.permute.xlu0 %1193 }
 0x39b   : > { %9165 = vmatpush3.xpose.msk.msra.mxu0 %vm1023_vm4, %v1022_v36 }
 0x39c   : > { %9174 = vmatprep.subr.mxu0 %v10526_v8 }
 0x39e   : > { %9167 = vmatmul.mubr.msk.f32.vlgmr.msra.gmra.mxu0 %vm1023_vm4, %v11014_v34  ;;  %v1196_v37 = vpop.permute.xlu1 %1195 }
 0x39f   : > { %9175 = vmatpush3.xpose.msk.msra.mxu0 %vm1023_vm4, %v1196_v37  ;;  %9176 = vmatprep.mubr.msk.f32.mxu0 %vm10527_vm1, %v10526_v8 }
 0x3a0   : > { %9184 = vmatprep.subr.mxu0 %v10526_v8 }
 0x3a2   : > { %9177 = vmatmul.mubr.msk.f32.vlgmr.msra.gmra.mxu0 %vm1023_vm4, %v1194_v38 }
 0x3a3   : > { %9186 = vmatprep.mubr.msk.f32.mxu0 %vm10527_vm1, %v10526_v8  ;;  %9185 = vmatpush3.msra.mxu0 %v940_v11 }
 0x3a4   : > { %9194 = vmatprep.subr.mxu0 %v10526_v8 }
 0x45e   : > { %v1094_v43 = vpop.f32.mrf.mxu0 }
 0x45f   : > { %v1098_v45 = vmul.f32 0.35355338, %v1094_v43 }
 0x460   : > { %v9168_v46 = vpop.f32.mrf.mxu0 }
 0x461   : > { %v1105_v47 = vsel %vm11037_vm6, %v1098_v45, -1e+09 }
 0x462   : > { %v1267_v48 = vpop.f32.mrf.mxu0  ;;  %v1106_v49 = vsel %vm1023_vm4, %v1105_v47, -inf }
 0x463   : > { %v1271_v50 = vmul.f32 0.35355338, %v1267_v48  ;;  %1107 = vmax.xlane.f32.xlu1 %v1106_v49  ;;  %v941_v48 = vld [vmem:[#allocation10 + $0x10] sm:$0xff] }
 0x464   : > { %v9178_v51 = vpop.f32.mrf.mxu0 }
 0x465   : > { %v1272_v52 = vsel %vm11037_vm6, %v1271_v50, -1e+09 }
 0x466   : > { %v1273_v53 = vsel %vm1023_vm4, %v1272_v52, -inf }
 0x467   : > { %1274 = vmax.xlane.f32.xlu0 %v1273_v53 }
 0x47d   : > { %1284 = vrot.lane.b32.xlu0 %v11014_v34, %s10532_s26 }
 0x4ec   : > { %v1108_v54 = vpop.xlane.xlu1 %1107 }
 0x4ed   : > { %v1109_v55 = vsub.f32 %v1105_v47, %v1108_v54 }
 0x4ef   : > { %v1110_v56 = vmul.f32 1.442695, %v1109_v55 }
 0x4f0   : > { %v1275_v57 = vpop.xlane.xlu0 %1274 }
 0x4f1   : > { %9903 = vpow2.f32 %v1110_v56  ;;  %v1276_v58 = vsub.f32 %v1272_v52, %v1275_v57 }
 0x4f3   : > { %v1277_v59 = vmul.f32 1.442695, %v1276_v58 }
 0x4f4   : > { %v1285_v6 = vpop.permute.xlu0 %1284 }
 0x4f5   : > { %9905 = vpow2.f32 %v1277_v59 }
 0x4fe   : > { %v9904_v60 = vpop.eup %9903 }
 0x4ff   : > { %v1112_v61 = vsel %vm1023_vm4, %v9904_v60, 0.0 }
 0x500   : > { %1113 = vadd.xlane.f32.xlu1 %v1112_v61  ;;  %v942_v61 = vld [vmem:[#allocation10 + $0x18] sm:$0xff] }
 0x502   : > { %v9906_v62 = vpop.eup %9905 }
 0x503   : > { %v1279_v63 = vsel %vm1023_vm4, %v9906_v62, 0.0 }
 0x504   : > { %1280 = vadd.xlane.f32.xlu1 %v1279_v63 }
 0x515   : > { %1117 = vrot.lane.b32.xlu1 %v11014_v34, %s10533_s2 }
 0x519   : > { %1508 = vrot.lane.b32.xlu1 %v11014_v34, %s10534_s20 }
 0x51d   : > { %1506 = vrot.lane.b32.xlu1 %v11014_v34, %s10535_s5 }
 0x589   : > { %v1114_v1 = vpop.xlane.xlu1 %1113 }
 0x58a   : > { %9907 = vrcp.f32 %v1114_v1 }
 0x58d   : > { %v1281_v2 = vpop.xlane.xlu1 %1280 }
 0x58e   : > { %9909 = vrcp.f32 %v1281_v2 }
 0x591   : > { %v1118_v3 = vpop.permute.xlu1 %1117 }
 0x592   : > { %9170 = vmatpush3.msra.mxu1 %v1118_v3 }
 0x593   : > { %9179 = vmatprep.subr.mxu1 %v10526_v8 }
 0x595   : > { %v1509_v13 = vpop.permute.xlu1 %1508 }
 0x597   : > { %v9908_v4 = vpop.eup %9907 }
 0x598   : > { %v1116_v5 = vmul.f32 %v9908_v4, %v9904_v60 }
 0x599   : > { %v1507_v18 = vpop.permute.xlu1 %1506 }
 0x59a   : > { %9172 = vmatmul.mubr.msk.f32.vlgmr.msra.gmra.mxu1 %vm1023_vm4, %v1116_v5 }
 0x59b   : > { %v9910_v7 = vpop.eup %9909  ;;  %9180 = vmatpush3.msra.mxu1 %v1285_v6  ;;  %9181 = vmatprep.mubr.msk.f32.mxu1 %vm10527_vm1, %v10526_v8 }
 0x59c   : > { %v1283_v9 = vmul.f32 %v9910_v7, %v9906_v62  ;;  %9189 = vmatprep.subr.mxu1 %v10526_v8  ;;  %v1991_v7 = vrot.slane %v11010_v31, %v11000_v25 }
 0x59e   : > { %9182 = vmatmul.mubr.msk.f32.vlgmr.msra.gmra.mxu1 %vm1023_vm4, %v1283_v9 }
 0x59f   : > { %9191 = vmatprep.mubr.msk.f32.mxu1 %vm10527_vm1, %v10526_v8  ;;  %9190 = vmatpush3.msra.mxu1 %v939_v10 }
 0x5a0   : > { %9199 = vmatprep.subr.mxu1 %v10526_v8 }
 0x65a   : > { %v1189_v12 = vpop.f32.mrf.mxu1 }
 0x65b   : > { %9192 = vmatmul.mubr.msk.f32.vlgmr.msra.gmra.mxu1 %vm1023_vm4, %v1189_v12 }
 0x65c   : > { %v9173_v14 = vpop.f32.mrf.mxu1  ;;  %9201 = vmatprep.mubr.msk.f32.mxu1 %vm10527_vm1, %v10526_v8 }
 0x65d   : > { %v11122_v14 = vld [vmem:[%s749_s25] sm:$0xff]  ;;  %s8480_s25 = scalar_lea.sflag [#allocation4], %s10927_s6 }
 0x65e   : > { %v1356_v15 = vpop.f32.mrf.mxu1 }
 0x65f   : > { %9187 = vmatmul.mubr.msk.f32.vlgmr.msra.gmra.mxu0 %vm1023_vm4, %v1356_v15 }
 0x660   : > { %9195 = vmatpush3.xpose.msk.msra.mxu0 %vm1023_vm4, %v1509_v13  ;;  %v9183_v16 = vpop.f32.mrf.mxu1  ;;  %9196 = vmatprep.mubr.msk.f32.mxu0 %vm10527_vm1, %v10526_v8 }
 0x661   : > { %9204 = vmatprep.subr.mxu0 %v10526_v8  ;;  %v2226_v16 = vsel %vm903_vm0, %v11122_v14, 0.0 }
 0x663   : > { %9197 = vmatmul.mubr.msk.f32.vlgmr.msra.gmra.mxu0 %vm1023_vm4, %v1507_v18 }
 0x664   : > { %9206 = vmatprep.mubr.msk.f32.mxu0 %vm10527_vm1, %v10526_v8  ;;  %9205 = vmatpush3.msra.mxu0 %v941_v48 }
 0x665   : > { %9214 = vmatprep.subr.mxu0 %v10526_v8 }
 0x71b   : > { %v1502_v19 = vpop.f32.mrf.mxu1 }
 0x71d   : > { %v9193_v20 = vpop.f32.mrf.mxu1 }
 0x71f   : > { %v1429_v24 = vpop.f32.mrf.mxu0 }
 0x720   : > { %v1503_v26 = vadd.f32 %v1502_v19, %v1429_v24 }
 0x721   : > { %v9188_v27 = vpop.f32.mrf.mxu0 }
 0x723   : > { %v1580_v28 = vpop.f32.mrf.mxu0 }
 0x724   : > { %v1584_v29 = vmul.f32 0.35355338, %v1580_v28 }
 0x725   : > { %v9198_v30 = vpop.f32.mrf.mxu0 }
 0x726   : > { %v1585_v32 = vsel %vm11037_vm6, %v1584_v29, -1e+09 }
 0x727   : > { %v1586_v33 = vsel %vm1023_vm4, %v1585_v32, -inf }
 0x728   : > { %1587 = vmax.xlane.f32.xlu1 %v1586_v33  ;;  %v2026_v33 = vld [vmem:[#allocation11 + $0x10] sm:$0xff] }
 0x739   : > { %1597 = vrot.lane.b32.xlu1 %v11014_v34, %s10536_s4 }
 0x73d   : > { %1747 = vrot.lane.b32.xlu1 %v11014_v34, %s10537_s27 }
 0x7b1   : > { %v1588_v35 = vpop.xlane.xlu1 %1587 }
 0x7b2   : > { %v1589_v36 = vsub.f32 %v1585_v32, %v1588_v35  ;;  %v2027_v32 = vld [vmem:[#allocation11 + $0x18] sm:$0xff]  ;;  %v2025_v35 = vld [vmem:[#allocation11 + $0x8] sm:$0xff] }
 0x7b4   : > { %v1590_v37 = vmul.f32 1.442695, %v1589_v36  ;;  %v2024_v36 = vld [vmem:[#allocation11] sm:$0xff] }
 0x7b5   : > { %v1598_v38 = vpop.permute.xlu1 %1597 }
 0x7b6   : > { %9911 = vpow2.f32 %v1590_v37  ;;  %9200 = vmatpush3.msra.mxu1 %v1598_v38  ;;  %v2035_v37 = vld [vmem:[#allocation13 + $0x38] sm:$0xff]  ;;  %v2034_v38 = vld [vmem:[#allocation13 + $0x30] sm:$0xff] }
 0x7b7   : > { %9209 = vmatprep.subr.mxu1 %v10526_v8 }
 0x7b9   : > { %v1748_v47 = vpop.permute.xlu1 %1747 }
 0x7c3   : > { %v9912_v39 = vpop.eup %9911 }
 0x7c4   : > { %v1592_v41 = vsel %vm1023_vm4, %v9912_v39, 0.0 }
 0x7c5   : > { %1593 = vadd.xlane.f32.xlu0 %v1592_v41  ;;  %v2032_v41 = vld [vmem:[#allocation13 + $0x20] sm:$0xff] }
 0x7db   : > { %1749 = vrot.lane.b32.xlu0 %v11014_v34, %s12076_s8 }
 0x84e   : > { %v1594_v42 = vpop.xlane.xlu0 %1593 }
 0x84f   : > { %9913 = vrcp.f32 %v1594_v42  ;;  %v2031_v42 = vld [vmem:[#allocation13 + $0x18] sm:$0xff] }
 0x852   : > { %v1750_v46 = vpop.permute.xlu0 %1749 }
 0x85c   : > { %v9914_v43 = vpop.eup %9913 }
 0x85d   : > { %v1596_v45 = vmul.f32 %v9914_v43, %v9912_v39  ;;  %v2033_v39 = vld [vmem:[#allocation13 + $0x28] sm:$0xff] }
 0x85f   : > { %9202 = vmatmul.mubr.msk.f32.vlgmr.msra.gmra.mxu1 %vm1023_vm4, %v1596_v45 }
 0x860   : > { %9210 = vmatpush3.xpose.msk.msra.mxu1 %vm1023_vm4, %v1750_v46  ;;  %9211 = vmatprep.mubr.msk.f32.mxu1 %vm10527_vm1, %v10526_v8 }
 0x861   : > { %9219 = vmatprep.subr.mxu1 %v10526_v8 }
 0x863   : > { %9212 = vmatmul.mubr.msk.f32.vlgmr.msra.gmra.mxu1 %vm1023_vm4, %v1748_v47 }
 0x864   : > { %9221 = vmatprep.mubr.msk.f32.mxu1 %vm10527_vm1, %v10526_v8  ;;  %9220 = vmatpush3.msra.mxu1 %v942_v61 }
 0x865   : > { %9235 = vmatprep.subr.mxu1 %v10526_v8 }
 0x91f   : > { %v1669_v49 = vpop.f32.mrf.mxu1 }
 0x920   : > { %9207 = vmatmul.mubr.msk.f32.vlgmr.msra.gmra.mxu0 %vm1023_vm4, %v1669_v49 }
 0x921   : > { %v9203_v50 = vpop.f32.mrf.mxu1  ;;  %9216 = vmatprep.mubr.msk.f32.mxu0 %vm10527_vm1, %v10526_v8 }
 0x923   : > { %v1821_v51 = vpop.f32.mrf.mxu1 }
 0x924   : > { %v1825_v52 = vmul.f32 0.35355338, %v1821_v51 }
 0x925   : > { %v9213_v53 = vpop.f32.mrf.mxu1 }
 0x926   : > { %v1826_v54 = vsel %vm11037_vm6, %v1825_v52, -1e+09 }
 0x927   : > { %v1827_v55 = vsel %vm1023_vm4, %v1826_v54, -inf }
 0x928   : > { %1828 = vmax.xlane.f32.xlu1 %v1827_v55 }
 0x9b1   : > { %v1829_v56 = vpop.xlane.xlu1 %1828 }
 0x9b2   : > { %v1830_v57 = vsub.f32 %v1826_v54, %v1829_v56 }
 0x9b4   : > { %v1831_v58 = vmul.f32 1.442695, %v1830_v57 }
 0x9b6   : > { %9915 = vpow2.f32 %v1831_v58 }
 0x9c3   : > { %v9916_v59 = vpop.eup %9915 }
 0x9c4   : > { %v1833_v60 = vsel %vm1023_vm4, %v9916_v59, 0.0 }
 0x9c5   : > { %1834 = vadd.xlane.f32.xlu0 %v1833_v60  ;;  %v11150_v60 = vsub.s32 2, %v10987_v21 }
 0x9c7   : > { %v2007_v61 = vrot.slane %v10995_v23, %v11150_v60 }
 0x9db   : > { %1838 = vrot.lane.b32.xlu0 %v11014_v34, %s12074_s9 }
 0x9e0   : > { %v1742_v62 = vpop.f32.mrf.mxu0 }
 0x9e1   : > { %v1746_v63 = vadd.f32 %v1742_v62, %v1503_v26  ;;  %v11155_v62 = vsub.s32 3, %v10987_v21 }
 0x9e2   : > { %v9208_v1 = vpop.f32.mrf.mxu0 }
 0xa4e   : > { %v1835_v2 = vpop.xlane.xlu0 %1834 }
 0xa4f   : > { %9917 = vrcp.f32 %v1835_v2  ;;  %v2022_v2 = vrot.slane %v10995_v23, %v11155_v62  ;;  %v2257_v23 = vld [vmem:[#allocation14 + $0x8] sm:$0xff] }
 0xa52   : > { %v1839_v3 = vpop.permute.xlu0 %1838 }
 0xa53   : > { %9215 = vmatpush3.msra.mxu0 %v1839_v3 }
 0xa54   : > { %9224 = vmatprep.subr.mxu0 %v10526_v8 }
 0xa5c   : > { %v9918_v4 = vpop.eup %9917 }
 0xa5d   : > { %v1837_v5 = vmul.f32 %v9918_v4, %v9916_v59 }
 0xa5f   : > { %9217 = vmatmul.mubr.msk.f32.vlgmr.msra.gmra.mxu0 %vm1023_vm4, %v1837_v5 }
 0xa60   : > { %9232 = vmatprep.mubr.msk.f32.mxu0 %vm10527_vm1, %v10526_v8  ;;  %9225 = vmatpush3.msra.mxu0 %v2027_v32 }
 0xa61   : > { %9226 = vmatprep.subr.mxu0 %v10526_v8 }
 0xa62   : > { %9227 = vmatpush3.msra.mxu0 %v2026_v33 }
 0xa63   : > { %9228 = vmatprep.subr.mxu0 %v10526_v8 }
 0xa64   : > { %9229 = vmatpush3.msra.mxu0 %v2025_v35 }
 0xa65   : > { %9230 = vmatprep.subr.mxu0 %v10526_v8 }
 0xa66   : > { %9231 = vmatpush3.msra.mxu0 %v2024_v36 }
 0xa67   : > { %9254 = vmatprep.subr.mxu0 %v10526_v8 }
 0xb1f   : > { %v1910_v34 = vpop.f32.mrf.mxu0 }
 0xb20   : > { %9222 = vmatmul.mubr.msk.f32.vlgmr.msra.gmra.mxu1 %vm1023_vm4, %v1910_v34 }
 0xb21   : > { %v9218_v6 = vpop.f32.mrf.mxu0  ;;  %9251 = vmatprep.mubr.msk.f32.mxu1 %vm10527_vm1, %v10526_v8  ;;  %9236 = vmatpush3.msra.mxu1 %v2035_v37 }
 0xb22   : > { %9237 = vmatprep.subr.mxu1 %v10526_v8  ;;  %v2259_v6 = vld [vmem:[#allocation14 + $0x18] sm:$0xff] }
 0xb23   : > { %9238 = vmatpush3.msra.mxu1 %v2034_v38 }
 0xb24   : > { %9239 = vmatprep.subr.mxu1 %v10526_v8 }
 0xb25   : > { %9240 = vmatpush3.msra.mxu1 %v2033_v39 }
 0xb26   : > { %9241 = vmatprep.subr.mxu1 %v10526_v8 }
 0xb27   : > { %9242 = vmatpush3.msra.mxu1 %v2032_v41 }
 0xb28   : > { %9243 = vmatprep.subr.mxu1 %v10526_v8 }
 0xb29   : > { %9244 = vmatpush3.msra.mxu1 %v2031_v42  ;;  %v887_v42 = vld [vmem:[%s765_s28] sm:$0x1]  ;;  %s12151_s28 = sld [smem:[#allocation57_spill]] }
 0xb2a   : > { %9245 = vmatprep.subr.mxu1 %v10526_v8  ;;  %vm888_vm12 = vcmp.ne.f32.partialorder %v887_v42, 0.0 }
 0xbe0   : > { %v1983_v9 = vpop.f32.mrf.mxu1 }
 0xbe1   : > { %v1987_v10 = vadd.f32 %v1983_v9, %v1746_v63  ;;  %v11160_v63 = vld [vmem:[%s12142_s23] sm:$0x3f] }
 0xbe2   : > { %v9223_v11 = vpop.f32.mrf.mxu1  ;;  %v2239_v4 = vrot.slane %v11160_v63, %v10990_v22 }
 0xbe3   : > { %v1992_v12 = vadd.f32 %v1991_v7, %v1987_v10  ;;  %v2258_v10 = vld [vmem:[#allocation14 + $0x10] sm:$0xff] }
 0xbe5   : > { %v11118_v13 = vadd.f32 %v1992_v12, %v10970_v0  ;;  %v2254_v12 = vrot.slane %v11160_v63, %v11000_v25 }
 0xbe7   : > { %v1994_v15 = vsel %vm903_vm0, %v11118_v13, 0.0 }
 0xbe8   : > { %1995 = vadd.xlane.f32.xlu1 %v1994_v15  ;;  %v2256_v15 = vld [vmem:[#allocation14] sm:$0xff] }
 0xbec   : > { %2227 = vadd.xlane.f32.xlu1 %v2226_v16 }
 0xc71   : > { %v1996_v18 = vpop.xlane.xlu1 %1995 }
 0xc72   : > { %v1997_v19 = vmul.f32 0.03125, %v1996_v18  ;;  %v2030_v18 = vld [vmem:[#allocation13 + $0x10] sm:$0xff] }
 0xc73   : > { %9246 = vmatpush3.msra.mxu1 %v2030_v18 }
 0xc74   : > { %v11129_v20 = vsub.f32 %v11118_v13, %v1997_v19  ;;  %9247 = vmatprep.subr.mxu1 %v10526_v8  ;;  %v2029_v19 = vld [vmem:[#allocation13 + $0x8] sm:$0xff] }
 0xc75   : > { %v2228_v24 = vpop.xlane.xlu1 %2227  ;;  %9248 = vmatpush3.msra.mxu1 %v2029_v19 }
 0xc76   : > { %v2229_v26 = vmul.f32 0.03125, %v2228_v24  ;;  %v1999_v0 = vmul.f32 %v11129_v20, %v11129_v20  ;;  %v2008_v1 = vmul.f32 %v2007_v61, %v11129_v20  ;;  %v2028_v20 = vld [vmem:[#allocation13] sm:$0xff]  ;;  %9249 = vmatprep.subr.mxu1 %v10526_v8  ;;  %v2039_v24 = vrot.slane %v11010_v31, %v11150_v60 }
 0xc77   : > { %9250 = vmatpush3.msra.mxu1 %v2028_v20 }
 0xc78   : > { %v11134_v27 = vsub.f32 %v11122_v14, %v2229_v26  ;;  %v2000_v28 = vsel %vm903_vm0, %v1999_v0, 0.0  ;;  %9270 = vmatprep.subr.mxu1 %v10526_v8 }
 0xc79   : > { %2001 = vadd.xlane.f32.xlu1 %v2000_v28  ;;  %v11188_v28 = vld [vmem:[%s12144_s10] sm:$0x3f] }
 0xc7a   : > { %v2231_v29 = vmul.f32 %v11134_v27, %v11134_v27  ;;  %v2240_v9 = vmul.f32 %v2239_v4, %v11134_v27 }
 0xc7c   : > { %v2232_v30 = vsel %vm903_vm0, %v2231_v29, 0.0 }
 0xc7d   : > { %2233 = vadd.xlane.f32.xlu1 %v2232_v30  ;;  %v2267_v30 = vrot.slane %v11188_v28, %v10990_v22 }
 0xd02   : > { %v2002_v43 = vpop.xlane.xlu1 %2001 }
 0xd03   : > { %v2003_v45 = vmul.f32 0.032258064, %v2002_v43  ;;  %v894_v43 = vsel %vm888_vm12, 1, %v10531_v40 }
 0xd05   : > { %9919 = vrsqrt.f32 %v2003_v45  ;;  %vm2011_vm7 = vcmp.eq.f32.partialorder %v2003_v45, inf  ;;  %v2014_v50 = vand.u32 2147483648, %v2003_v45  ;;  %vm2013_vm8 = vcmp.eq.f32.partialorder %v2003_v45, 0.0 }
 0xd06   : > { %v2234_v46 = vpop.xlane.xlu1 %2233 }
 0xd07   : > { %v2235_v47 = vmul.f32 0.032258064, %v2234_v46  ;;  %v898_v46 = vrot.slane %v894_v43, %v10990_v22 }
 0xd09   : > { %9921 = vrsqrt.f32 %v2235_v47  ;;  %vm2243_vm9 = vcmp.eq.f32.partialorder %v2235_v47, inf  ;;  %v2246_v56 = vand.u32 2147483648, %v2235_v47  ;;  %vm2245_vm10 = vcmp.eq.f32.partialorder %v2235_v47, 0.0 }
 0xd0a   : > { %vm899_vm14 = vcmp.eq.s32.totalorder %v898_v46, 1 }
 0xd12   : > { %v9920_v48 = vpop.eup %9919 }
 0xd13   : > { %v2010_v49 = vmul.f32 %v9920_v48, %v2003_v45  ;;  %v6024_v48 = vld [vmem:[#allocation17 + $0x38] sm:$0xff] }
 0xd15   : > { %v2012_v51 = vsel %vm2011_vm7, %v2003_v45, %v2010_v49  ;;  %v892_v45 = vand.u32 127, %v889_v17 }
 0xd16   : > { %v9922_v52 = vpop.eup %9921  ;;  %v2015_v53 = vsel %vm2013_vm8, %v2014_v50, %v2012_v51 }
 0xd17   : > { %v2016_v54 = vadd.f32 1e-06, %v2015_v53  ;;  %v2242_v55 = vmul.f32 %v9922_v52, %v2235_v47  ;;  %vm893_vm13 = vcmp.le.s32.totalorder %v892_v45, %v10987_v21 }
 0xd18   : > { %vm11222_vm15 = vmand %vm899_vm14, %vm893_vm13 }
 0xd19   : > { %9923 = vrcp.f32 %v2016_v54  ;;  %v2244_v57 = vsel %vm2243_vm9, %v2235_v47, %v2242_v55 }
 0xd1a   : > { %v2247_v58 = vsel %vm2245_vm10, %v2246_v56, %v2244_v57 }
 0xd1b   : > { %v2248_v59 = vadd.f32 1e-06, %v2247_v58 }
 0xd1d   : > { %9925 = vrcp.f32 %v2248_v59 }
 0xd26   : > { %v9924_v3 = vpop.eup %9923 }
 0xd27   : > { %v2018_v5 = vmul.f32 %v9924_v3, %v2008_v1 }
 0xd29   : > { %v2023_v34 = vadd.f32 %v2022_v2, %v2018_v5 }
 0xd2a   : > { %v9926_v7 = vpop.eup %9925 }
 0xd2b   : > { %9233 = vmatmul.mubr.msk.f32.vlgmr.msra.gmra.mxu0 %vm903_vm0, %v2023_v34  ;;  %v2250_v11 = vmul.f32 %v9926_v7, %v2240_v9 }
 0xd2c   : > { %9255 = vmatpush3.msra.mxu0 %v2259_v6  ;;  %9262 = vmatprep.mubr.msk.f32.mxu0 %vm10527_vm1, %v10526_v8 }
 0xd2d   : > { %9256 = vmatprep.subr.mxu0 %v10526_v8  ;;  %v2255_v16 = vadd.f32 %v2254_v12, %v2250_v11 }
 0xd2e   : > { %9257 = vmatpush3.msra.mxu0 %v2258_v10 }
 0xd2f   : > { %9258 = vmatprep.subr.mxu0 %v10526_v8 }
 0xd30   : > { %9259 = vmatpush3.msra.mxu0 %v2257_v23 }
 0xd31   : > { %9260 = vmatprep.subr.mxu0 %v10526_v8 }
 0xd32   : > { %9261 = vmatpush3.msra.mxu0 %v2256_v15  ;;  %v2260_v15 = vld [vmem:[#allocation17] sm:$0xff] }
 0xd33   : > { %9263 = vmatmul.mubr.msk.f32.vlgmr.msra.gmra.mxu0 %vm903_vm0, %v2255_v16  ;;  %9265 = vmatprep.subr.mxu0 %v10526_v8  ;;  %v2261_v16 = vld [vmem:[#allocation17 + $0x8] sm:$0xff] }
 0xd34   : > { %9267 = vmatprep.mubr.msk.f32.mxu0 %vm10527_vm1, %v10526_v8 }
 0xdeb   : > { %v2109_v26 = vpop.f32.mrf.mxu0 }
 0xdec   : > { %v2110_v0 = vadd.f32 %v2109_v26, %v2039_v24 }
 0xded   : > { %v9234_v27 = vpop.f32.mrf.mxu0 }
 0xdee   : > { %v2113_v29 = vmax.f32 %v2110_v0, 0.0 }
 0xdf0   : > { %9252 = vmatmul.mubr.msk.f32.vlgmr.msra.gmra.mxu1 %vm2118_vm11, %v2113_v29 }
 0xdf1   : > { %9272 = vmatprep.mubr.msk.f32.mxu1 %vm10527_vm1, %v10526_v8 }
 0xdf3   : > { %v2337_v32 = vpop.f32.mrf.mxu0 }
 0xdf4   : > { %v11195_v33 = vadd.f32 %v2337_v32, %v2267_v30 }
 0xdf5   : > { %v9264_v35 = vpop.f32.mrf.mxu0 }
 0xdf6   : > { %2509 = vrot.lane.b32.xlu0 %v11195_v33, %s10530_s1  ;;  %2342 = vrot.lane.b32.xlu1 %v11195_v33, %s10529_s16 }
 0xdfa   : > { %2507 = vrot.lane.b32.xlu0 %v11195_v33, %s10528_s14 }
 0xe68   : > { %v2343_v36 = vpop.permute.xlu1 %2342  ;;  %v2510_v37 = vpop.permute.xlu0 %2509 }
 0xe69   : > { %9266 = vmatpush3.xpose.msk.msra.mxu0 %vm1023_vm4, %v2343_v36 }
 0xe6a   : > { %9275 = vmatprep.subr.mxu0 %v10526_v8 }
 0xe6c   : > { %9268 = vmatmul.mubr.msk.f32.vlgmr.msra.gmra.mxu0 %vm1023_vm4, %v11195_v33  ;;  %v2508_v38 = vpop.permute.xlu0 %2507 }
 0xe6d   : > { %9276 = vmatpush3.xpose.msk.msra.mxu0 %vm1023_vm4, %v2510_v37  ;;  %9277 = vmatprep.mubr.msk.f32.mxu0 %vm10527_vm1, %v10526_v8 }
 0xe6e   : > { %9285 = vmatprep.subr.mxu0 %v10526_v8 }
 0xe70   : > { %9278 = vmatmul.mubr.msk.f32.vlgmr.msra.gmra.mxu0 %vm1023_vm4, %v2508_v38 }
 0xe71   : > { %9287 = vmatprep.mubr.msk.f32.mxu0 %vm10527_vm1, %v10526_v8  ;;  %9286 = vmatpush3.msra.mxu0 %v2261_v16 }
 0xe72   : > { %9295 = vmatprep.subr.mxu0 %v10526_v8 }
 0xeb0   : > { %v11214_v39 = vpop.f32.mrf.mxu1 }
 0xeb2   : > { %v9253_v41 = vpop.f32.mrf.mxu1 }
 0xf2c   : > { %v2414_v47 = vpop.f32.mrf.mxu0 }
 0xf2d   : > { %v2418_v49 = vmul.f32 0.35355338, %v2414_v47 }
 0xf2e   : > { %v9269_v50 = vpop.f32.mrf.mxu0 }
 0xf2f   : > { %v2419_v51 = vsel %vm11222_vm15, %v2418_v49, -1e+09 }
 0xf30   : > { %v2581_v52 = vpop.f32.mrf.mxu0  ;;  %v2420_v40 = vsel %vm1023_vm4, %v2419_v51, -inf }
 0xf31   : > { %v2585_v53 = vmul.f32 0.35355338, %v2581_v52  ;;  %2421 = vmax.xlane.f32.xlu0 %v2420_v40 }
 0xf32   : > { %v9279_v17 = vpop.f32.mrf.mxu0 }
 0xf33   : > { %v2586_v54 = vsel %vm11222_vm15, %v2585_v53, -1e+09 }
 0xf34   : > { %v2587_v55 = vsel %vm1023_vm4, %v2586_v54, -inf }
 0xf35   : > { %2588 = vmax.xlane.f32.xlu1 %v2587_v55 }
 0xf46   : > { %2598 = vrot.lane.b32.xlu1 %v11195_v33, %s10532_s26 }
 0xf4a   : > { %2822 = vrot.lane.b32.xlu1 %v11195_v33, %s10534_s20 }
 0xfba   : > { %v2422_v56 = vpop.xlane.xlu0 %2421 }
 0xfbb   : > { %v2423_v57 = vsub.f32 %v2419_v51, %v2422_v56 }
 0xfbd   : > { %v2424_v58 = vmul.f32 1.442695, %v2423_v57 }
 0xfbe   : > { %v2589_v59 = vpop.xlane.xlu1 %2588 }
 0xfbf   : > { %9927 = vpow2.f32 %v2424_v58  ;;  %v2590_v61 = vsub.f32 %v2586_v54, %v2589_v59  ;;  %v2262_v54 = vld [vmem:[#allocation17 + $0x10] sm:$0xff] }
 0xfc1   : > { %v2591_v1 = vmul.f32 1.442695, %v2590_v61 }
 0xfc2   : > { %v2599_v23 = vpop.permute.xlu1 %2598 }
 0xfc3   : > { %9929 = vpow2.f32 %v2591_v1 }
 0xfc6   : > { %v2823_v24 = vpop.permute.xlu1 %2822 }
 0xfcc   : > { %v9928_v2 = vpop.eup %9927 }
 0xfcd   : > { %v2426_v3 = vsel %vm1023_vm4, %v9928_v2, 0.0 }
 0xfce   : > { %2427 = vadd.xlane.f32.xlu0 %v2426_v3 }
 0xfd0   : > { %v9930_v4 = vpop.eup %9929 }
 0xfd1   : > { %v2593_v5 = vsel %vm1023_vm4, %v9930_v4, 0.0 }
 0xfd2   : > { %2594 = vadd.xlane.f32.xlu0 %v2593_v5 }
 0xfe8   : > { %2431 = vrot.lane.b32.xlu0 %v11195_v33, %s10533_s2 }
 0xfec   : > { %2820 = vrot.lane.b32.xlu0 %v11195_v33, %s10535_s5 }
0x1057   : > { %v2428_v34 = vpop.xlane.xlu0 %2427 }
0x1058   : > { %9931 = vrcp.f32 %v2428_v34  ;;  %v2117_v34 = vrot.slane %v11010_v31, %v11155_v62 }
0x105b   : > { %v2595_v6 = vpop.xlane.xlu0 %2594 }
0x105c   : > { %9933 = vrcp.f32 %v2595_v6  ;;  %v2189_v6 = vadd.f32 %v11214_v39, %v2117_v34 }
0x105f   : > { %v2432_v7 = vpop.permute.xlu0 %2431 }
0x1060   : > { %9271 = vmatpush3.msra.mxu1 %v2432_v7 }
0x1061   : > { %9280 = vmatprep.subr.mxu1 %v10526_v8 }
0x1063   : > { %v2821_v0 = vpop.permute.xlu0 %2820 }
0x1065   : > { %v9932_v9 = vpop.eup %9931 }
0x1066   : > { %v2430_v10 = vmul.f32 %v9932_v9, %v9928_v2  ;;  %v11298_v9 = vadd.f32 %v2189_v6, %v11118_v13 }
0x1068   : > { %9273 = vmatmul.mubr.msk.f32.vlgmr.msra.gmra.mxu1 %vm1023_vm4, %v2430_v10 }
0x1069   : > { %v9934_v11 = vpop.eup %9933  ;;  %9281 = vmatpush3.msra.mxu1 %v2599_v23  ;;  %9282 = vmatprep.mubr.msk.f32.mxu1 %vm10527_vm1, %v10526_v8  ;;  %v2263_v23 = vld [vmem:[#allocation17 + $0x18] sm:$0xff] }
0x106a   : > { %v2597_v12 = vmul.f32 %v9934_v11, %v9930_v4  ;;  %9290 = vmatprep.subr.mxu1 %v10526_v8 }
0x106c   : > { %9283 = vmatmul.mubr.msk.f32.vlgmr.msra.gmra.mxu1 %vm1023_vm4, %v2597_v12 }
0x106d   : > { %9292 = vmatprep.mubr.msk.f32.mxu1 %vm10527_vm1, %v10526_v8  ;;  %9291 = vmatpush3.msra.mxu1 %v2260_v15 }
0x106e   : > { %9300 = vmatprep.subr.mxu1 %v10526_v8 }
0x1128   : > { %v2503_v18 = vpop.f32.mrf.mxu1 }
0x1129   : > { %9293 = vmatmul.mubr.msk.f32.vlgmr.msra.gmra.mxu1 %vm1023_vm4, %v2503_v18 }
0x112a   : > { %v9274_v19 = vpop.f32.mrf.mxu1  ;;  %9302 = vmatprep.mubr.msk.f32.mxu1 %vm10527_vm1, %v10526_v8 }
0x112c   : > { %v2670_v20 = vpop.f32.mrf.mxu1 }
0x112d   : > { %9288 = vmatmul.mubr.msk.f32.vlgmr.msra.gmra.mxu0 %vm1023_vm4, %v2670_v20 }
0x112e   : > { %9296 = vmatpush3.xpose.msk.msra.mxu0 %vm1023_vm4, %v2823_v24  ;;  %v9284_v26 = vpop.f32.mrf.mxu1  ;;  %9297 = vmatprep.mubr.msk.f32.mxu0 %vm10527_vm1, %v10526_v8  ;;  %v3305_v24 = vrot.slane %v11188_v28, %v11150_v60 }
0x112f   : > { %9305 = vmatprep.subr.mxu0 %v10526_v8 }
0x1131   : > { %9298 = vmatmul.mubr.msk.f32.vlgmr.msra.gmra.mxu0 %vm1023_vm4, %v2821_v0 }
0x1132   : > { %9307 = vmatprep.mubr.msk.f32.mxu0 %vm10527_vm1, %v10526_v8  ;;  %9306 = vmatpush3.msra.mxu0 %v2262_v54 }
0x1133   : > { %9315 = vmatprep.subr.mxu0 %v10526_v8 }
0x11e9   : > { %v2816_v27 = vpop.f32.mrf.mxu1 }
0x11eb   : > { %v9294_v29 = vpop.f32.mrf.mxu1 }
0x11ed   : > { %v2743_v30 = vpop.f32.mrf.mxu0 }
0x11ee   : > { %v11263_v32 = vadd.f32 %v2816_v27, %v2743_v30 }
0x11ef   : > { %v9289_v35 = vpop.f32.mrf.mxu0 }
0x11f1   : > { %v2894_v36 = vpop.f32.mrf.mxu0 }
0x11f2   : > { %v2898_v37 = vmul.f32 0.35355338, %v2894_v36 }
0x11f3   : > { %v9299_v38 = vpop.f32.mrf.mxu0 }
0x11f4   : > { %v2899_v41 = vsel %vm11222_vm15, %v2898_v37, -1e+09  ;;  %v3341_v38 = vld [vmem:[#allocation16 + $0x18] sm:$0xff] }
0x11f5   : > { %v2900_v42 = vsel %vm1023_vm4, %v2899_v41, -inf }
0x11f6   : > { %2901 = vmax.xlane.f32.xlu1 %v2900_v42  ;;  %v3340_v42 = vld [vmem:[#allocation16 + $0x10] sm:$0xff] }
0x1207   : > { %3063 = vrot.lane.b32.xlu1 %v11195_v33, %s12076_s8 }
0x120b   : > { %3061 = vrot.lane.b32.xlu1 %v11195_v33, %s10537_s27 }
0x127f   : > { %v2902_v43 = vpop.xlane.xlu1 %2901 }
0x1280   : > { %v2903_v45 = vsub.f32 %v2899_v41, %v2902_v43  ;;  %v3339_v41 = vld [vmem:[#allocation16 + $0x8] sm:$0xff] }
0x1282   : > { %v2904_v46 = vmul.f32 1.442695, %v2903_v45 }
0x1283   : > { %v3064_v40 = vpop.permute.xlu1 %3063 }
0x1284   : > { %9935 = vpow2.f32 %v2904_v46 }
0x1287   : > { %v3062_v17 = vpop.permute.xlu1 %3061 }
0x1291   : > { %v9936_v47 = vpop.eup %9935 }
0x1292   : > { %v2906_v49 = vsel %vm1023_vm4, %v9936_v47, 0.0 }
0x1293   : > { %2907 = vadd.xlane.f32.xlu0 %v2906_v49 }
0x12a9   : > { %2911 = vrot.lane.b32.xlu0 %v11195_v33, %s10536_s4 }
0x131c   : > { %v2908_v50 = vpop.xlane.xlu0 %2907 }
0x131d   : > { %9937 = vrcp.f32 %v2908_v50 }
0x1320   : > { %v2912_v51 = vpop.permute.xlu0 %2911 }
0x1321   : > { %9301 = vmatpush3.msra.mxu1 %v2912_v51 }
0x1322   : > { %9310 = vmatprep.subr.mxu1 %v10526_v8 }
0x132a   : > { %v9938_v52 = vpop.eup %9937 }
0x132b   : > { %v2910_v53 = vmul.f32 %v9938_v52, %v9936_v47 }
0x132d   : > { %9303 = vmatmul.mubr.msk.f32.vlgmr.msra.gmra.mxu1 %vm1023_vm4, %v2910_v53 }
0x132e   : > { %9311 = vmatpush3.xpose.msk.msra.mxu1 %vm1023_vm4, %v3064_v40  ;;  %9312 = vmatprep.mubr.msk.f32.mxu1 %vm10527_vm1, %v10526_v8 }
0x132f   : > { %9320 = vmatprep.subr.mxu1 %v10526_v8 }
0x1331   : > { %9313 = vmatmul.mubr.msk.f32.vlgmr.msra.gmra.mxu1 %vm1023_vm4, %v3062_v17 }
0x1332   : > { %9322 = vmatprep.mubr.msk.f32.mxu1 %vm10527_vm1, %v10526_v8  ;;  %9321 = vmatpush3.msra.mxu1 %v2263_v23 }
0x1333   : > { %9336 = vmatprep.subr.mxu1 %v10526_v8 }
0x13ed   : > { %v2983_v55 = vpop.f32.mrf.mxu1 }
0x13ee   : > { %9308 = vmatmul.mubr.msk.f32.vlgmr.msra.gmra.mxu0 %vm1023_vm4, %v2983_v55 }
0x13ef   : > { %v9304_v56 = vpop.f32.mrf.mxu1  ;;  %9317 = vmatprep.mubr.msk.f32.mxu0 %vm10527_vm1, %v10526_v8 }
0x13f1   : > { %v3135_v57 = vpop.f32.mrf.mxu1 }
0x13f2   : > { %v3139_v58 = vmul.f32 0.35355338, %v3135_v57  ;;  %v11334_v57 = vld [vmem:[%s12138_s29 + $0x4] sm:$0xf] }
0x13f3   : > { %v9314_v59 = vpop.f32.mrf.mxu1 }
0x13f4   : > { %v3140_v61 = vsel %vm11222_vm15, %v3139_v58, -1e+09  ;;  %v4687_v58 = vrot.slane %v11334_v57, %v10990_v22 }
0x13f5   : > { %v3141_v1 = vsel %vm1023_vm4, %v3140_v61, -inf }
0x13f6   : > { %3142 = vmax.xlane.f32.xlu0 %v3141_v1 }
0x140c   : > { %3152 = vrot.lane.b32.xlu0 %v11195_v33, %s12074_s9  ;;  %v2194_v33 = vsel %vm903_vm0, %v11298_v9, 0.0  ;;  %s12147_s9 = sld [smem:[#allocation56_spill]] }
0x1410   : > { %3433 = vrot.lane.b32.xlu0 %v3341_v38, %s10529_s16 }
0x1414   : > { %3429 = vrot.lane.b32.xlu0 %v3339_v41, %s10529_s16 }
0x147f   : > { %v3143_v2 = vpop.xlane.xlu0 %3142 }
0x1480   : > { %v3144_v3 = vsub.f32 %v3140_v61, %v3143_v2  ;;  %v3349_v2 = vrot.slane %v11188_v28, %v11000_v25 }
0x1482   : > { %v3145_v4 = vmul.f32 1.442695, %v3144_v3  ;;  %v2193_v3 = vld [vmem:[%s12147_s9] sm:$0x3] }
0x1483   : > { %v3153_v5 = vpop.permute.xlu0 %3152 }
0x1484   : > { %9939 = vpow2.f32 %v3145_v4  ;;  %9316 = vmatpush3.msra.mxu0 %v3153_v5  ;;  %v2207_v4 = vrot.slane %v2193_v3, %v10990_v22 }
0x1485   : > { %9325 = vmatprep.subr.mxu0 %v10526_v8 }
0x1487   : > { %v3434_v52 = vpop.permute.xlu0 %3433 }
0x148b   : > { %v3430_v34 = vpop.permute.xlu0 %3429 }
0x1491   : > { %v9940_v7 = vpop.eup %9939 }
0x1492   : > { %v3147_v10 = vsel %vm1023_vm4, %v9940_v7, 0.0 }
0x1493   : > { %3148 = vadd.xlane.f32.xlu1 %v3147_v10  ;;  %v2222_v10 = vrot.slane %v2193_v3, %v11000_v25 }
0x1497   : > { %2195 = vadd.xlane.f32.xlu1 %v2194_v33 }
0x14ae   : > { %v3056_v11 = vpop.f32.mrf.mxu0 }
0x14af   : > { %v3060_v12 = vadd.f32 %v3056_v11, %v11263_v32 }
0x14b0   : > { %v9309_v31 = vpop.f32.mrf.mxu0 }
0x151c   : > { %v3149_v39 = vpop.xlane.xlu1 %3148 }
0x151d   : > { %9941 = vrcp.f32 %v3149_v39 }
0x1520   : > { %v2196_v19 = vpop.xlane.xlu1 %2195 }
0x1521   : > { %v2197_v20 = vmul.f32 0.03125, %v2196_v19  ;;  %v3321_v19 = vrot.slane %v11160_v63, %v11150_v60 }
0x1523   : > { %v2198_v29 = vsub.f32 %v11298_v9, %v2197_v20 }
0x1525   : > { %v2199_v36 = vmul.f32 %v2198_v29, %v2198_v29  ;;  %v4688_v59 = vmul.f32 %v4687_v58, %v2198_v29 }
0x1527   : > { %v2200_v37 = vsel %vm903_vm0, %v2199_v36, 0.0 }
0x152a   : > { %v9942_v15 = vpop.eup %9941 }
0x152b   : > { %v3151_v13 = vmul.f32 %v9942_v15, %v9940_v7  ;;  %v2208_v7 = vmul.f32 %v2207_v4, %v2198_v29 }
0x152d   : > { %9318 = vmatmul.mubr.msk.f32.vlgmr.msra.gmra.mxu0 %vm1023_vm4, %v3151_v13 }
0x152e   : > { %9333 = vmatprep.mubr.msk.f32.mxu0 %vm10527_vm1, %v10526_v8  ;;  %9326 = vmatpush3.msra.mxu0 %v3341_v38 }
0x152f   : > { %9327 = vmatprep.subr.mxu0 %v10526_v8 }
0x1530   : > { %9328 = vmatpush3.msra.mxu0 %v3340_v42 }
0x1531   : > { %9329 = vmatprep.subr.mxu0 %v10526_v8 }
0x1532   : > { %9330 = vmatpush3.msra.mxu0 %v3339_v41 }
0x1533   : > { %9331 = vmatprep.subr.mxu0 %v10526_v8 }
0x15ed   : > { %v3224_v16 = vpop.f32.mrf.mxu0 }
0x15ee   : > { %9323 = vmatmul.mubr.msk.f32.vlgmr.msra.gmra.mxu1 %vm1023_vm4, %v3224_v16 }
0x15ef   : > { %v9319_v18 = vpop.f32.mrf.mxu0  ;;  %9344 = vmatprep.mubr.msk.f32.mxu1 %vm10527_vm1, %v10526_v8  ;;  %9337 = vmatpush3.msra.mxu1 %v3434_v52 }
0x15f0   : > { %9338 = vmatprep.subr.mxu1 %v10526_v8 }
0x16ae   : > { %v3297_v26 = vpop.f32.mrf.mxu1 }
0x16af   : > { %v3301_v0 = vadd.f32 %v3297_v26, %v3060_v12 }
0x16b0   : > { %v9324_v27 = vpop.f32.mrf.mxu1 }
0x16b1   : > { %v3306_v30 = vadd.f32 %v3305_v24, %v3301_v0  ;;  %v3336_v24 = vrot.slane %v11160_v63, %v11155_v62 }
0x16b3   : > { %v11315_v32 = vadd.f32 %v3306_v30, %v11122_v14  ;;  %v3338_v14 = vld [vmem:[#allocation16] sm:$0xff] }
0x16b4   : > { %9332 = vmatpush3.msra.mxu0 %v3338_v14  ;;  %3427 = vrot.lane.b32.xlu0 %v3338_v14, %s10529_s16 }
0x16b5   : > { %v3308_v35 = vsel %vm903_vm0, %v11315_v32, 0.0  ;;  %9347 = vmatprep.subr.mxu0 %v10526_v8 }
0x16b6   : > { %3309 = vadd.xlane.f32.xlu1 %v3308_v35 }
0x16b8   : > { %3440 = vrot.lane.b32.xlu0 %v3349_v2, %s10529_s16 }
0x16ba   : > { %2201 = vadd.xlane.f32.xlu1 %v2200_v37 }
0x1726   : > { %v3428_v11 = vpop.permute.xlu0 %3427 }
0x172a   : > { %v3441_v29 = vpop.permute.xlu0 %3440 }
0x173f   : > { %v3310_v43 = vpop.xlane.xlu1 %3309 }
0x1740   : > { %v3311_v45 = vmul.f32 0.03125, %v3310_v43 }
0x1742   : > { %v3312_v46 = vsub.f32 %v11315_v32, %v3311_v45 }
0x1743   : > { %v2202_v47 = vpop.xlane.xlu1 %2201 }
0x1744   : > { %v2203_v49 = vmul.f32 0.032258064, %v2202_v47  ;;  %v3313_v50 = vmul.f32 %v3312_v46, %v3312_v46  ;;  %v3322_v20 = vmul.f32 %v3321_v19, %v3312_v46 }
0x1746   : > { %9943 = vrsqrt.f32 %v2203_v49  ;;  %v3314_v51 = vsel %vm903_vm0, %v3313_v50, 0.0  ;;  %vm2211_vm2 = vcmp.eq.f32.partialorder %v2203_v49, inf  ;;  %v2214_v17 = vand.u32 2147483648, %v2203_v49 }
0x1747   : > { %3315 = vadd.xlane.f32.xlu1 %v3314_v51  ;;  %vm2213_vm3 = vcmp.eq.f32.partialorder %v2203_v49, 0.0 }
0x1753   : > { %v9944_v40 = vpop.eup %9943 }
0x1754   : > { %v2210_v53 = vmul.f32 %v9944_v40, %v2203_v49 }
0x1756   : > { %v2212_v54 = vsel %vm2211_vm2, %v2203_v49, %v2210_v53 }
0x1757   : > { %v2215_v55 = vsel %vm2213_vm3, %v2214_v17, %v2212_v54 }
0x1758   : > { %v2216_v56 = vadd.f32 1e-06, %v2215_v55  ;;  %3431 = vrot.lane.b32.xlu1 %v3340_v42, %s10529_s16 }
0x175a   : > { %9945 = vrcp.f32 %v2216_v56 }
0x1767   : > { %v9946_v61 = vpop.eup %9945 }
0x1768   : > { %v11338_v1 = vmul.f32 %v9946_v61, %v4688_v59  ;;  %v2218_v23 = vmul.f32 %v9946_v61, %v2208_v7  ;;  %v3343_v7 = vld [vmem:[#allocation19 + $0x8] sm:$0xff] }
0x176a   : > { %v2223_v12 = vadd.f32 %v2222_v10, %v2218_v23 }
0x17d0   : > { %v3316_v5 = vpop.xlane.xlu1 %3315 }
0x17d1   : > { %v3317_v6 = vmul.f32 0.032258064, %v3316_v5 }
0x17d3   : > { %9947 = vrsqrt.f32 %v3317_v6  ;;  %vm3325_vm5 = vcmp.eq.f32.partialorder %v3317_v6, inf  ;;  %v3328_v15 = vand.u32 2147483648, %v3317_v6  ;;  %vm3327_vm7 = vcmp.eq.f32.partialorder %v3317_v6, 0.0 }
0x17d4   : > { %v3432_v33 = vpop.permute.xlu1 %3431 }
0x17d5   : > { %9339 = vmatpush3.msra.mxu1 %v3432_v33 }
0x17d6   : > { %9340 = vmatprep.subr.mxu1 %v10526_v8 }
0x17d7   : > { %9341 = vmatpush3.msra.mxu1 %v3430_v34 }
0x17d8   : > { %9342 = vmatprep.subr.mxu1 %v10526_v8 }
0x17d9   : > { %9343 = vmatpush3.msra.mxu1 %v3428_v11 }
0x17da   : > { %9345 = vmatmul.mubr.msk.f32.vlgmr.msra.gmra.mxu1 %vm903_vm0, %v2223_v12  ;;  %9352 = vmatprep.subr.mxu1 %v10526_v8  ;;  %v3342_v12 = vld [vmem:[#allocation19] sm:$0xff] }
0x17db   : > { %9354 = vmatprep.mubr.msk.f32.mxu1 %vm10527_vm1, %v10526_v8 }
0x17e0   : > { %v9948_v31 = vpop.eup %9947 }
0x17e1   : > { %v3324_v39 = vmul.f32 %v9948_v31, %v3317_v6 }
0x17e3   : > { %v3326_v13 = vsel %vm3325_vm5, %v3317_v6, %v3324_v39 }
0x17e4   : > { %v3329_v16 = vsel %vm3327_vm7, %v3328_v15, %v3326_v13 }
0x17e5   : > { %v3330_v18 = vadd.f32 1e-06, %v3329_v16 }
0x17e7   : > { %9949 = vrcp.f32 %v3330_v18 }
0x17f4   : > { %v9950_v26 = vpop.eup %9949 }
0x17f5   : > { %v3332_v0 = vmul.f32 %v9950_v26, %v3322_v20 }
0x17f7   : > { %v3337_v27 = vadd.f32 %v3336_v24, %v3332_v0 }
0x17f9   : > { %9334 = vmatmul.mubr.msk.f32.vlgmr.msra.gmra.mxu0 %vm903_vm0, %v3337_v27 }
0x17fa   : > { %9349 = vmatprep.mubr.msk.f32.mxu0 %vm10527_vm1, %v10526_v8 }
0x189a   : > { %v3512_v30 = vpop.f32.mrf.mxu1 }
0x189b   : > { %v11361_v35 = vadd.f32 %v3512_v30, %v3441_v29 }
0x189c   : > { %v9346_v36 = vpop.f32.mrf.mxu1 }
0x189d   : > { %3683 = vrot.lane.b32.xlu0 %v11361_v35, %s10528_s14  ;;  %9348 = vmatpush3.xpose.msk.msra.mxu0 %vm1023_vm4, %v11361_v35 }
0x189e   : > { %9357 = vmatprep.subr.mxu0 %v10526_v8 }
0x18b9   : > { %v3419_v63 = vpop.f32.mrf.mxu0 }
0x18ba   : > { %v11368_v37 = vadd.f32 %v3419_v63, %v3349_v2 }
0x18bb   : > { %v9335_v38 = vpop.f32.mrf.mxu0 }
0x18bc   : > { %3681 = vrot.lane.b32.xlu1 %v11368_v37, %s10528_s14  ;;  %9350 = vmatmul.mubr.msk.f32.vlgmr.msra.gmra.mxu0 %vm1023_vm4, %v11368_v37 }
0x18bd   : > { %9359 = vmatprep.mubr.msk.f32.mxu0 %vm10527_vm1, %v10526_v8 }
0x190f   : > { %v3684_v41 = vpop.permute.xlu0 %3683 }
0x1910   : > { %9358 = vmatpush3.xpose.msk.msra.mxu0 %vm1023_vm4, %v3684_v41 }
0x1911   : > { %9367 = vmatprep.subr.mxu0 %v10526_v8 }
0x192e   : > { %v3682_v42 = vpop.permute.xlu1 %3681 }
0x192f   : > { %9360 = vmatmul.mubr.msk.f32.vlgmr.msra.gmra.mxu0 %vm1023_vm4, %v3682_v42 }
0x1930   : > { %9369 = vmatprep.mubr.msk.f32.mxu0 %vm10527_vm1, %v10526_v8  ;;  %9368 = vmatpush3.msra.mxu0 %v3343_v7 }
0x1931   : > { %9377 = vmatprep.subr.mxu0 %v10526_v8 }
0x197c   : > { %v3588_v14 = vpop.f32.mrf.mxu0 }
0x197d   : > { %v3592_v43 = vmul.f32 0.35355338, %v3588_v14 }
0x197e   : > { %v9351_v45 = vpop.f32.mrf.mxu0 }
0x197f   : > { %v3593_v46 = vsel %vm11037_vm6, %v3592_v43, -1e+09 }
0x1980   : > { %v3594_v47 = vsel %vm1023_vm4, %v3593_v46, -inf }
0x1981   : > { %3595 = vmax.xlane.f32.xlu0 %v3594_v47 }
0x19ef   : > { %v3755_v49 = vpop.f32.mrf.mxu0 }
0x19f0   : > { %v3759_v50 = vmul.f32 0.35355338, %v3755_v49 }
0x19f1   : > { %v9361_v51 = vpop.f32.mrf.mxu0 }
0x19f2   : > { %v3760_v52 = vsel %vm11037_vm6, %v3759_v50, -1e+09  ;;  %v3344_v50 = vld [vmem:[#allocation19 + $0x10] sm:$0xff] }
0x19f3   : > { %v3761_v40 = vsel %vm1023_vm4, %v3760_v52, -inf }
0x19f4   : > { %3762 = vmax.xlane.f32.xlu1 %v3761_v40 }
0x1a05   : > { %3605 = vrot.lane.b32.xlu1 %v11361_v35, %s10529_s16 }
0x1a09   : > { %3996 = vrot.lane.b32.xlu1 %v11361_v35, %s10535_s5 }
0x1a0a   : > { %v3596_v53 = vpop.xlane.xlu0 %3595 }
0x1a0b   : > { %v3597_v17 = vsub.f32 %v3593_v46, %v3596_v53 }
0x1a0d   : > { %v3598_v54 = vmul.f32 1.442695, %v3597_v17  ;;  %3994 = vrot.lane.b32.xlu1 %v11368_v37, %s10535_s5 }
0x1a0f   : > { %9951 = vpow2.f32 %v3598_v54 }
0x1a1c   : > { %v9952_v55 = vpop.eup %9951 }
0x1a1d   : > { %v3600_v56 = vsel %vm1023_vm4, %v9952_v55, 0.0 }
0x1a1e   : > { %3601 = vadd.xlane.f32.xlu0 %v3600_v56 }
0x1a7d   : > { %v3763_v58 = vpop.xlane.xlu1 %3762 }
0x1a7e   : > { %v3764_v59 = vsub.f32 %v3760_v52, %v3763_v58 }
0x1a80   : > { %v3765_v61 = vmul.f32 1.442695, %v3764_v59 }
0x1a81   : > { %v3606_v2 = vpop.permute.xlu1 %3605 }
0x1a82   : > { %9953 = vpow2.f32 %v3765_v61  ;;  %9353 = vmatpush3.msra.mxu1 %v3606_v2 }
0x1a83   : > { %9362 = vmatprep.subr.mxu1 %v10526_v8 }
0x1a85   : > { %v3997_v15 = vpop.permute.xlu1 %3996 }
0x1a89   : > { %v3995_v18 = vpop.permute.xlu1 %3994 }
0x1a8f   : > { %v9954_v3 = vpop.eup %9953 }
0x1a90   : > { %v3767_v4 = vsel %vm1023_vm4, %v9954_v3, 0.0 }
0x1a91   : > { %3768 = vadd.xlane.f32.xlu0 %v3767_v4  ;;  %v3345_v4 = vld [vmem:[#allocation19 + $0x18] sm:$0xff] }
0x1aa7   : > { %v3602_v5 = vpop.xlane.xlu0 %3601  ;;  %3772 = vrot.lane.b32.xlu0 %v11361_v35, %s10530_s1 }
0x1aa8   : > { %9955 = vrcp.f32 %v3602_v5 }
0x1ab5   : > { %v9956_v34 = vpop.eup %9955 }
0x1ab6   : > { %v3604_v6 = vmul.f32 %v9956_v34, %v9952_v55 }
0x1ab8   : > { %9355 = vmatmul.mubr.msk.f32.vlgmr.msra.gmra.mxu1 %vm1023_vm4, %v3604_v6 }
0x1ab9   : > { %9364 = vmatprep.mubr.msk.f32.mxu1 %vm10527_vm1, %v10526_v8 }
0x1b1a   : > { %v3769_v10 = vpop.xlane.xlu0 %3768 }
0x1b1b   : > { %9957 = vrcp.f32 %v3769_v10 }
0x1b1e   : > { %v3773_v33 = vpop.permute.xlu0 %3772 }
0x1b1f   : > { %9363 = vmatpush3.msra.mxu1 %v3773_v33 }
0x1b20   : > { %9372 = vmatprep.subr.mxu1 %v10526_v8 }
0x1b28   : > { %v9958_v23 = vpop.eup %9957 }
0x1b29   : > { %v3771_v11 = vmul.f32 %v9958_v23, %v9954_v3 }
0x1b2b   : > { %9365 = vmatmul.mubr.msk.f32.vlgmr.msra.gmra.mxu1 %vm1023_vm4, %v3771_v11 }
0x1b2c   : > { %9373 = vmatpush3.msra.mxu1 %v3342_v12  ;;  %9374 = vmatprep.mubr.msk.f32.mxu1 %vm10527_vm1, %v10526_v8  ;;  %v4479_v12 = vrot.slane %v11188_v28, %v11155_v62  ;;  %v4515_v28 = vld [vmem:[#allocation20 + $0x18] sm:$0xff] }
0x1b2d   : > { %9382 = vmatprep.subr.mxu1 %v10526_v8 }
0x1b78   : > { %v3677_v31 = vpop.f32.mrf.mxu1 }
0x1b79   : > { %9375 = vmatmul.mubr.msk.f32.vlgmr.msra.gmra.mxu1 %vm1023_vm4, %v3677_v31 }
0x1b7a   : > { %v9356_v39 = vpop.f32.mrf.mxu1  ;;  %9384 = vmatprep.mubr.msk.f32.mxu1 %vm10527_vm1, %v10526_v8 }
0x1beb   : > { %v3844_v13 = vpop.f32.mrf.mxu1 }
0x1bec   : > { %9370 = vmatmul.mubr.msk.f32.vlgmr.msra.gmra.mxu0 %vm1023_vm4, %v3844_v13 }
0x1bed   : > { %9378 = vmatpush3.xpose.msk.msra.mxu0 %vm1023_vm4, %v3997_v15  ;;  %v9366_v16 = vpop.f32.mrf.mxu1  ;;  %9379 = vmatprep.mubr.msk.f32.mxu0 %vm10527_vm1, %v10526_v8 }
0x1bee   : > { %9387 = vmatprep.subr.mxu0 %v10526_v8 }
0x1bf0   : > { %9380 = vmatmul.mubr.msk.f32.vlgmr.msra.gmra.mxu0 %vm1023_vm4, %v3995_v18 }
0x1bf1   : > { %9389 = vmatprep.mubr.msk.f32.mxu0 %vm10527_vm1, %v10526_v8  ;;  %9388 = vmatpush3.msra.mxu0 %v3344_v50  ;;  %v11474_v50 = vsub.s32 4, %v10987_v21 }
0x1bf2   : > { %9397 = vmatprep.subr.mxu0 %v10526_v8 }
0x1c39   : > { %v3990_v19 = vpop.f32.mrf.mxu1 }
0x1c3b   : > { %v9376_v20 = vpop.f32.mrf.mxu1 }
0x1cac   : > { %v3917_v24 = vpop.f32.mrf.mxu0 }
0x1cad   : > { %v3991_v3 = vadd.f32 %v3990_v19, %v3917_v24 }
0x1cae   : > { %v9371_v26 = vpop.f32.mrf.mxu0 }
0x1cb0   : > { %v4068_v0 = vpop.f32.mrf.mxu0 }
0x1cb1   : > { %v4072_v27 = vmul.f32 0.35355338, %v4068_v0 }
0x1cb2   : > { %v9381_v29 = vpop.f32.mrf.mxu0 }
0x1cb3   : > { %v4073_v30 = vsel %vm11037_vm6, %v4072_v27, -1e+09  ;;  %v4514_v27 = vld [vmem:[#allocation20 + $0x10] sm:$0xff]  ;;  %v4513_v29 = vld [vmem:[#allocation20 + $0x8] sm:$0xff] }
0x1cb4   : > { %v4074_v36 = vsel %vm1023_vm4, %v4073_v30, -inf }
0x1cb5   : > { %4075 = vmax.xlane.f32.xlu0 %v4074_v36  ;;  %v4522_v36 = vld [vmem:[#allocation22 + $0x30] sm:$0xff] }
0x1ccb   : > { %4085 = vrot.lane.b32.xlu0 %v11361_v35, %s10534_s20 }
0x1ccf   : > { %4235 = vrot.lane.b32.xlu0 %v11368_v37, %s10537_s27 }
0x1d3e   : > { %v4076_v63 = vpop.xlane.xlu0 %4075 }
0x1d3f   : > { %v4077_v38 = vsub.f32 %v4073_v30, %v4076_v63  ;;  %v4523_v30 = vld [vmem:[#allocation22 + $0x38] sm:$0xff]  ;;  %v4521_v63 = vld [vmem:[#allocation22 + $0x28] sm:$0xff] }
0x1d41   : > { %v4078_v41 = vmul.f32 1.442695, %v4077_v38  ;;  %v4520_v38 = vld [vmem:[#allocation22 + $0x20] sm:$0xff] }
0x1d42   : > { %v4086_v42 = vpop.permute.xlu0 %4085 }
0x1d43   : > { %9959 = vpow2.f32 %v4078_v41  ;;  %9383 = vmatpush3.msra.mxu1 %v4086_v42  ;;  %v4519_v41 = vld [vmem:[#allocation22 + $0x18] sm:$0xff] }
0x1d44   : > { %9392 = vmatprep.subr.mxu1 %v10526_v8 }
0x1d46   : > { %v4236_v49 = vpop.permute.xlu0 %4235 }
0x1d50   : > { %v9960_v14 = vpop.eup %9959 }
0x1d51   : > { %v4080_v43 = vsel %vm1023_vm4, %v9960_v14, 0.0 }
0x1d52   : > { %4081 = vadd.xlane.f32.xlu1 %v4080_v43 }
0x1d63   : > { %4237 = vrot.lane.b32.xlu1 %v11361_v35, %s10537_s27 }
0x1ddb   : > { %v4082_v45 = vpop.xlane.xlu1 %4081 }
0x1ddc   : > { %9961 = vrcp.f32 %v4082_v45 }
0x1ddf   : > { %v4238_v37 = vpop.permute.xlu1 %4237 }
0x1de9   : > { %v9962_v46 = vpop.eup %9961 }
0x1dea   : > { %v4084_v47 = vmul.f32 %v9962_v46, %v9960_v14 }
0x1dec   : > { %9385 = vmatmul.mubr.msk.f32.vlgmr.msra.gmra.mxu1 %vm1023_vm4, %v4084_v47 }
0x1ded   : > { %9393 = vmatpush3.xpose.msk.msra.mxu1 %vm1023_vm4, %v4238_v37  ;;  %9394 = vmatprep.mubr.msk.f32.mxu1 %vm10527_vm1, %v10526_v8 }
0x1dee   : > { %9402 = vmatprep.subr.mxu1 %v10526_v8 }
0x1df0   : > { %9395 = vmatmul.mubr.msk.f32.vlgmr.msra.gmra.mxu1 %vm1023_vm4, %v4236_v49 }
0x1df1   : > { %9404 = vmatprep.mubr.msk.f32.mxu1 %vm10527_vm1, %v10526_v8  ;;  %9403 = vmatpush3.msra.mxu1 %v3345_v4  ;;  %v4518_v4 = vld [vmem:[#allocation22 + $0x10] sm:$0xff] }
0x1df2   : > { %9418 = vmatprep.subr.mxu1 %v10526_v8 }
0x1eac   : > { %v4157_v51 = vpop.f32.mrf.mxu1 }
0x1ead   : > { %9390 = vmatmul.mubr.msk.f32.vlgmr.msra.gmra.mxu0 %vm1023_vm4, %v4157_v51  ;;  %v10043_v51 = vld [vmem:[%s12143_s21] sm:$0x3f] }
0x1eae   : > { %v9386_v52 = vpop.f32.mrf.mxu1  ;;  %9399 = vmatprep.mubr.msk.f32.mxu0 %vm10527_vm1, %v10526_v8 }
0x1eaf   : > { %v4495_v52 = vrot.slane %v10043_v51, %v11474_v50 }
0x1eb0   : > { %v4309_v40 = vpop.f32.mrf.mxu1 }
0x1eb1   : > { %v4313_v53 = vmul.f32 0.35355338, %v4309_v40  ;;  %v11481_v40 = vsub.s32 5, %v10987_v21  ;;  %v4693_v21 = vrot.slane %v11334_v57, %v11000_v25  ;;  %v4517_v57 = vld [vmem:[#allocation22 + $0x8] sm:$0xff] }
0x1eb2   : > { %v9396_v17 = vpop.f32.mrf.mxu1 }
0x1eb3   : > { %v4314_v54 = vsel %vm11037_vm6, %v4313_v53, -1e+09  ;;  %v4510_v17 = vrot.slane %v10043_v51, %v11481_v40 }
0x1eb4   : > { %v4315_v55 = vsel %vm1023_vm4, %v4314_v54, -inf }
0x1eb5   : > { %4316 = vmax.xlane.f32.xlu1 %v4315_v55 }
0x1f3e   : > { %v4317_v56 = vpop.xlane.xlu1 %4316 }
0x1f3f   : > { %v4318_v58 = vsub.f32 %v4314_v54, %v4317_v56 }
0x1f41   : > { %v4319_v59 = vmul.f32 1.442695, %v4318_v58  ;;  %v4699_v58 = vld [vmem:[#allocation8 + $0x38] sm:$0xff] }
0x1f43   : > { %9963 = vpow2.f32 %v4319_v59  ;;  %v4698_v59 = vld [vmem:[#allocation8 + $0x30] sm:$0xff] }
0x1f50   : > { %v9964_v61 = vpop.eup %9963 }
0x1f51   : > { %v4321_v2 = vsel %vm1023_vm4, %v9964_v61, 0.0 }
0x1f52   : > { %4322 = vadd.xlane.f32.xlu0 %v4321_v2  ;;  %v4696_v2 = vld [vmem:[#allocation8 + $0x20] sm:$0xff] }
0x1f68   : > { %4326 = vrot.lane.b32.xlu0 %v11361_v35, %s12076_s8 }
0x1f6d   : > { %v4230_v5 = vpop.f32.mrf.mxu0 }
0x1f6e   : > { %v4234_v34 = vadd.f32 %v4230_v5, %v3991_v3  ;;  %v4694_v3 = vadd.f32 %v4693_v21, %v11338_v1  ;;  %v4516_v5 = vld [vmem:[#allocation22] sm:$0xff]  ;;  %v11503_v1 = vld [vmem:[%s12144_s10] sm:$0x3f] }
0x1f6f   : > { %v9391_v6 = vpop.f32.mrf.mxu0 }
0x1fdb   : > { %v4323_v7 = vpop.xlane.xlu0 %4322 }
0x1fdc   : > { %9965 = vrcp.f32 %v4323_v7 }
0x1fdf   : > { %v4327_v10 = vpop.permute.xlu0 %4326 }
0x1fe0   : > { %9398 = vmatpush3.msra.mxu0 %v4327_v10 }
0x1fe1   : > { %9407 = vmatprep.subr.mxu0 %v10526_v8 }
0x1fe9   : > { %v9966_v33 = vpop.eup %9965 }
0x1fea   : > { %v4325_v23 = vmul.f32 %v9966_v33, %v9964_v61  ;;  %v4697_v61 = vld [vmem:[#allocation8 + $0x28] sm:$0xff]  ;;  %v11510_v33 = vld [vmem:[%s12139_s17 + $0x4] sm:$0xf] }
0x1fec   : > { %9400 = vmatmul.mubr.msk.f32.vlgmr.msra.gmra.mxu0 %vm1023_vm4, %v4325_v23 }
0x1fed   : > { %9415 = vmatprep.mubr.msk.f32.mxu0 %vm10527_vm1, %v10526_v8  ;;  %9408 = vmatpush3.msra.mxu0 %v4515_v28 }
0x1fee   : > { %9409 = vmatprep.subr.mxu0 %v10526_v8 }
0x1fef   : > { %9410 = vmatpush3.msra.mxu0 %v4514_v27 }
0x1ff0   : > { %9411 = vmatprep.subr.mxu0 %v10526_v8 }
0x1ff1   : > { %9412 = vmatpush3.msra.mxu0 %v4513_v29 }
0x1ff2   : > { %9413 = vmatprep.subr.mxu0 %v10526_v8 }
0x20ac   : > { %v4398_v35 = vpop.f32.mrf.mxu0 }
0x20ad   : > { %9405 = vmatmul.mubr.msk.f32.vlgmr.msra.gmra.mxu1 %vm1023_vm4, %v4398_v35  ;;  %v4708_v35 = vrot.slane %v11510_v33, %v10990_v22 }
0x20ae   : > { %v9401_v11 = vpop.f32.mrf.mxu0  ;;  %9434 = vmatprep.mubr.msk.f32.mxu1 %vm10527_vm1, %v10526_v8  ;;  %9419 = vmatpush3.msra.mxu1 %v4523_v30 }
0x20af   : > { %9420 = vmatprep.subr.mxu1 %v10526_v8 }
0x20b0   : > { %9421 = vmatpush3.msra.mxu1 %v4522_v36 }
0x20b1   : > { %9422 = vmatprep.subr.mxu1 %v10526_v8 }
0x20b2   : > { %9423 = vmatpush3.msra.mxu1 %v4521_v63 }
0x20b3   : > { %9424 = vmatprep.subr.mxu1 %v10526_v8 }
0x20b4   : > { %9425 = vmatpush3.msra.mxu1 %v4520_v38 }
0x20b5   : > { %9426 = vmatprep.subr.mxu1 %v10526_v8 }
0x20b6   : > { %9427 = vmatpush3.msra.mxu1 %v4519_v41 }
0x20b7   : > { %9428 = vmatprep.subr.mxu1 %v10526_v8 }
0x20b8   : > { %9429 = vmatpush3.msra.mxu1 %v4518_v4 }
0x20b9   : > { %9430 = vmatprep.subr.mxu1 %v10526_v8 }
0x20ba   : > { %9431 = vmatpush3.msra.mxu1 %v4517_v57 }
0x20bb   : > { %9432 = vmatprep.subr.mxu1 %v10526_v8 }
0x20bc   : > { %9433 = vmatpush3.msra.mxu1 %v4516_v5 }
0x20bd   : > { %9453 = vmatprep.subr.mxu1 %v10526_v8 }
0x216d   : > { %v4471_v31 = vpop.f32.mrf.mxu1 }
0x216e   : > { %v4475_v39 = vadd.f32 %v4471_v31, %v4234_v34  ;;  %v4527_v34 = vrot.slane %v11503_v1, %v11474_v50 }
0x216f   : > { %v9406_v15 = vpop.f32.mrf.mxu1 }
0x2170   : > { %v4480_v13 = vadd.f32 %v4479_v12, %v4475_v39 }
0x2172   : > { %v11458_v16 = vadd.f32 %v4480_v13, %v11315_v32  ;;  %v4512_v32 = vld [vmem:[#allocation20] sm:$0xff] }
0x2173   : > { %9414 = vmatpush3.msra.mxu0 %v4512_v32 }
0x2174   : > { %v4482_v18 = vsel %vm903_vm0, %v11458_v16, 0.0  ;;  %9437 = vmatprep.subr.mxu0 %v10526_v8 }
0x2175   : > { %4483 = vadd.xlane.f32.xlu1 %v4482_v18 }
0x21fe   : > { %v4484_v19 = vpop.xlane.xlu1 %4483 }
0x21ff   : > { %v4485_v20 = vmul.f32 0.03125, %v4484_v19 }
0x2201   : > { %v4486_v24 = vsub.f32 %v11458_v16, %v4485_v20 }
0x2203   : > { %v4487_v26 = vmul.f32 %v4486_v24, %v4486_v24  ;;  %v4496_v53 = vmul.f32 %v4495_v52, %v4486_v24 }
0x2205   : > { %v4488_v0 = vsel %vm903_vm0, %v4487_v26, 0.0 }
0x2206   : > { %4489 = vadd.xlane.f32.xlu1 %v4488_v0 }
0x228f   : > { %v4490_v42 = vpop.xlane.xlu1 %4489 }
0x2290   : > { %v4491_v14 = vmul.f32 0.032258064, %v4490_v42 }
0x2292   : > { %9967 = vrsqrt.f32 %v4491_v14  ;;  %vm4499_vm8 = vcmp.eq.f32.partialorder %v4491_v14, inf  ;;  %v4502_v46 = vand.u32 2147483648, %v4491_v14  ;;  %vm4501_vm9 = vcmp.eq.f32.partialorder %v4491_v14, 0.0 }
0x229f   : > { %v9968_v43 = vpop.eup %9967 }
0x22a0   : > { %v4498_v45 = vmul.f32 %v9968_v43, %v4491_v14 }
0x22a2   : > { %v4500_v47 = vsel %vm4499_vm8, %v4491_v14, %v4498_v45 }
0x22a3   : > { %v4503_v37 = vsel %vm4501_vm9, %v4502_v46, %v4500_v47 }
0x22a4   : > { %v4504_v49 = vadd.f32 1e-06, %v4503_v37 }
0x22a6   : > { %9969 = vrcp.f32 %v4504_v49 }
0x22b3   : > { %v9970_v54 = vpop.eup %9969 }
0x22b4   : > { %v4506_v55 = vmul.f32 %v9970_v54, %v4496_v53 }
0x22b6   : > { %v4511_v56 = vadd.f32 %v4510_v17, %v4506_v55 }
0x22b8   : > { %9416 = vmatmul.mubr.msk.f32.vlgmr.msra.gmra.mxu0 %vm903_vm0, %v4511_v56 }
0x22b9   : > { %9438 = vmatpush3.msra.mxu0 %v4699_v58  ;;  %9445 = vmatprep.mubr.msk.f32.mxu0 %vm10527_vm1, %v10526_v8  ;;  %v4701_v58 = vld [vmem:[#allocation10 + $0x20] sm:$0xff] }
0x22ba   : > { %9439 = vmatprep.subr.mxu0 %v10526_v8 }
0x22bb   : > { %9440 = vmatpush3.msra.mxu0 %v4698_v59  ;;  %v4702_v59 = vld [vmem:[#allocation10 + $0x28] sm:$0xff] }
0x22bc   : > { %9441 = vmatprep.subr.mxu0 %v10526_v8 }
0x22bd   : > { %9442 = vmatpush3.msra.mxu0 %v4697_v61 }
0x22be   : > { %9443 = vmatprep.subr.mxu0 %v10526_v8 }
0x22bf   : > { %9444 = vmatpush3.msra.mxu0 %v4696_v2 }
0x22c0   : > { %9446 = vmatmul.mubr.msk.f32.vlgmr.msra.gmra.mxu0 %vm903_vm0, %v4694_v3  ;;  %9448 = vmatprep.subr.mxu0 %v10526_v8 }
0x22c1   : > { %9450 = vmatprep.mubr.msk.f32.mxu0 %vm10527_vm1, %v10526_v8 }
0x2378   : > { %v4597_v6 = vpop.f32.mrf.mxu0 }
0x2379   : > { %v4598_v7 = vadd.f32 %v4597_v6, %v4527_v34 }
0x237a   : > { %v9417_v10 = vpop.f32.mrf.mxu0 }
0x237b   : > { %v4601_v23 = vmax.f32 %v4598_v7, 0.0 }
0x237d   : > { %9435 = vmatmul.mubr.msk.f32.vlgmr.msra.gmra.mxu1 %vm2118_vm11, %v4601_v23 }
0x237e   : > { %9455 = vmatprep.mubr.msk.f32.mxu1 %vm10527_vm1, %v10526_v8 }
0x2380   : > { %v4778_v11 = vpop.f32.mrf.mxu0 }
0x2381   : > { %v11517_v12 = vadd.f32 %v4778_v11, %v4708_v35 }
0x2382   : > { %v9447_v31 = vpop.f32.mrf.mxu0 }
0x2383   : > { %4950 = vrot.lane.b32.xlu0 %v11517_v12, %s10530_s1  ;;  %4783 = vrot.lane.b32.xlu1 %v11517_v12, %s10529_s16 }
0x2387   : > { %4948 = vrot.lane.b32.xlu0 %v11517_v12, %s10528_s14 }
0x23f5   : > { %v4784_v39 = vpop.permute.xlu1 %4783  ;;  %v4951_v15 = vpop.permute.xlu0 %4950 }
0x23f6   : > { %9449 = vmatpush3.xpose.msk.msra.mxu0 %vm1023_vm4, %v4784_v39 }
0x23f7   : > { %9458 = vmatprep.subr.mxu0 %v10526_v8 }
0x23f9   : > { %9451 = vmatmul.mubr.msk.f32.vlgmr.msra.gmra.mxu0 %vm1023_vm4, %v11517_v12  ;;  %v4949_v13 = vpop.permute.xlu0 %4948 }
0x23fa   : > { %9459 = vmatpush3.xpose.msk.msra.mxu0 %vm1023_vm4, %v4951_v15  ;;  %9460 = vmatprep.mubr.msk.f32.mxu0 %vm10527_vm1, %v10526_v8 }
0x23fb   : > { %9468 = vmatprep.subr.mxu0 %v10526_v8 }
0x23fd   : > { %9461 = vmatmul.mubr.msk.f32.vlgmr.msra.gmra.mxu0 %vm1023_vm4, %v4949_v13 }
0x23fe   : > { %9470 = vmatprep.mubr.msk.f32.mxu0 %vm10527_vm1, %v10526_v8  ;;  %9469 = vmatpush3.msra.mxu0 %v4702_v59 }
0x23ff   : > { %9478 = vmatprep.subr.mxu0 %v10526_v8 }
0x243d   : > { %v11536_v18 = vpop.f32.mrf.mxu1 }
0x243f   : > { %v9436_v19 = vpop.f32.mrf.mxu1 }
0x24b9   : > { %v4855_v20 = vpop.f32.mrf.mxu0 }
0x24ba   : > { %v4859_v24 = vmul.f32 0.35355338, %v4855_v20 }
0x24bb   : > { %v9452_v26 = vpop.f32.mrf.mxu0 }
0x24bc   : > { %v4860_v0 = vsel %vm11037_vm6, %v4859_v24, -1e+09 }
0x24bd   : > { %v5022_v28 = vpop.f32.mrf.mxu0  ;;  %v4861_v27 = vsel %vm1023_vm4, %v4860_v0, -inf }
0x24be   : > { %v5026_v29 = vmul.f32 0.35355338, %v5022_v28  ;;  %4862 = vmax.xlane.f32.xlu1 %v4861_v27 }
0x24bf   : > { %v9462_v32 = vpop.f32.mrf.mxu0 }
0x24c0   : > { %v5027_v30 = vsel %vm11037_vm6, %v5026_v29, -1e+09 }
0x24c1   : > { %v5028_v36 = vsel %vm1023_vm4, %v5027_v30, -inf }
0x24c2   : > { %5029 = vmax.xlane.f32.xlu0 %v5028_v36 }
0x2547   : > { %v4863_v63 = vpop.xlane.xlu1 %4862 }
0x2548   : > { %v4864_v38 = vsub.f32 %v4860_v0, %v4863_v63 }
0x254a   : > { %v4865_v41 = vmul.f32 1.442695, %v4864_v38 }
0x254b   : > { %v5030_v42 = vpop.xlane.xlu0 %5029 }
0x254c   : > { %9971 = vpow2.f32 %v4865_v41  ;;  %v5031_v14 = vsub.f32 %v5027_v30, %v5030_v42  ;;  %v4703_v30 = vld [vmem:[#allocation10 + $0x30] sm:$0xff] }
0x254e   : > { %v5032_v43 = vmul.f32 1.442695, %v5031_v14 }
0x2550   : > { %9973 = vpow2.f32 %v5032_v43 }
0x2559   : > { %v9972_v45 = vpop.eup %9971 }
0x255a   : > { %v4867_v46 = vsel %vm1023_vm4, %v9972_v45, 0.0 }
0x255b   : > { %4868 = vadd.xlane.f32.xlu0 %v4867_v46 }
0x255d   : > { %v9974_v47 = vpop.eup %9973 }
0x255e   : > { %v5034_v37 = vsel %vm1023_vm4, %v9974_v47, 0.0 }
0x255f   : > { %5035 = vadd.xlane.f32.xlu1 %v5034_v37 }
0x2570   : > { %5039 = vrot.lane.b32.xlu1 %v11517_v12, %s10532_s26 }
0x2571   : > { %4872 = vrot.lane.b32.xlu0 %v11517_v12, %s10533_s2 }
0x2574   : > { %5263 = vrot.lane.b32.xlu1 %v11517_v12, %s10534_s20 }
0x2575   : > { %5261 = vrot.lane.b32.xlu0 %v11517_v12, %s10535_s5 }
0x25e4   : > { %v4869_v49 = vpop.xlane.xlu0 %4868 }
0x25e5   : > { %9975 = vrcp.f32 %v4869_v49 }
0x25e8   : > { %v5036_v51 = vpop.xlane.xlu1 %5035  ;;  %v4873_v52 = vpop.permute.xlu0 %4872 }
0x25e9   : > { %9977 = vrcp.f32 %v5036_v51  ;;  %9454 = vmatpush3.msra.mxu1 %v4873_v52  ;;  %v4704_v52 = vld [vmem:[#allocation10 + $0x38] sm:$0xff] }
0x25ea   : > { %9463 = vmatprep.subr.mxu1 %v10526_v8 }
0x25ec   : > { %v5040_v54 = vpop.permute.xlu1 %5039  ;;  %v5262_v57 = vpop.permute.xlu0 %5261 }
0x25f0   : > { %v5264_v3 = vpop.permute.xlu1 %5263 }
0x25f2   : > { %v9976_v53 = vpop.eup %9975 }
0x25f3   : > { %v4871_v17 = vmul.f32 %v9976_v53, %v9972_v45 }
0x25f5   : > { %9456 = vmatmul.mubr.msk.f32.vlgmr.msra.gmra.mxu1 %vm1023_vm4, %v4871_v17 }
0x25f6   : > { %v9978_v55 = vpop.eup %9977  ;;  %9464 = vmatpush3.msra.mxu1 %v5040_v54  ;;  %9465 = vmatprep.mubr.msk.f32.mxu1 %vm10527_vm1, %v10526_v8 }
0x25f7   : > { %v5038_v56 = vmul.f32 %v9978_v55, %v9974_v47  ;;  %9473 = vmatprep.subr.mxu1 %v10526_v8 }
0x25f9   : > { %9466 = vmatmul.mubr.msk.f32.vlgmr.msra.gmra.mxu1 %vm1023_vm4, %v5038_v56 }
0x25fa   : > { %9475 = vmatprep.mubr.msk.f32.mxu1 %vm10527_vm1, %v10526_v8  ;;  %9474 = vmatpush3.msra.mxu1 %v4701_v58 }
0x25fb   : > { %9483 = vmatprep.subr.mxu1 %v10526_v8 }
0x26b5   : > { %v4944_v61 = vpop.f32.mrf.mxu1 }
0x26b6   : > { %9476 = vmatmul.mubr.msk.f32.vlgmr.msra.gmra.mxu1 %vm1023_vm4, %v4944_v61  ;;  %v4605_v61 = vrot.slane %v11503_v1, %v11481_v40 }
0x26b7   : > { %v9457_v21 = vpop.f32.mrf.mxu1  ;;  %9485 = vmatprep.mubr.msk.f32.mxu1 %vm10527_vm1, %v10526_v8 }
0x26b8   : > { %v5746_v21 = vrot.slane %v11510_v33, %v11000_v25 }
0x26b9   : > { %v5111_v2 = vpop.f32.mrf.mxu1 }
0x26ba   : > { %9471 = vmatmul.mubr.msk.f32.vlgmr.msra.gmra.mxu0 %vm1023_vm4, %v5111_v2 }
0x26bb   : > { %9479 = vmatpush3.xpose.msk.msra.mxu0 %vm1023_vm4, %v5264_v3  ;;  %v9467_v4 = vpop.f32.mrf.mxu1  ;;  %9480 = vmatprep.mubr.msk.f32.mxu0 %vm10527_vm1, %v10526_v8 }
0x26bc   : > { %9488 = vmatprep.subr.mxu0 %v10526_v8 }
0x26be   : > { %9481 = vmatmul.mubr.msk.f32.vlgmr.msra.gmra.mxu0 %vm1023_vm4, %v5262_v57  ;;  %v4676_v57 = vadd.f32 %v11536_v18, %v4605_v61 }
0x26bf   : > { %9490 = vmatprep.mubr.msk.f32.mxu0 %vm10527_vm1, %v10526_v8  ;;  %9489 = vmatpush3.msra.mxu0 %v4703_v30 }
0x26c0   : > { %9498 = vmatprep.subr.mxu0 %v10526_v8 }
0x2776   : > { %v5257_v5 = vpop.f32.mrf.mxu1 }
0x2778   : > { %v9477_v34 = vpop.f32.mrf.mxu1 }
0x277a   : > { %v5184_v6 = vpop.f32.mrf.mxu0 }
0x277b   : > { %v5258_v7 = vadd.f32 %v5257_v5, %v5184_v6  ;;  %v11621_v6 = vadd.f32 %v4676_v57, %v11458_v16  ;;  %v6017_v57 = vld [vmem:[#allocation14 + $0x28] sm:$0xff] }
0x277c   : > { %v9472_v10 = vpop.f32.mrf.mxu0 }
0x277d   : > { %v5985_v1 = vsel %vm903_vm0, %v11621_v6, 0.0 }
0x277e   : > { %v5335_v23 = vpop.f32.mrf.mxu0 }
0x277f   : > { %v5339_v35 = vmul.f32 0.35355338, %v5335_v23 }
0x2780   : > { %v9482_v11 = vpop.f32.mrf.mxu0 }
0x2781   : > { %v5340_v31 = vsel %vm11037_vm6, %v5339_v35, -1e+09 }
0x2782   : > { %v5341_v39 = vsel %vm1023_vm4, %v5340_v31, -inf }
0x2783   : > { %5342 = vmax.xlane.f32.xlu1 %v5341_v39 }
0x2794   : > { %5504 = vrot.lane.b32.xlu1 %v11517_v12, %s12076_s8 }
0x2798   : > { %5502 = vrot.lane.b32.xlu1 %v11517_v12, %s10537_s27 }
0x280c   : > { %v5343_v15 = vpop.xlane.xlu1 %5342 }
0x280d   : > { %v5344_v13 = vsub.f32 %v5340_v31, %v5343_v15 }
0x280f   : > { %v5345_v19 = vmul.f32 1.442695, %v5344_v13  ;;  %v5783_v13 = vld [vmem:[#allocation11 + $0x38] sm:$0xff] }
0x2810   : > { %v5505_v27 = vpop.permute.xlu1 %5504 }
0x2811   : > { %9979 = vpow2.f32 %v5345_v19  ;;  %v5782_v19 = vld [vmem:[#allocation11 + $0x30] sm:$0xff] }
0x2814   : > { %v5503_v32 = vpop.permute.xlu1 %5502 }
0x281e   : > { %v9980_v20 = vpop.eup %9979 }
0x281f   : > { %v5347_v24 = vsel %vm1023_vm4, %v9980_v20, 0.0 }
0x2820   : > { %5348 = vadd.xlane.f32.xlu0 %v5347_v24  ;;  %v5780_v24 = vld [vmem:[#allocation11 + $0x20] sm:$0xff] }
0x2836   : > { %5352 = vrot.lane.b32.xlu0 %v11517_v12, %s10536_s4 }
0x28a9   : > { %v5349_v26 = vpop.xlane.xlu0 %5348 }
0x28aa   : > { %9981 = vrcp.f32 %v5349_v26  ;;  %v5792_v26 = vld [vmem:[#allocation13 + $0x78] sm:$0xff] }
0x28ad   : > { %v5353_v0 = vpop.permute.xlu0 %5352 }
0x28ae   : > { %9484 = vmatpush3.msra.mxu1 %v5353_v0  ;;  %v5791_v0 = vld [vmem:[#allocation13 + $0x70] sm:$0xff] }
0x28af   : > { %9493 = vmatprep.subr.mxu1 %v10526_v8 }
0x28b7   : > { %v9982_v28 = vpop.eup %9981 }
0x28b8   : > { %v5351_v29 = vmul.f32 %v9982_v28, %v9980_v20  ;;  %v5781_v20 = vld [vmem:[#allocation11 + $0x28] sm:$0xff] }
0x28b9   : > { %v5790_v28 = vld [vmem:[#allocation13 + $0x68] sm:$0xff] }
0x28ba   : > { %9486 = vmatmul.mubr.msk.f32.vlgmr.msra.gmra.mxu1 %vm1023_vm4, %v5351_v29  ;;  %v5788_v29 = vld [vmem:[#allocation13 + $0x58] sm:$0xff] }
0x28bb   : > { %9494 = vmatpush3.xpose.msk.msra.mxu1 %vm1023_vm4, %v5505_v27  ;;  %9495 = vmatprep.mubr.msk.f32.mxu1 %vm10527_vm1, %v10526_v8  ;;  %v5789_v27 = vld [vmem:[#allocation13 + $0x60] sm:$0xff] }
0x28bc   : > { %9503 = vmatprep.subr.mxu1 %v10526_v8 }
0x28be   : > { %9496 = vmatmul.mubr.msk.f32.vlgmr.msra.gmra.mxu1 %vm1023_vm4, %v5503_v32 }
0x28bf   : > { %9505 = vmatprep.mubr.msk.f32.mxu1 %vm10527_vm1, %v10526_v8  ;;  %9504 = vmatpush3.msra.mxu1 %v4704_v52 }
0x28c0   : > { %9519 = vmatprep.subr.mxu1 %v10526_v8 }
0x297a   : > { %v5424_v36 = vpop.f32.mrf.mxu1 }
0x297b   : > { %9491 = vmatmul.mubr.msk.f32.vlgmr.msra.gmra.mxu0 %vm1023_vm4, %v5424_v36 }
0x297c   : > { %v9487_v63 = vpop.f32.mrf.mxu1  ;;  %9500 = vmatprep.mubr.msk.f32.mxu0 %vm10527_vm1, %v10526_v8 }
0x297e   : > { %v5576_v38 = vpop.f32.mrf.mxu1 }
0x297f   : > { %v5580_v41 = vmul.f32 0.35355338, %v5576_v38 }
0x2980   : > { %v9497_v42 = vpop.f32.mrf.mxu1 }
0x2981   : > { %v5581_v14 = vsel %vm11037_vm6, %v5580_v41, -1e+09 }
0x2982   : > { %v5582_v43 = vsel %vm1023_vm4, %v5581_v14, -inf }
0x2983   : > { %5583 = vmax.xlane.f32.xlu0 %v5582_v43 }
0x2999   : > { %5593 = vrot.lane.b32.xlu0 %v11517_v12, %s12148_s30 }
0x2a0c   : > { %v5584_v45 = vpop.xlane.xlu0 %5583 }
0x2a0d   : > { %v5585_v46 = vsub.f32 %v5581_v14, %v5584_v45 }
0x2a0f   : > { %v5586_v47 = vmul.f32 1.442695, %v5585_v46 }
0x2a10   : > { %v5594_v37 = vpop.permute.xlu0 %5593 }
0x2a11   : > { %9983 = vpow2.f32 %v5586_v47  ;;  %9499 = vmatpush3.msra.mxu0 %v5594_v37 }
0x2a12   : > { %9508 = vmatprep.subr.mxu0 %v10526_v8 }
0x2a1e   : > { %v9984_v49 = vpop.eup %9983 }
0x2a1f   : > { %v5588_v51 = vsel %vm1023_vm4, %v9984_v49, 0.0 }
0x2a20   : > { %5589 = vadd.xlane.f32.xlu1 %v5588_v51 }
0x2a3b   : > { %v5497_v53 = vpop.f32.mrf.mxu0 }
0x2a3c   : > { %v5501_v17 = vadd.f32 %v5497_v53, %v5258_v7  ;;  %v10045_v53 = vld [vmem:[%s12138_s29 + $0x4] sm:$0xf] }
0x2a3d   : > { %v9492_v54 = vpop.f32.mrf.mxu0 }
0x2a3e   : > { %v11655_v54 = vld [vmem:[%s12143_s21 + $0x8] sm:$0x3f] }
0x2aa9   : > { %v5590_v12 = vpop.xlane.xlu1 %5589 }
0x2aaa   : > { %9985 = vrcp.f32 %v5590_v12 }
0x2ab7   : > { %v9986_v55 = vpop.eup %9985 }
0x2ab8   : > { %v5592_v56 = vmul.f32 %v9986_v55, %v9984_v49  ;;  %v5777_v55 = vrot.slane %v10045_v53, %v11155_v62 }
0x2aba   : > { %9501 = vmatmul.mubr.msk.f32.vlgmr.msra.gmra.mxu0 %vm1023_vm4, %v5592_v56 }
0x2abb   : > { %9516 = vmatprep.mubr.msk.f32.mxu0 %vm10527_vm1, %v10526_v8  ;;  %9509 = vmatpush3.msra.mxu0 %v5783_v13 }
0x2abc   : > { %9510 = vmatprep.subr.mxu0 %v10526_v8 }
0x2abd   : > { %9511 = vmatpush3.msra.mxu0 %v5782_v19 }
0x2abe   : > { %9512 = vmatprep.subr.mxu0 %v10526_v8 }
0x2abf   : > { %9513 = vmatpush3.msra.mxu0 %v5781_v20 }
0x2ac0   : > { %9514 = vmatprep.subr.mxu0 %v10526_v8 }
0x2ac1   : > { %9515 = vmatpush3.msra.mxu0 %v5780_v24 }
0x2ac2   : > { %9538 = vmatprep.subr.mxu0 %v10526_v8 }
0x2b7a   : > { %v5665_v58 = vpop.f32.mrf.mxu0 }
0x2b7b   : > { %9506 = vmatmul.mubr.msk.f32.vlgmr.msra.gmra.mxu1 %vm1023_vm4, %v5665_v58  ;;  %v5998_v58 = vrot.slane %v11655_v54, %v10990_v22 }
0x2b7c   : > { %v9502_v59 = vpop.f32.mrf.mxu0  ;;  %9535 = vmatprep.mubr.msk.f32.mxu1 %vm10527_vm1, %v10526_v8  ;;  %9520 = vmatpush3.msra.mxu1 %v5792_v26 }
0x2b7d   : > { %9521 = vmatprep.subr.mxu1 %v10526_v8 }
0x2b7e   : > { %9522 = vmatpush3.msra.mxu1 %v5791_v0 }
0x2b7f   : > { %9523 = vmatprep.subr.mxu1 %v10526_v8 }
0x2b80   : > { %9524 = vmatpush3.msra.mxu1 %v5790_v28 }
0x2b81   : > { %9525 = vmatprep.subr.mxu1 %v10526_v8 }
0x2b82   : > { %9526 = vmatpush3.msra.mxu1 %v5789_v27 }
0x2b83   : > { %9527 = vmatprep.subr.mxu1 %v10526_v8 }
0x2b84   : > { %9528 = vmatpush3.msra.mxu1 %v5788_v29 }
0x2b85   : > { %9529 = vmatprep.subr.mxu1 %v10526_v8 }
0x2c3b   : > { %v5738_v2 = vpop.f32.mrf.mxu1 }
0x2c3c   : > { %v5742_v3 = vadd.f32 %v5738_v2, %v5501_v17  ;;  %v5762_v17 = vrot.slane %v10045_v53, %v11150_v60 }
0x2c3d   : > { %v9507_v4 = vpop.f32.mrf.mxu1 }
0x2c3e   : > { %v5747_v5 = vadd.f32 %v5746_v21, %v5742_v3  ;;  %v6019_v21 = vld [vmem:[#allocation14 + $0x38] sm:$0xff]  ;;  %v6018_v4 = vld [vmem:[#allocation14 + $0x30] sm:$0xff] }
0x2c40   : > { %v11618_v34 = vadd.f32 %v5747_v5, %v11298_v9 }
0x2c42   : > { %v5749_v7 = vsel %vm903_vm0, %v11618_v34, 0.0 }
0x2c43   : > { %5750 = vadd.xlane.f32.xlu1 %v5749_v7  ;;  %v6013_v7 = vrot.slane %v11655_v54, %v11000_v25 }
0x2c47   : > { %5986 = vadd.xlane.f32.xlu1 %v5985_v1  ;;  %v6016_v1 = vld [vmem:[#allocation14 + $0x20] sm:$0xff] }
0x2ccc   : > { %v5751_v10 = vpop.xlane.xlu1 %5750 }
0x2ccd   : > { %v5752_v23 = vmul.f32 0.03125, %v5751_v10 }
0x2ccf   : > { %v11628_v35 = vsub.f32 %v11618_v34, %v5752_v23  ;;  %v5787_v23 = vld [vmem:[#allocation13 + $0x50] sm:$0xff] }
0x2cd0   : > { %v5987_v18 = vpop.xlane.xlu1 %5986  ;;  %9530 = vmatpush3.msra.mxu1 %v5787_v23 }
0x2cd1   : > { %v5988_v11 = vmul.f32 0.03125, %v5987_v18  ;;  %v5754_v9 = vmul.f32 %v11628_v35, %v11628_v35  ;;  %v5763_v12 = vmul.f32 %v5762_v17, %v11628_v35  ;;  %9531 = vmatprep.subr.mxu1 %v10526_v8  ;;  %v5786_v35 = vld [vmem:[#allocation13 + $0x48] sm:$0xff]  ;;  %v5785_v18 = vld [vmem:[#allocation13 + $0x40] sm:$0xff] }
0x2cd2   : > { %9532 = vmatpush3.msra.mxu1 %v5786_v35 }
0x2cd3   : > { %v11633_v16 = vsub.f32 %v11621_v6, %v5988_v11  ;;  %v5755_v31 = vsel %vm903_vm0, %v5754_v9, 0.0  ;;  %9533 = vmatprep.subr.mxu1 %v10526_v8  ;;  %v5796_v11 = vrot.slane %v11510_v33, %v11150_v60 }
0x2cd4   : > { %5756 = vadd.xlane.f32.xlu1 %v5755_v31  ;;  %9534 = vmatpush3.msra.mxu1 %v5785_v18 }
0x2cd5   : > { %v5990_v39 = vmul.f32 %v11633_v16, %v11633_v16  ;;  %v5999_v3 = vmul.f32 %v5998_v58, %v11633_v16  ;;  %9554 = vmatprep.subr.mxu1 %v10526_v8 }
0x2cd7   : > { %v5991_v15 = vsel %vm903_vm0, %v5990_v39, 0.0  ;;  %v11682_v39 = vld [vmem:[%s12144_s10 + $0x8] sm:$0x3f] }
0x2cd8   : > { %5992 = vadd.xlane.f32.xlu1 %v5991_v15  ;;  %v6028_v13 = vrot.slane %v11682_v39, %v10990_v22 }
0x2d5d   : > { %v5757_v32 = vpop.xlane.xlu1 %5756 }
0x2d5e   : > { %v5758_v30 = vmul.f32 0.032258064, %v5757_v32 }
0x2d60   : > { %9987 = vrsqrt.f32 %v5758_v30  ;;  %vm5766_vm10 = vcmp.eq.f32.partialorder %v5758_v30, inf  ;;  %v5769_v42 = vand.u32 2147483648, %v5758_v30  ;;  %vm5768_vm12 = vcmp.eq.f32.partialorder %v5758_v30, 0.0 }
0x2d61   : > { %v5993_v36 = vpop.xlane.xlu1 %5992 }
0x2d62   : > { %v5994_v63 = vmul.f32 0.032258064, %v5993_v36 }
0x2d64   : > { %9989 = vrsqrt.f32 %v5994_v63  ;;  %vm6002_vm13 = vcmp.eq.f32.partialorder %v5994_v63, inf  ;;  %v6005_v37 = vand.u32 2147483648, %v5994_v63  ;;  %vm6004_vm14 = vcmp.eq.f32.partialorder %v5994_v63, 0.0 }
0x2d6d   : > { %v9988_v38 = vpop.eup %9987 }
0x2d6e   : > { %v5765_v41 = vmul.f32 %v9988_v38, %v5758_v30 }
0x2d70   : > { %v5767_v14 = vsel %vm5766_vm10, %v5758_v30, %v5765_v41 }
0x2d71   : > { %v9990_v43 = vpop.eup %9989  ;;  %v5770_v45 = vsel %vm5768_vm12, %v5769_v42, %v5767_v14 }
0x2d72   : > { %v5771_v46 = vadd.f32 1e-06, %v5770_v45  ;;  %v6001_v47 = vmul.f32 %v9990_v43, %v5994_v63 }
0x2d74   : > { %9991 = vrcp.f32 %v5771_v46  ;;  %v6003_v49 = vsel %vm6002_vm13, %v5994_v63, %v6001_v47 }
0x2d75   : > { %v6006_v51 = vsel %vm6004_vm14, %v6005_v37, %v6003_v49 }
0x2d76   : > { %v6007_v52 = vadd.f32 1e-06, %v6006_v51 }
0x2d78   : > { %9993 = vrcp.f32 %v6007_v52 }
0x2d81   : > { %v9992_v56 = vpop.eup %9991 }
0x2d82   : > { %v5773_v59 = vmul.f32 %v9992_v56, %v5763_v12 }
0x2d84   : > { %v5778_v61 = vadd.f32 %v5777_v55, %v5773_v59 }
0x2d85   : > { %v9994_v2 = vpop.eup %9993 }
0x2d86   : > { %9517 = vmatmul.mubr.msk.f32.vlgmr.msra.gmra.mxu0 %vm903_vm0, %v5778_v61  ;;  %v6009_v5 = vmul.f32 %v9994_v2, %v5999_v3 }
0x2d87   : > { %9539 = vmatpush3.msra.mxu0 %v6019_v21  ;;  %9546 = vmatprep.mubr.msk.f32.mxu0 %vm10527_vm1, %v10526_v8 }
0x2d88   : > { %9540 = vmatprep.subr.mxu0 %v10526_v8  ;;  %v6014_v10 = vadd.f32 %v6013_v7, %v6009_v5  ;;  %v6022_v5 = vld [vmem:[#allocation17 + $0x28] sm:$0xff] }
0x2d89   : > { %9541 = vmatpush3.msra.mxu0 %v6018_v4 }
0x2d8a   : > { %9542 = vmatprep.subr.mxu0 %v10526_v8 }
0x2d8b   : > { %9543 = vmatpush3.msra.mxu0 %v6017_v57  ;;  %v6021_v57 = vld [vmem:[#allocation17 + $0x20] sm:$0xff] }
0x2d8c   : > { %9544 = vmatprep.subr.mxu0 %v10526_v8 }
0x2d8d   : > { %9545 = vmatpush3.msra.mxu0 %v6016_v1 }
0x2d8e   : > { %9547 = vmatmul.mubr.msk.f32.vlgmr.msra.gmra.mxu0 %vm903_vm0, %v6014_v10  ;;  %9549 = vmatprep.subr.mxu0 %v10526_v8 }
0x2d8f   : > { %9551 = vmatprep.mubr.msk.f32.mxu0 %vm10527_vm1, %v10526_v8 }
0x2e46   : > { %v5866_v9 = vpop.f32.mrf.mxu0 }
0x2e47   : > { %v5867_v16 = vadd.f32 %v5866_v9, %v5796_v11 }
0x2e48   : > { %v9518_v31 = vpop.f32.mrf.mxu0 }
0x2e49   : > { %v5870_v15 = vmax.f32 %v5867_v16, 0.0 }
0x2e4b   : > { %9536 = vmatmul.mubr.msk.f32.vlgmr.msra.gmra.mxu1 %vm2118_vm11, %v5870_v15 }
0x2e4c   : > { %9556 = vmatprep.mubr.msk.f32.mxu1 %vm10527_vm1, %v10526_v8 }
0x2e4e   : > { %v6098_v19 = vpop.f32.mrf.mxu0 }
0x2e4f   : > { %v11689_v20 = vadd.f32 %v6098_v19, %v6028_v13 }
0x2e50   : > { %v9548_v24 = vpop.f32.mrf.mxu0 }
0x2e51   : > { %6270 = vrot.lane.b32.xlu1 %v11689_v20, %s10530_s1  ;;  %6103 = vrot.lane.b32.xlu0 %v11689_v20, %s10529_s16 }
0x2e55   : > { %6268 = vrot.lane.b32.xlu0 %v11689_v20, %s10528_s14 }
0x2ec3   : > { %v6104_v26 = vpop.permute.xlu0 %6103  ;;  %v6271_v0 = vpop.permute.xlu1 %6270 }
0x2ec4   : > { %9550 = vmatpush3.xpose.msk.msra.mxu0 %vm1023_vm4, %v6104_v26 }
0x2ec5   : > { %9559 = vmatprep.subr.mxu0 %v10526_v8 }
0x2ec7   : > { %9552 = vmatmul.mubr.msk.f32.vlgmr.msra.gmra.mxu0 %vm1023_vm4, %v11689_v20  ;;  %v6269_v28 = vpop.permute.xlu0 %6268 }
0x2ec8   : > { %9560 = vmatpush3.xpose.msk.msra.mxu0 %vm1023_vm4, %v6271_v0  ;;  %9561 = vmatprep.mubr.msk.f32.mxu0 %vm10527_vm1, %v10526_v8 }
0x2ec9   : > { %9569 = vmatprep.subr.mxu0 %v10526_v8 }
0x2ecb   : > { %9562 = vmatmul.mubr.msk.f32.vlgmr.msra.gmra.mxu0 %vm1023_vm4, %v6269_v28 }
0x2ecc   : > { %9571 = vmatprep.mubr.msk.f32.mxu0 %vm10527_vm1, %v10526_v8  ;;  %9570 = vmatpush3.msra.mxu0 %v6022_v5 }
0x2ecd   : > { %9579 = vmatprep.subr.mxu0 %v10526_v8 }
0x2f0b   : > { %v11708_v27 = vpop.f32.mrf.mxu1 }
0x2f0d   : > { %v9537_v29 = vpop.f32.mrf.mxu1 }
0x2f87   : > { %v6175_v32 = vpop.f32.mrf.mxu0 }
0x2f88   : > { %v6179_v30 = vmul.f32 0.35355338, %v6175_v32 }
0x2f89   : > { %v9553_v36 = vpop.f32.mrf.mxu0 }
0x2f8a   : > { %v6180_v63 = vsel %vm11222_vm15, %v6179_v30, -1e+09 }
0x2f8b   : > { %v6342_v38 = vpop.f32.mrf.mxu0  ;;  %v6181_v41 = vsel %vm1023_vm4, %v6180_v63, -inf }
0x2f8c   : > { %v6346_v42 = vmul.f32 0.35355338, %v6342_v38  ;;  %6182 = vmax.xlane.f32.xlu0 %v6181_v41 }
0x2f8d   : > { %v9563_v14 = vpop.f32.mrf.mxu0 }
0x2f8e   : > { %v6347_v43 = vsel %vm11222_vm15, %v6346_v42, -1e+09 }
0x2f8f   : > { %v6348_v45 = vsel %vm1023_vm4, %v6347_v43, -inf }
0x2f90   : > { %6349 = vmax.xlane.f32.xlu1 %v6348_v45  ;;  %v6023_v45 = vld [vmem:[#allocation17 + $0x30] sm:$0xff] }
0x2fa1   : > { %6359 = vrot.lane.b32.xlu1 %v11689_v20, %s10532_s26  ;;  %s12149_s26 = smov 72  }
0x2fa5   : > { %6581 = vrot.lane.b32.xlu1 %v11689_v20, %s10535_s5 }
0x3015   : > { %v6183_v46 = vpop.xlane.xlu0 %6182 }
0x3016   : > { %v6184_v47 = vsub.f32 %v6180_v63, %v6183_v46  ;;  %v5874_v46 = vrot.slane %v11510_v33, %v11155_v62 }
0x3018   : > { %v6185_v37 = vmul.f32 1.442695, %v6184_v47 }
0x3019   : > { %v6350_v49 = vpop.xlane.xlu1 %6349 }
0x301a   : > { %9995 = vpow2.f32 %v6185_v37  ;;  %v6351_v51 = vsub.f32 %v6347_v43, %v6350_v49  ;;  %v5945_v49 = vadd.f32 %v11708_v27, %v5874_v46 }
0x301c   : > { %v6352_v52 = vmul.f32 1.442695, %v6351_v51 }
0x301d   : > { %v6360_v2 = vpop.permute.xlu1 %6359 }
0x301e   : > { %9997 = vpow2.f32 %v6352_v52 }
0x3021   : > { %v6582_v18 = vpop.permute.xlu1 %6581 }
0x3027   : > { %v9996_v53 = vpop.eup %9995 }
0x3028   : > { %v6187_v17 = vsel %vm1023_vm4, %v9996_v53, 0.0 }
0x3029   : > { %6188 = vadd.xlane.f32.xlu0 %v6187_v17 }
0x302b   : > { %v9998_v12 = vpop.eup %9997 }
0x302c   : > { %v6354_v55 = vsel %vm1023_vm4, %v9998_v12, 0.0 }
0x302d   : > { %6355 = vadd.xlane.f32.xlu0 %v6354_v55 }
0x3043   : > { %6192 = vrot.lane.b32.xlu0 %v11689_v20, %s10533_s2  ;;  %s10540_s2 = smov [#allocation23]  }
0x3047   : > { %6583 = vrot.lane.b32.xlu0 %v11689_v20, %s10534_s20 }
0x30b2   : > { %v6189_v56 = vpop.xlane.xlu0 %6188 }
0x30b3   : > { %9999 = vrcp.f32 %v6189_v56 }
0x30b6   : > { %v6356_v58 = vpop.xlane.xlu0 %6355 }
0x30b7   : > { %10001 = vrcp.f32 %v6356_v58 }
0x30ba   : > { %v6193_v59 = vpop.permute.xlu0 %6192 }
0x30bb   : > { %9555 = vmatpush3.msra.mxu1 %v6193_v59 }
0x30bc   : > { %9564 = vmatprep.subr.mxu1 %v10526_v8 }
0x30be   : > { %v6584_v23 = vpop.permute.xlu0 %6583 }
0x30c0   : > { %v10000_v61 = vpop.eup %9999 }
0x30c1   : > { %v6191_v21 = vmul.f32 %v10000_v61, %v9996_v53 }
0x30c3   : > { %9557 = vmatmul.mubr.msk.f32.vlgmr.msra.gmra.mxu1 %vm1023_vm4, %v6191_v21 }
0x30c4   : > { %v10002_v3 = vpop.eup %10001  ;;  %9565 = vmatpush3.msra.mxu1 %v6360_v2  ;;  %9566 = vmatprep.mubr.msk.f32.mxu1 %vm10527_vm1, %v10526_v8 }
0x30c5   : > { %v6358_v4 = vmul.f32 %v10002_v3, %v9998_v12  ;;  %9574 = vmatprep.subr.mxu1 %v10526_v8  ;;  %v5948_v12 = vadd.f32 %v5945_v49, %v11618_v34 }
0x30c7   : > { %9567 = vmatmul.mubr.msk.f32.vlgmr.msra.gmra.mxu1 %vm1023_vm4, %v6358_v4  ;;  %v5951_v33 = vsel %vm903_vm0, %v5948_v12, 0.0 }
0x30c8   : > { %9576 = vmatprep.mubr.msk.f32.mxu1 %vm10527_vm1, %v10526_v8  ;;  %9575 = vmatpush3.msra.mxu1 %v6021_v57 }
0x30c9   : > { %9584 = vmatprep.subr.mxu1 %v10526_v8 }
0x3183   : > { %v6264_v7 = vpop.f32.mrf.mxu1 }
0x3184   : > { %9577 = vmatmul.mubr.msk.f32.vlgmr.msra.gmra.mxu1 %vm1023_vm4, %v6264_v7 }
0x3185   : > { %v9558_v1 = vpop.f32.mrf.mxu1  ;;  %9586 = vmatprep.mubr.msk.f32.mxu1 %vm10527_vm1, %v10526_v8 }
0x3187   : > { %v6431_v10 = vpop.f32.mrf.mxu1 }
0x3188   : > { %9572 = vmatmul.mubr.msk.f32.vlgmr.msra.gmra.mxu0 %vm1023_vm4, %v6431_v10 }
0x3189   : > { %9580 = vmatpush3.xpose.msk.msra.mxu0 %vm1023_vm4, %v6584_v23  ;;  %v9568_v35 = vpop.f32.mrf.mxu1  ;;  %9581 = vmatprep.mubr.msk.f32.mxu0 %vm10527_vm1, %v10526_v8  ;;  %v7066_v23 = vrot.slane %v11682_v39, %v11150_v60 }
0x318a   : > { %9589 = vmatprep.subr.mxu0 %v10526_v8 }
0x318c   : > { %9582 = vmatmul.mubr.msk.f32.vlgmr.msra.gmra.mxu0 %vm1023_vm4, %v6582_v18 }
0x318d   : > { %9591 = vmatprep.mubr.msk.f32.mxu0 %vm10527_vm1, %v10526_v8  ;;  %9590 = vmatpush3.msra.mxu0 %v6023_v45 }
0x318e   : > { %9599 = vmatprep.subr.mxu0 %v10526_v8 }
0x3244   : > { %v6577_v11 = vpop.f32.mrf.mxu1 }
0x3246   : > { %v9578_v9 = vpop.f32.mrf.mxu1 }
0x3248   : > { %v6504_v16 = vpop.f32.mrf.mxu0 }
0x3249   : > { %v6578_v31 = vadd.f32 %v6577_v11, %v6504_v16 }
0x324a   : > { %v9573_v15 = vpop.f32.mrf.mxu0 }
0x324c   : > { %v6655_v13 = vpop.f32.mrf.mxu0 }
0x324d   : > { %v6659_v19 = vmul.f32 0.35355338, %v6655_v13 }
0x324e   : > { %v9583_v24 = vpop.f32.mrf.mxu0 }
0x324f   : > { %v6660_v26 = vsel %vm11222_vm15, %v6659_v19, -1e+09  ;;  %v7102_v24 = vld [vmem:[#allocation16 + $0x30] sm:$0xff] }
0x3250   : > { %v6661_v0 = vsel %vm1023_vm4, %v6660_v26, -inf }
0x3251   : > { %6662 = vmax.xlane.f32.xlu0 %v6661_v0  ;;  %v7101_v0 = vld [vmem:[#allocation16 + $0x28] sm:$0xff] }
0x3267   : > { %6672 = vrot.lane.b32.xlu0 %v11689_v20, %s10536_s4  ;;  %s10395_s4 = sshll.u32 %s10540_s2, 4  ;;  %s10396_s4 = int_to_ptr.vmem [resolvable:$false] %s10395_s4 }
0x326b   : > { %6822 = vrot.lane.b32.xlu0 %v11689_v20, %s10537_s27 }
0x32da   : > { %v6663_v28 = vpop.xlane.xlu0 %6662 }
0x32db   : > { %v6664_v29 = vsub.f32 %v6660_v26, %v6663_v28  ;;  %v7103_v26 = vld [vmem:[#allocation16 + $0x38] sm:$0xff] }
0x32dd   : > { %v6665_v32 = vmul.f32 1.442695, %v6664_v29 }
0x32de   : > { %v6673_v30 = vpop.permute.xlu0 %6672 }
0x32df   : > { %10003 = vpow2.f32 %v6665_v32  ;;  %9585 = vmatpush3.msra.mxu1 %v6673_v30 }
0x32e0   : > { %9594 = vmatprep.subr.mxu1 %v10526_v8 }
0x32e2   : > { %v6823_v43 = vpop.permute.xlu0 %6822 }
0x32ec   : > { %v10004_v36 = vpop.eup %10003 }
0x32ed   : > { %v6667_v63 = vsel %vm1023_vm4, %v10004_v36, 0.0 }
0x32ee   : > { %6668 = vadd.xlane.f32.xlu1 %v6667_v63 }
0x32ff   : > { %6824 = vrot.lane.b32.xlu1 %v11689_v20, %s12149_s26 }
0x3377   : > { %v6669_v38 = vpop.xlane.xlu1 %6668 }
0x3378   : > { %10005 = vrcp.f32 %v6669_v38 }
0x337b   : > { %v6825_v14 = vpop.permute.xlu1 %6824 }
0x3385   : > { %v10006_v41 = vpop.eup %10005 }
0x3386   : > { %v6671_v42 = vmul.f32 %v10006_v41, %v10004_v36 }
0x3388   : > { %9587 = vmatmul.mubr.msk.f32.vlgmr.msra.gmra.mxu1 %vm1023_vm4, %v6671_v42 }
0x3389   : > { %9595 = vmatpush3.xpose.msk.msra.mxu1 %vm1023_vm4, %v6825_v14  ;;  %9596 = vmatprep.mubr.msk.f32.mxu1 %vm10527_vm1, %v10526_v8 }
0x338a   : > { %9604 = vmatprep.subr.mxu1 %v10526_v8 }
0x338c   : > { %9597 = vmatmul.mubr.msk.f32.vlgmr.msra.gmra.mxu1 %vm1023_vm4, %v6823_v43 }
0x338d   : > { %9606 = vmatprep.mubr.msk.f32.mxu1 %vm10527_vm1, %v10526_v8  ;;  %9605 = vmatpush3.msra.mxu1 %v6024_v48 }
0x338e   : > { %9620 = vmatprep.subr.mxu1 %v10526_v8 }
0x3448   : > { %v6744_v47 = vpop.f32.mrf.mxu1 }
0x3449   : > { %9592 = vmatmul.mubr.msk.f32.vlgmr.msra.gmra.mxu0 %vm1023_vm4, %v6744_v47  ;;  %v8866_v47 = vld [vmem:[%s12147_s9 + $0x2] sm:$0x3] }
0x344a   : > { %v9588_v37 = vpop.f32.mrf.mxu1  ;;  %9601 = vmatprep.mubr.msk.f32.mxu0 %vm10527_vm1, %v10526_v8  ;;  %v5979_v49 = vrot.slane %v8866_v47, %v11000_v25 }
0x344b   : > { %v5964_v37 = vrot.slane %v8866_v47, %v10990_v22 }
0x344c   : > { %v6896_v51 = vpop.f32.mrf.mxu1 }
0x344d   : > { %v6900_v52 = vmul.f32 0.35355338, %v6896_v51 }
0x344e   : > { %v9598_v53 = vpop.f32.mrf.mxu1 }
0x344f   : > { %v6901_v17 = vsel %vm11222_vm15, %v6900_v52, -1e+09 }
0x3450   : > { %v6902_v55 = vsel %vm1023_vm4, %v6901_v17, -inf }
0x3451   : > { %6903 = vmax.xlane.f32.xlu1 %v6902_v55 }
0x3455   : > { %5952 = vadd.xlane.f32.xlu1 %v5951_v33 }
0x34da   : > { %v6904_v56 = vpop.xlane.xlu1 %6903 }
0x34db   : > { %v6905_v58 = vsub.f32 %v6901_v17, %v6904_v56 }
0x34dd   : > { %v6906_v59 = vmul.f32 1.442695, %v6905_v58 }
0x34de   : > { %v5953_v1 = vpop.xlane.xlu1 %5952 }
0x34df   : > { %10007 = vpow2.f32 %v6906_v59  ;;  %v5954_v10 = vmul.f32 0.03125, %v5953_v1 }
0x34e1   : > { %v5955_v9 = vsub.f32 %v5948_v12, %v5954_v10  ;;  %v7112_v12 = vrot.slane %v11682_v39, %v11000_v25 }
0x34e3   : > { %v5956_v13 = vmul.f32 %v5955_v9, %v5955_v9  ;;  %v5965_v51 = vmul.f32 %v5964_v37, %v5955_v9 }
0x34e5   : > { %v5957_v19 = vsel %vm903_vm0, %v5956_v13, 0.0 }
0x34ec   : > { %v10008_v61 = vpop.eup %10007 }
0x34ed   : > { %v6908_v27 = vsel %vm1023_vm4, %v10008_v61, 0.0 }
0x34ee   : > { %6909 = vadd.xlane.f32.xlu0 %v6908_v27 }
0x3504   : > { %6913 = vrot.lane.b32.xlu0 %v11689_v20, %s12148_s30  ;;  %s871_s30 = scalar_lea.vmem [#allocation23], %s10930_s0 }
0x3505   : > { %s8498_s8 = sshll.u32 %s871_s30, 4  ;;  %s8499_s8 = int_to_ptr.vmem [resolvable:$true] %s8498_s8 }
0x3506   : > { %p10398_p4 = scmp.lt.s32.totalorder %s8499_s8, %s10396_s4 }
0x3508   : > { %7194 = vrot.lane.b32.xlu0 %v7102_v24, %s10529_s16 }
0x3509   : > { %v6817_v21 = vpop.f32.mrf.mxu0 }
0x350a   : > { %v6821_v34 = vadd.f32 %v6817_v21, %v6578_v31 }
0x350b   : > { %v9593_v2 = vpop.f32.mrf.mxu0 }
0x350c   : > { %7192 = vrot.lane.b32.xlu0 %v7101_v0, %s10529_s16 }
0x3577   : > { %v6910_v3 = vpop.xlane.xlu0 %6909 }
0x3578   : > { %10009 = vrcp.f32 %v6910_v3 }
0x357b   : > { %v6914_v4 = vpop.permute.xlu0 %6913 }
0x357c   : > { %9600 = vmatpush3.msra.mxu0 %v6914_v4  ;;  %v7082_v4 = vrot.slane %v11655_v54, %v11150_v60 }
0x357d   : > { %9609 = vmatprep.subr.mxu0 %v10526_v8 }
0x357f   : > { %v7195_v55 = vpop.permute.xlu0 %7194 }
0x3583   : > { %v7193_v58 = vpop.permute.xlu0 %7192 }
0x3585   : > { %v10010_v57 = vpop.eup %10009 }
0x3586   : > { %v6912_v5 = vmul.f32 %v10010_v57, %v10008_v61 }
0x3588   : > { %9602 = vmatmul.mubr.msk.f32.vlgmr.msra.gmra.mxu0 %vm1023_vm4, %v6912_v5  ;;  %v7097_v5 = vrot.slane %v11655_v54, %v11155_v62 }
0x3589   : > { %9617 = vmatprep.mubr.msk.f32.mxu0 %vm10527_vm1, %v10526_v8  ;;  %9610 = vmatpush3.msra.mxu0 %v7103_v26 }
0x358a   : > { %9611 = vmatprep.subr.mxu0 %v10526_v8 }
0x358b   : > { %9612 = vmatpush3.msra.mxu0 %v7102_v24 }
0x358c   : > { %9613 = vmatprep.subr.mxu0 %v10526_v8 }
0x358d   : > { %9614 = vmatpush3.msra.mxu0 %v7101_v0 }
0x358e   : > { %9615 = vmatprep.subr.mxu0 %v10526_v8 }
0x3648   : > { %v6985_v20 = vpop.f32.mrf.mxu0 }
0x3649   : > { %9607 = vmatmul.mubr.msk.f32.vlgmr.msra.gmra.mxu1 %vm1023_vm4, %v6985_v20 }
0x364a   : > { %v9603_v7 = vpop.f32.mrf.mxu0  ;;  %9628 = vmatprep.mubr.msk.f32.mxu1 %vm10527_vm1, %v10526_v8 }
0x3709   : > { %v7058_v35 = vpop.f32.mrf.mxu1 }
0x370a   : > { %v7062_v18 = vadd.f32 %v7058_v35, %v6821_v34 }
0x370b   : > { %v9608_v11 = vpop.f32.mrf.mxu1 }
0x370c   : > { %v7067_v16 = vadd.f32 %v7066_v23, %v7062_v18 }
0x370e   : > { %v11792_v31 = vadd.f32 %v7067_v16, %v11621_v6  ;;  %v7100_v6 = vld [vmem:[#allocation16 + $0x20] sm:$0xff] }
0x370f   : > { %9616 = vmatpush3.msra.mxu0 %v7100_v6  ;;  %7190 = vrot.lane.b32.xlu0 %v7100_v6, %s10529_s16 }
0x3710   : > { %v7069_v15 = vsel %vm903_vm0, %v11792_v31, 0.0  ;;  %9631 = vmatprep.subr.mxu0 %v10526_v8 }
0x3711   : > { %7070 = vadd.xlane.f32.xlu1 %v7069_v15 }
0x3713   : > { %7203 = vrot.lane.b32.xlu0 %v7112_v12, %s10529_s16 }
0x3715   : > { %5958 = vadd.xlane.f32.xlu1 %v5957_v19 }
0x3781   : > { %v7191_v61 = vpop.permute.xlu0 %7190 }
0x3785   : > { %v7204_v10 = vpop.permute.xlu0 %7203 }
0x379a   : > { %v7071_v28 = vpop.xlane.xlu1 %7070 }
0x379b   : > { %v7072_v29 = vmul.f32 0.03125, %v7071_v28 }
0x379d   : > { %v7073_v32 = vsub.f32 %v11792_v31, %v7072_v29 }
0x379e   : > { %v5959_v30 = vpop.xlane.xlu1 %5958 }
0x379f   : > { %v5960_v36 = vmul.f32 0.032258064, %v5959_v30  ;;  %v7074_v63 = vmul.f32 %v7073_v32, %v7073_v32  ;;  %v7083_v57 = vmul.f32 %v7082_v4, %v7073_v32 }
0x37a1   : > { %10011 = vrsqrt.f32 %v5960_v36  ;;  %v7075_v38 = vsel %vm903_vm0, %v7074_v63, 0.0  ;;  %vm5968_vm15 = vcmp.eq.f32.partialorder %v5960_v36, inf  ;;  %v5971_v14 = vand.u32 2147483648, %v5960_v36 }
0x37a2   : > { %7076 = vadd.xlane.f32.xlu1 %v7075_v38  ;;  %vm5970_vm2 = vcmp.eq.f32.partialorder %v5960_v36, 0.0 }
0x37ae   : > { %v10012_v41 = vpop.eup %10011 }
0x37af   : > { %v5967_v42 = vmul.f32 %v10012_v41, %v5960_v36 }
0x37b1   : > { %v5969_v43 = vsel %vm5968_vm15, %v5960_v36, %v5967_v42 }
0x37b2   : > { %v5972_v45 = vsel %vm5970_vm2, %v5971_v14, %v5969_v43 }
0x37b3   : > { %v5973_v46 = vadd.f32 1e-06, %v5972_v45  ;;  %7196 = vrot.lane.b32.xlu1 %v7103_v26, %s10529_s16 }
0x37b5   : > { %10013 = vrcp.f32 %v5973_v46 }
0x37c2   : > { %v10014_v52 = vpop.eup %10013 }
0x37c3   : > { %v5975_v53 = vmul.f32 %v10014_v52, %v5965_v51  ;;  %v7106_v52 = vld [vmem:[#allocation19 + $0x28] sm:$0xff] }
0x37c5   : > { %v5980_v17 = vadd.f32 %v5979_v49, %v5975_v53 }
0x37c7   : > { %8445 = vst.msk [vmem:[%s871_s30] sm:$0xff] %vm903_vm0, %v5980_v17 }
0x382b   : > { %v7077_v33 = vpop.xlane.xlu1 %7076 }
0x382c   : > { %v7078_v56 = vmul.f32 0.032258064, %v7077_v33  ;;  %v7105_v33 = vld [vmem:[#allocation19 + $0x20] sm:$0xff] }
0x382e   : > { %10015 = vrsqrt.f32 %v7078_v56  ;;  %vm7086_vm3 = vcmp.eq.f32.partialorder %v7078_v56, inf  ;;  %v7089_v21 = vand.u32 2147483648, %v7078_v56  ;;  %vm7088_vm5 = vcmp.eq.f32.partialorder %v7078_v56, 0.0 }
0x382f   : > { %v7197_v59 = vpop.permute.xlu1 %7196 }
0x3830   : > { %9621 = vmatpush3.msra.mxu1 %v7197_v59 }
0x3831   : > { %9622 = vmatprep.subr.mxu1 %v10526_v8 }
0x3832   : > { %9623 = vmatpush3.msra.mxu1 %v7195_v55 }
0x3833   : > { %9624 = vmatprep.subr.mxu1 %v10526_v8 }
0x3834   : > { %9625 = vmatpush3.msra.mxu1 %v7193_v58 }
0x3835   : > { %9626 = vmatprep.subr.mxu1 %v10526_v8 }
0x3836   : > { %9627 = vmatpush3.msra.mxu1 %v7191_v61 }
0x3837   : > { %9629 = vmatmul.mubr.msk.f32.vlgmr.msra.gmra.mxu1 %vm903_vm0, %v5980_v17  ;;  %9636 = vmatprep.subr.mxu1 %v10526_v8 }
0x3838   : > { %9638 = vmatprep.mubr.msk.f32.mxu1 %vm10527_vm1, %v10526_v8 }
0x383b   : > { %v10016_v27 = vpop.eup %10015 }
0x383c   : > { %v7085_v48 = vmul.f32 %v10016_v27, %v7078_v56 }
0x383e   : > { %v7087_v34 = vsel %vm7086_vm3, %v7078_v56, %v7085_v48 }
0x383f   : > { %v7090_v2 = vsel %vm7088_vm5, %v7089_v21, %v7087_v34 }
0x3840   : > { %v7091_v3 = vadd.f32 1e-06, %v7090_v2 }
0x3842   : > { %10017 = vrcp.f32 %v7091_v3 }
0x384f   : > { %v10018_v20 = vpop.eup %10017 }
0x3850   : > { %v7093_v7 = vmul.f32 %v10018_v20, %v7083_v57 }
0x3852   : > { %v7098_v1 = vadd.f32 %v7097_v5, %v7093_v7 }
0x3854   : > { %9618 = vmatmul.mubr.msk.f32.vlgmr.msra.gmra.mxu0 %vm903_vm0, %v7098_v1 }
0x3855   : > { %9633 = vmatprep.mubr.msk.f32.mxu0 %vm10527_vm1, %v10526_v8 }
0x38f7   : > { %v7275_v23 = vpop.f32.mrf.mxu1 }
0x38f8   : > { %v11833_v35 = vadd.f32 %v7275_v23, %v7204_v10 }
0x38f9   : > { %v9630_v18 = vpop.f32.mrf.mxu1 }
0x38fa   : > { %7446 = vrot.lane.b32.xlu1 %v11833_v35, %s10528_s14  ;;  %9632 = vmatpush3.xpose.msk.msra.mxu0 %vm1023_vm4, %v11833_v35 }
0x38fb   : > { %9641 = vmatprep.subr.mxu0 %v10526_v8 }
0x3914   : > { %v7182_v60 = vpop.f32.mrf.mxu0 }
0x3915   : > { %v11840_v54 = vadd.f32 %v7182_v60, %v7112_v12 }
0x3916   : > { %v9619_v11 = vpop.f32.mrf.mxu0 }
0x3917   : > { %7444 = vrot.lane.b32.xlu0 %v11840_v54, %s10528_s14  ;;  %9634 = vmatmul.mubr.msk.f32.vlgmr.msra.gmra.mxu0 %vm1023_vm4, %v11840_v54  ;;  %s10397_s14 = scalar_lea.vmem %s10396_s4, 256 }
0x3918   : > { %9643 = vmatprep.mubr.msk.f32.mxu0 %vm10527_vm1, %v10526_v8 }
0x396c   : > { %v7447_v9 = vpop.permute.xlu1 %7446 }
0x396d   : > { %9642 = vmatpush3.xpose.msk.msra.mxu0 %vm1023_vm4, %v7447_v9 }
0x396e   : > { %9651 = vmatprep.subr.mxu0 %v10526_v8 }
0x3989   : > { %v7445_v16 = vpop.permute.xlu0 %7444 }
0x398a   : > { %9644 = vmatmul.mubr.msk.f32.vlgmr.msra.gmra.mxu0 %vm1023_vm4, %v7445_v16 }
0x398b   : > { %9653 = vmatprep.mubr.msk.f32.mxu0 %vm10527_vm1, %v10526_v8  ;;  %9652 = vmatpush3.msra.mxu0 %v7106_v52  ;;  %v8242_v52 = vrot.slane %v11682_v39, %v11155_v62  ;;  %v8279_v62 = vld [vmem:[#allocation20 + $0x38] sm:$0xff] }
0x398c   : > { %9661 = vmatprep.subr.mxu0 %v10526_v8 }
0x39d7   : > { %v7351_v15 = vpop.f32.mrf.mxu0 }
0x39d8   : > { %v7355_v13 = vmul.f32 0.35355338, %v7351_v15 }
0x39d9   : > { %v9635_v19 = vpop.f32.mrf.mxu0 }
0x39da   : > { %v7356_v24 = vsel %vm11037_vm6, %v7355_v13, -1e+09  ;;  %v7107_v19 = vld [vmem:[#allocation19 + $0x30] sm:$0xff] }
0x39db   : > { %v7357_v26 = vsel %vm1023_vm4, %v7356_v24, -inf }
0x39dc   : > { %7358 = vmax.xlane.f32.xlu1 %v7357_v26 }
0x3a4a   : > { %v7518_v0 = vpop.f32.mrf.mxu0 }
0x3a4b   : > { %v7522_v6 = vmul.f32 0.35355338, %v7518_v0 }
0x3a4c   : > { %v9645_v28 = vpop.f32.mrf.mxu0 }
0x3a4d   : > { %v7523_v29 = vsel %vm11037_vm6, %v7522_v6, -1e+09 }
0x3a4e   : > { %v7524_v32 = vsel %vm1023_vm4, %v7523_v29, -inf }
0x3a4f   : > { %7525 = vmax.xlane.f32.xlu0 %v7524_v32 }
0x3a65   : > { %v7359_v30 = vpop.xlane.xlu1 %7358 }
0x3a66   : > { %v7360_v36 = vsub.f32 %v7356_v24, %v7359_v30 }
0x3a68   : > { %v7361_v63 = vmul.f32 1.442695, %v7360_v36 }
0x3a6a   : > { %10019 = vpow2.f32 %v7361_v63 }
0x3a77   : > { %v10020_v38 = vpop.eup %10019 }
0x3a78   : > { %v7363_v41 = vsel %vm1023_vm4, %v10020_v38, 0.0 }
0x3a79   : > { %7364 = vadd.xlane.f32.xlu0 %v7363_v41 }
0x3a8f   : > { %7368 = vrot.lane.b32.xlu0 %v11833_v35, %s10529_s16 }
0x3a93   : > { %7757 = vrot.lane.b32.xlu0 %v11840_v54, %s10535_s5 }
0x3ad8   : > { %v7526_v42 = vpop.xlane.xlu0 %7525 }
0x3ad9   : > { %v7527_v14 = vsub.f32 %v7523_v29, %v7526_v42 }
0x3adb   : > { %v7528_v43 = vmul.f32 1.442695, %v7527_v14  ;;  %v7108_v14 = vld [vmem:[#allocation19 + $0x38] sm:$0xff] }
0x3add   : > { %10021 = vpow2.f32 %v7528_v43 }
0x3aea   : > { %v10022_v45 = vpop.eup %10021 }
0x3aeb   : > { %v7530_v46 = vsel %vm1023_vm4, %v10022_v45, 0.0 }
0x3aec   : > { %7531 = vadd.xlane.f32.xlu1 %v7530_v46 }
0x3afd   : > { %7535 = vrot.lane.b32.xlu1 %v11833_v35, %s10530_s1  ;;  %s12150_s1 = sld [smem:[#allocation39_spill]] }
0x3b01   : > { %7759 = vrot.lane.b32.xlu1 %v11833_v35, %s10535_s5 }
0x3b02   : > { %v7365_v47 = vpop.xlane.xlu0 %7364 }
0x3b03   : > { %10023 = vrcp.f32 %v7365_v47  ;;  %p12152_p2 = scmp.ne.s32.totalorder %s12150_s1, 0 }
0x3b06   : > { %v7369_v37 = vpop.permute.xlu0 %7368 }
0x3b07   : > { %9637 = vmatpush3.msra.mxu1 %v7369_v37 }
0x3b08   : > { %9646 = vmatprep.subr.mxu1 %v10526_v8 }
0x3b0a   : > { %v7758_v48 = vpop.permute.xlu0 %7757 }
0x3b10   : > { %v10024_v49 = vpop.eup %10023 }
0x3b11   : > { %v7367_v51 = vmul.f32 %v10024_v49, %v10020_v38 }
0x3b13   : > { %9639 = vmatmul.mubr.msk.f32.vlgmr.msra.gmra.mxu1 %vm1023_vm4, %v7367_v51 }
0x3b14   : > { %9648 = vmatprep.mubr.msk.f32.mxu1 %vm10527_vm1, %v10526_v8 }
0x3b75   : > { %v7532_v53 = vpop.xlane.xlu1 %7531 }
0x3b76   : > { %10025 = vrcp.f32 %v7532_v53 }
0x3b79   : > { %v7536_v17 = vpop.permute.xlu1 %7535 }
0x3b7a   : > { %9647 = vmatpush3.msra.mxu1 %v7536_v17 }
0x3b7b   : > { %9656 = vmatprep.subr.mxu1 %v10526_v8 }
0x3b7d   : > { %v7760_v61 = vpop.permute.xlu1 %7759 }
0x3b83   : > { %v10026_v12 = vpop.eup %10025 }
0x3b84   : > { %v7534_v55 = vmul.f32 %v10026_v12, %v10022_v45 }
0x3b86   : > { %9649 = vmatmul.mubr.msk.f32.vlgmr.msra.gmra.mxu1 %vm1023_vm4, %v7534_v55 }
0x3b87   : > { %9657 = vmatpush3.msra.mxu1 %v7105_v33  ;;  %9658 = vmatprep.mubr.msk.f32.mxu1 %vm10527_vm1, %v10526_v8 }
0x3b88   : > { %9666 = vmatprep.subr.mxu1 %v10526_v8 }
0x3bd3   : > { %v7440_v56 = vpop.f32.mrf.mxu1 }
0x3bd4   : > { %9659 = vmatmul.mubr.msk.f32.vlgmr.msra.gmra.mxu1 %vm1023_vm4, %v7440_v56 }
0x3bd5   : > { %v9640_v58 = vpop.f32.mrf.mxu1  ;;  %9668 = vmatprep.mubr.msk.f32.mxu1 %vm10527_vm1, %v10526_v8 }
0x3c46   : > { %v7607_v59 = vpop.f32.mrf.mxu1 }
0x3c47   : > { %9654 = vmatmul.mubr.msk.f32.vlgmr.msra.gmra.mxu0 %vm1023_vm4, %v7607_v59 }
0x3c48   : > { %9662 = vmatpush3.xpose.msk.msra.mxu0 %vm1023_vm4, %v7760_v61  ;;  %v9650_v27 = vpop.f32.mrf.mxu1  ;;  %9663 = vmatprep.mubr.msk.f32.mxu0 %vm10527_vm1, %v10526_v8 }
0x3c49   : > { %9671 = vmatprep.subr.mxu0 %v10526_v8 }
0x3c4b   : > { %9664 = vmatmul.mubr.msk.f32.vlgmr.msra.gmra.mxu0 %vm1023_vm4, %v7758_v48 }
0x3c4c   : > { %9673 = vmatprep.mubr.msk.f32.mxu0 %vm10527_vm1, %v10526_v8  ;;  %9672 = vmatpush3.msra.mxu0 %v7107_v19 }
0x3c4d   : > { %9681 = vmatprep.subr.mxu0 %v10526_v8 }
0x3c94   : > { %v7753_v21 = vpop.f32.mrf.mxu1 }
0x3c96   : > { %v9660_v34 = vpop.f32.mrf.mxu1 }
0x3c97   : > { %v8277_v34 = vld [vmem:[#allocation20 + $0x28] sm:$0xff] }
0x3d07   : > { %v7680_v2 = vpop.f32.mrf.mxu0 }
0x3d08   : > { %v7754_v44 = vadd.f32 %v7753_v21, %v7680_v2  ;;  %v8278_v21 = vld [vmem:[#allocation20 + $0x30] sm:$0xff]  ;;  %v8288_v2 = vld [vmem:[#allocation22 + $0x78] sm:$0xff] }
0x3d09   : > { %v9655_v3 = vpop.f32.mrf.mxu0 }
0x3d0a   : > { %v8287_v3 = vld [vmem:[#allocation22 + $0x70] sm:$0xff] }
0x3d0b   : > { %v7831_v4 = vpop.f32.mrf.mxu0 }
0x3d0c   : > { %v7835_v57 = vmul.f32 0.35355338, %v7831_v4  ;;  %v8286_v4 = vld [vmem:[#allocation22 + $0x68] sm:$0xff] }
0x3d0d   : > { %v9665_v5 = vpop.f32.mrf.mxu0 }
0x3d0e   : > { %v7836_v20 = vsel %vm11037_vm6, %v7835_v57, -1e+09  ;;  %v8285_v57 = vld [vmem:[#allocation22 + $0x60] sm:$0xff]  ;;  %v8284_v5 = vld [vmem:[#allocation22 + $0x58] sm:$0xff] }
0x3d0f   : > { %v7837_v7 = vsel %vm1023_vm4, %v7836_v20, -inf }
0x3d10   : > { %7838 = vmax.xlane.f32.xlu1 %v7837_v7 }
0x3d21   : > { %8000 = vrot.lane.b32.xlu1 %v11833_v35, %s10537_s27 }
0x3d25   : > { %7998 = vrot.lane.b32.xlu1 %v11840_v54, %s10537_s27 }
0x3d99   : > { %v7839_v1 = vpop.xlane.xlu1 %7838 }
0x3d9a   : > { %v7840_v10 = vsub.f32 %v7836_v20, %v7839_v1 }
0x3d9c   : > { %v7841_v23 = vmul.f32 1.442695, %v7840_v10 }
0x3d9d   : > { %v8001_v15 = vpop.permute.xlu1 %8000 }
0x3d9e   : > { %10027 = vpow2.f32 %v7841_v23 }
0x3da1   : > { %v7999_v13 = vpop.permute.xlu1 %7998 }
0x3dab   : > { %v10028_v18 = vpop.eup %10027 }
0x3dac   : > { %v7843_v60 = vsel %vm1023_vm4, %v10028_v18, 0.0 }
0x3dad   : > { %7844 = vadd.xlane.f32.xlu0 %v7843_v60 }
0x3dc3   : > { %7848 = vrot.lane.b32.xlu0 %v11833_v35, %s10534_s20  ;;  %s12078_s20 = sshll.u32 %s10668_s3, 7 }
0x3dc4   : > { %s8496_s23 = scalar_lea.hbm %s12151_s28, %s12078_s20 }
0x3e36   : > { %v7845_v11 = vpop.xlane.xlu0 %7844 }
0x3e37   : > { %10029 = vrcp.f32 %v7845_v11 }
0x3e3a   : > { %v7849_v9 = vpop.permute.xlu0 %7848 }
0x3e3b   : > { %9667 = vmatpush3.msra.mxu1 %v7849_v9  ;;  %v10046_v9 = vld [vmem:[%s12143_s21 + $0x8] sm:$0x3f] }
0x3e3c   : > { %9676 = vmatprep.subr.mxu1 %v10526_v8 }
0x3e44   : > { %v10030_v16 = vpop.eup %10029 }
0x3e45   : > { %v7847_v54 = vmul.f32 %v10030_v16, %v10028_v18  ;;  %v8258_v16 = vrot.slane %v10046_v9, %v11474_v50 }
0x3e47   : > { %9669 = vmatmul.mubr.msk.f32.vlgmr.msra.gmra.mxu1 %vm1023_vm4, %v7847_v54  ;;  %v8273_v54 = vrot.slane %v10046_v9, %v11481_v40 }
0x3e48   : > { %9677 = vmatpush3.xpose.msk.msra.mxu1 %vm1023_vm4, %v8001_v15  ;;  %9678 = vmatprep.mubr.msk.f32.mxu1 %vm10527_vm1, %v10526_v8 }
0x3e49   : > { %9686 = vmatprep.subr.mxu1 %v10526_v8 }
0x3e4b   : > { %9679 = vmatmul.mubr.msk.f32.vlgmr.msra.gmra.mxu1 %vm1023_vm4, %v7999_v13 }
0x3e4c   : > { %9688 = vmatprep.mubr.msk.f32.mxu1 %vm10527_vm1, %v10526_v8  ;;  %9687 = vmatpush3.msra.mxu1 %v7108_v14 }
0x3e4d   : > { %9702 = vmatprep.subr.mxu1 %v10526_v8 }
0x3f07   : > { %v7920_v24 = vpop.f32.mrf.mxu1 }
0x3f08   : > { %9674 = vmatmul.mubr.msk.f32.vlgmr.msra.gmra.mxu0 %vm1023_vm4, %v7920_v24 }
0x3f09   : > { %v9670_v26 = vpop.f32.mrf.mxu1  ;;  %9683 = vmatprep.mubr.msk.f32.mxu0 %vm10527_vm1, %v10526_v8 }
0x3f0a   : > { %v8283_v26 = vld [vmem:[#allocation22 + $0x50] sm:$0xff] }
0x3f0b   : > { %v8072_v0 = vpop.f32.mrf.mxu1 }
0x3f0c   : > { %v8076_v6 = vmul.f32 0.35355338, %v8072_v0  ;;  %v8282_v0 = vld [vmem:[#allocation22 + $0x48] sm:$0xff] }
0x3f0d   : > { %v9680_v28 = vpop.f32.mrf.mxu1 }
0x3f0e   : > { %v8077_v29 = vsel %vm11037_vm6, %v8076_v6, -1e+09  ;;  %v8281_v6 = vld [vmem:[#allocation22 + $0x40] sm:$0xff]  ;;  %v8292_v28 = vrot.slane %v11682_v39, %v11474_v50 }
0x3f0f   : > { %v8078_v32 = vsel %vm1023_vm4, %v8077_v29, -inf }
0x3f10   : > { %8079 = vmax.xlane.f32.xlu0 %v8078_v32 }
0x3f26   : > { %8089 = vrot.lane.b32.xlu0 %v11833_v35, %s12149_s26  ;;  %s10391_s26 = scalar_lea.vmem %s8499_s8, 128 }
0x3f27   : > { %p10392_p0 = scmp.ne.s32.totalorder %s8499_s8, %s10391_s26  ;;  %p10399_p9 = scmp.lt.s32.totalorder %s10397_s14, %s10391_s26 }
0x3f29   : > { %p10393_p5 = pnand %p10392_p0, %p12152_p2  ;;  %p10400_p1 = por %p10399_p9, %p10398_p4 }
0x3f2b   : > { %p10394_p8 = pneg %p10393_p5 }
0x3f2d   : > { %p10401_p13 = pnand %p10400_p1, %p10394_p8 }
0x3f99   : > { %v8080_v30 = vpop.xlane.xlu0 %8079 }
0x3f9a   : > { %v8081_v36 = vsub.f32 %v8077_v29, %v8080_v30 }
0x3f9c   : > { %v8082_v63 = vmul.f32 1.442695, %v8081_v36 }
0x3f9d   : > { %v8090_v38 = vpop.permute.xlu0 %8089 }
0x3f9e   : > { %10031 = vpow2.f32 %v8082_v63  ;;  %9682 = vmatpush3.msra.mxu0 %v8090_v38  ;;  %v8370_v63 = vrot.slane %v11682_v39, %v11481_v40 }
0x3f9f   : > { %9691 = vmatprep.subr.mxu0 %v10526_v8 }
0x3fab   : > { %v10032_v41 = vpop.eup %10031 }
0x3fac   : > { %v8084_v42 = vsel %vm1023_vm4, %v10032_v41, 0.0 }
0x3fad   : > { %8085 = vadd.xlane.f32.xlu1 %v8084_v42 }
0x3fc8   : > { %v7993_v43 = vpop.f32.mrf.mxu0 }
0x3fc9   : > { %v7997_v45 = vadd.f32 %v7993_v43, %v7754_v44 }
0x3fca   : > { %v9675_v35 = vpop.f32.mrf.mxu0 }
0x4036   : > { %v8086_v46 = vpop.xlane.xlu1 %8085 }
0x4037   : > { %10033 = vrcp.f32 %v8086_v46 }
0x4044   : > { %v10034_v47 = vpop.eup %10033 }
0x4045   : > { %v8088_v37 = vmul.f32 %v10034_v47, %v10032_v41 }
0x4047   : > { %9684 = vmatmul.mubr.msk.f32.vlgmr.msra.gmra.mxu0 %vm1023_vm4, %v8088_v37 }
0x4048   : > { %9699 = vmatprep.mubr.msk.f32.mxu0 %vm10527_vm1, %v10526_v8  ;;  %9692 = vmatpush3.msra.mxu0 %v8279_v62 }
0x4049   : > { %9693 = vmatprep.subr.mxu0 %v10526_v8 }
0x404a   : > { %9694 = vmatpush3.msra.mxu0 %v8278_v21 }
0x404b   : > { %9695 = vmatprep.subr.mxu0 %v10526_v8 }
0x404c   : > { %9696 = vmatpush3.msra.mxu0 %v8277_v34 }
0x404d   : > { %9697 = vmatprep.subr.mxu0 %v10526_v8 }
0x4107   : > { %v8161_v49 = vpop.f32.mrf.mxu0 }
0x4108   : > { %9689 = vmatmul.mubr.msk.f32.vlgmr.msra.gmra.mxu1 %vm1023_vm4, %v8161_v49 }
0x4109   : > { %v9685_v51 = vpop.f32.mrf.mxu0  ;;  %9718 = vmatprep.mubr.msk.f32.mxu1 %vm10527_vm1, %v10526_v8  ;;  %9703 = vmatpush3.msra.mxu1 %v8288_v2 }
0x410a   : > { %9704 = vmatprep.subr.mxu1 %v10526_v8 }
0x410b   : > { %9705 = vmatpush3.msra.mxu1 %v8287_v3 }
0x410c   : > { %9706 = vmatprep.subr.mxu1 %v10526_v8 }
0x410d   : > { %9707 = vmatpush3.msra.mxu1 %v8286_v4 }
0x410e   : > { %9708 = vmatprep.subr.mxu1 %v10526_v8 }
0x410f   : > { %9709 = vmatpush3.msra.mxu1 %v8285_v57 }
0x4110   : > { %9710 = vmatprep.subr.mxu1 %v10526_v8 }
0x4111   : > { %9711 = vmatpush3.msra.mxu1 %v8284_v5 }
0x4112   : > { %9712 = vmatprep.subr.mxu1 %v10526_v8 }
0x4113   : > { %9713 = vmatpush3.msra.mxu1 %v8283_v26 }
0x4114   : > { %9714 = vmatprep.subr.mxu1 %v10526_v8 }
0x4115   : > { %9715 = vmatpush3.msra.mxu1 %v8282_v0 }
0x4116   : > { %9716 = vmatprep.subr.mxu1 %v10526_v8 }
0x4117   : > { %9717 = vmatpush3.msra.mxu1 %v8281_v6 }
0x41c8   : > { %v8234_v53 = vpop.f32.mrf.mxu1 }
0x41c9   : > { %v8238_v17 = vadd.f32 %v8234_v53, %v7997_v45 }
0x41ca   : > { %v9690_v12 = vpop.f32.mrf.mxu1 }
0x41cb   : > { %v8243_v55 = vadd.f32 %v8242_v52, %v8238_v17 }
0x41cd   : > { %v11930_v33 = vadd.f32 %v8243_v55, %v11792_v31  ;;  %v8276_v31 = vld [vmem:[#allocation20 + $0x20] sm:$0xff] }
0x41ce   : > { %9698 = vmatpush3.msra.mxu0 %v8276_v31 }
0x41cf   : > { %v8245_v56 = vsel %vm903_vm0, %v11930_v33, 0.0 }
0x41d0   : > { %8246 = vadd.xlane.f32.xlu1 %v8245_v56 }
0x4259   : > { %v8247_v58 = vpop.xlane.xlu1 %8246 }
0x425a   : > { %v8248_v59 = vmul.f32 0.03125, %v8247_v58 }
0x425c   : > { %v8249_v61 = vsub.f32 %v11930_v33, %v8248_v59 }
0x425e   : > { %v8250_v27 = vmul.f32 %v8249_v61, %v8249_v61  ;;  %v8259_v15 = vmul.f32 %v8258_v16, %v8249_v61 }
0x4260   : > { %v8251_v48 = vsel %vm903_vm0, %v8250_v27, 0.0 }
0x4261   : > { %8252 = vadd.xlane.f32.xlu1 %v8251_v48 }
0x42ea   : > { %v8253_v20 = vpop.xlane.xlu1 %8252 }
0x42eb   : > { %v8254_v7 = vmul.f32 0.032258064, %v8253_v20 }
0x42ed   : > { %10035 = vrsqrt.f32 %v8254_v7  ;;  %vm8262_vm1 = vcmp.eq.f32.partialorder %v8254_v7, inf  ;;  %v8265_v23 = vand.u32 2147483648, %v8254_v7  ;;  %vm8264_vm4 = vcmp.eq.f32.partialorder %v8254_v7, 0.0 }
0x42fa   : > { %v10036_v1 = vpop.eup %10035 }
0x42fb   : > { %v8261_v10 = vmul.f32 %v10036_v1, %v8254_v7 }
0x42fd   : > { %v8263_v18 = vsel %vm8262_vm1, %v8254_v7, %v8261_v10 }
0x42fe   : > { %v8266_v60 = vsel %vm8264_vm4, %v8265_v23, %v8263_v18 }
0x42ff   : > { %v8267_v11 = vadd.f32 1e-06, %v8266_v60 }
0x4301   : > { %10037 = vrcp.f32 %v8267_v11 }
0x430e   : > { %v10038_v13 = vpop.eup %10037 }
0x430f   : > { %v8269_v19 = vmul.f32 %v10038_v13, %v8259_v15 }
0x4311   : > { %v8274_v24 = vadd.f32 %v8273_v54, %v8269_v19 }
0x4313   : > { %9700 = vmatmul.mubr.msk.f32.vlgmr.msra.gmra.mxu0 %vm903_vm0, %v8274_v24 }
0x43d3   : > { %v8362_v29 = vpop.f32.mrf.mxu0 }
0x43d4   : > { %v8363_v32 = vadd.f32 %v8362_v29, %v8292_v28 }
0x43d5   : > { %v9701_v30 = vpop.f32.mrf.mxu0 }
0x43d6   : > { %v8366_v36 = vmax.f32 %v8363_v32, 0.0 }
0x43d8   : > { %9719 = vmatmul.mubr.msk.f32.vlgmr.msra.gmra.mxu1 %vm2118_vm11, %v8366_v36 }
0x4498   : > { %v8440_v38 = vpop.f32.mrf.mxu1 }
0x4499   : > { %v8441_v41 = vadd.f32 %v8440_v38, %v8370_v63 }
0x449a   : > { %v9720_v8 = vpop.f32.mrf.mxu1 }
0x449b   : > { %v8444_v42 = vadd.f32 %v8441_v41, %v11930_v33 }
0x449d   : > { %v8448_v50 = vsel %vm903_vm0, %v8444_v42, 0.0 }
0x449e   : > { %8449 = vadd.xlane.f32.xlu1 %v8448_v50 }
0x4527   : > { %v8450_v44 = vpop.xlane.xlu1 %8449 }
0x4528   : > { %v8451_v14 = vmul.f32 0.03125, %v8450_v44 }
0x452a   : > { %v8452_v43 = vsub.f32 %v8444_v42, %v8451_v14 }
0x452c   : > { %v8453_v45 = vmul.f32 %v8452_v43, %v8452_v43 }
0x452e   : > { %v8454_v35 = vsel %vm903_vm0, %v8453_v45, 0.0 }
0x452f   : > { %8455 = vadd.xlane.f32.xlu1 %v8454_v35 }
0x4530   : > { %10404 = shalt.err (!%p10401_p13)
}
0x4531   : > { %s10405_s16 = scalar_lea.hbm %s8496_s23, 128  ;;  %s10409_s27 = scalar_lea.hbm %s12151_s28, 256 }
0x4532   : > { %p10406_p10 = scmp.ne.s32.totalorder %s8496_s23, %s10405_s16  ;;  %p10410_p3 = scmp.lt.s32.totalorder %s8496_s23, %s12151_s28 }
0x4533   : > { %p10411_p6 = scmp.lt.s32.totalorder %s10409_s27, %s10405_s16 }
0x4534   : > { %p10407_p11 = pnand %p10406_p10, %p12152_p2 }
0x4535   : > { %p10412_p7 = por %p10411_p6, %p10410_p3 }
0x4536   : > { %p10408_p12 = pneg %p10407_p11 }
0x4538   : > { %p10413_p0 = pnand %p10412_p7, %p10408_p12 }
0x453a   : > { %10416 = shalt.err (!%p10413_p0)
}
0x453b   : > { %9767 = dma.vmem_to_hbm [thread:$0]  (%p12152_p2), %s8499_s8, 128, %s8496_s23, %s8480_s25   ;;  %v8906_v53 = vld [vmem:[%s12147_s9 + $0x4] sm:$0x3] }
0x453c   : > { %v8461_v17 = vrot.slane %v8906_v53, %v10990_v22  ;;  %v8476_v12 = vrot.slane %v8906_v53, %v11000_v25  ;;  %s878_s23 = scalar_lea.vmem [#allocation24], %s10930_s0  ;;  %s12153_s25 = sshll.u32 %s10668_s3, 7 }
0x453d   : > { %s8511_s8 = sshll.u32 %s878_s23, 4  ;;  %s12154_s4 = sld [smem:[#allocation58_spill]]  ;;  %s8512_s8 = int_to_ptr.vmem [resolvable:$true] %s8511_s8 }
0x453e   : > { %v8462_v55 = vmul.f32 %v8461_v17, %v8452_v43  ;;  %s8485_s16 = scalar_lea.sflag [#allocation25], %s10927_s6  ;;  %s10417_s30 = scalar_lea.vmem %s8512_s8, 128 }
0x453f   : > { %p10418_p5 = scmp.ne.s32.totalorder %s8512_s8, %s10417_s30  ;;  %s10541_s5 = smov [#allocation24]  }
0x4540   : > { %s10421_s27 = sshll.u32 %s10541_s5, 4  ;;  %s10422_s27 = int_to_ptr.vmem [resolvable:$false] %s10421_s27 }
0x4541   : > { %p10419_p8 = pnand %p10418_p5, %p12152_p2  ;;  %s10423_s0 = scalar_lea.vmem %s10422_s27, 256 }
0x4542   : > { %p10424_p9 = scmp.lt.s32.totalorder %s8512_s8, %s10422_s27  ;;  %p10425_p1 = scmp.lt.s32.totalorder %s10423_s0, %s10417_s30 }
0x4543   : > { %s8509_s14 = scalar_lea.hbm %s12154_s4, %s12153_s25  ;;  %p10420_p4 = pneg %p10419_p8 }
0x4544   : > { %p10426_p13 = por %p10425_p1, %p10424_p9 }
0x4546   : > { %p10427_p10 = pnand %p10426_p13, %p10420_p4 }
0x45b8   : > { %v8456_v40 = vpop.xlane.xlu1 %8455 }
0x45b9   : > { %v8457_v39 = vmul.f32 0.032258064, %v8456_v40 }
0x45bb   : > { %10039 = vrsqrt.f32 %v8457_v39  ;;  %vm8465_vm6 = vcmp.eq.f32.partialorder %v8457_v39, inf  ;;  %v8468_v37 = vand.u32 2147483648, %v8457_v39  ;;  %vm8467_vm11 = vcmp.eq.f32.partialorder %v8457_v39, 0.0 }
0x45c8   : > { %v10040_v46 = vpop.eup %10039 }
0x45c9   : > { %v8464_v47 = vmul.f32 %v10040_v46, %v8457_v39 }
0x45cb   : > { %v8466_v49 = vsel %vm8465_vm6, %v8457_v39, %v8464_v47 }
0x45cc   : > { %v8469_v51 = vsel %vm8467_vm11, %v8468_v37, %v8466_v49 }
0x45cd   : > { %v8470_v52 = vadd.f32 1e-06, %v8469_v51 }
0x45cf   : > { %10041 = vrcp.f32 %v8470_v52 }
0x45dc   : > { %v10042_v33 = vpop.eup %10041 }
0x45dd   : > { %v8472_v56 = vmul.f32 %v10042_v33, %v8462_v55 }
0x45df   : > { %v8477_v58 = vadd.f32 %v8476_v12, %v8472_v56 }
0x45e1   : > { %8478 = vst.msk [vmem:[%s878_s23] sm:$0xff] %vm903_vm0, %v8477_v58 }
0x45e2   : > { %10430 = shalt.err (!%p10427_p10)
}
0x45e3   : > { %s10431_s3 = scalar_lea.hbm %s8509_s14, 128  ;;  %s10435_s20 = scalar_lea.hbm %s12154_s4, 256 }
0x45e4   : > { %p10432_p11 = scmp.ne.s32.totalorder %s8509_s14, %s10431_s3  ;;  %p10436_p6 = scmp.lt.s32.totalorder %s8509_s14, %s12154_s4 }
0x45e5   : > { %p10437_p7 = scmp.lt.s32.totalorder %s10435_s20, %s10431_s3 }
0x45e6   : > { %p10433_p12 = pnand %p10432_p11, %p12152_p2 }
0x45e7   : > { %p10438_p0 = por %p10437_p7, %p10436_p6 }
0x45e8   : > { %p10434_p3 = pneg %p10433_p12 }
0x45ea   : > { %p10439_p5 = pnand %p10438_p0, %p10434_p3 }
0x45ec   : > { %10442 = shalt.err (!%p10439_p5)
}
0x45ed   : > { %9768 = dma.vmem_to_hbm [thread:$0]  (%p12152_p2), %s8512_s8, 128, %s8509_s14, %s8485_s16  }
0x45ee PF: > { %s12155_s26 = sld [smem:[#allocation35_spill]]  ;;  %p12158_p4 = scmp.ge.s32.totalorder %s10509_s24, 2 }
0x45ef   : > { %s12156_s2 = sld [smem:[#allocation40_spill]] }
0x45f4   : > { %s8523_s30 = sand.u32 1, %s12155_s26  }
0x45f5   : > { %p12157_p8 = scmp.ne.s32.totalorder %s12156_s2, 0  ;;  %s8524_s5 = scalar_lea.sflag [#allocation4], %s8523_s30 }
0x45f7   : > { %p9813_p9 = pnand %p12158_p4, %p12157_p8 }
0x45f9   : > { %p9814_p1 = pneg %p9813_p9 }
0x45fb   : > { %10488 = dma.done.wait (%p9814_p1), %s8524_s5, 128  }
0x45fc   : > { %10490 = vsyncadd (%p9814_p1), %s8524_s5, 4294967168  ;;  %s8533_s27 = scalar_lea.sflag [#allocation25], %s8523_s30 }
0x45fd   : > { %10492 = dma.done.wait (%p9814_p1), %s8533_s27, 128  }
0x45fe   : > { %10494 = vsyncadd (%p9814_p1), %s8533_s27, 4294967168  ;;  %s12159_s24 = sld [smem:[#allocation37_spill]]  ;;  %s12162_s1 = smov %s10501_s22 }
0x45ff   : > { %s12160_s0 = sld [smem:[#allocation36_spill]] }
0x4600   : > { %s12161_s23 = sld [smem:[#allocation38_spill]] }
0x4604   : > { %p45_p2 = scmp.ge.s32.totalorder %s12159_s24, 4  }
0x4605   : > { %s12163_s22 = smov %s12160_s0 }
0x4606   :  { %47 = sbr.rel (!%p45_p2) target bundleno = 33 (0x21), region = 241 }
0x460b   :  { %8538 = vsyncpa [#allocation3], 1 }
0x460c   :  { %8540 = vsyncpa [#allocation3 + $0x1], 1 }
0x460d   :  { %8541 = vsyncpa [#allocation6], 1 }
0x460e   :  { %8543 = vsyncpa [#allocation6 + $0x1], 1 }
0x460f   :  { %8544 = vsyncpa [#allocation9], 1 }
0x4610   :  { %8545 = vsyncpa [#allocation12], 1 }
0x4611   :  { %8546 = vsyncpa [#allocation15], 1 }
0x4612   :  { %8547 = vsyncpa [#allocation18], 1 }
0x4613   :  { %8548 = vsyncpa [#allocation21], 1 }
0x4614   :  { %8549 = vsyncpa [#allocation4], 1 }
0x4615   :  { %8551 = vsyncpa [#allocation4 + $0x1], 1 }
0x4616   :  { %8552 = vsyncpa [#allocation25], 1 }
0x4617   :  { %8554 = vsyncpa [#allocation25 + $0x1], 1 }

</bundles_post_ra>
